<compile_context>
chip_gen: v7x
topology: tpu7x:2x2x1
jax: 0.10.0
libtpu: 0.0.40
codegen_flags: <defaults>
</compile_context>

<pallas_src>
import functools

import numpy as np
import jax
import jax.numpy as jnp
from jax import lax
from jax.experimental import pallas as pl
from jax.experimental.pallas import tpu as pltpu


def _pair(v):
    return (v, v) if isinstance(v, int) else tuple(v)


def _largest_divisor_at_most(n, cap):
    d = int(max(1, min(n, cap)))
    while n % d:
        d -= 1
    return d


def _convt_rs_kernel(x_ref, w_ref, b_ref, o_ref, acc_ref, *,
                     kH, kW, dh, dw, H_out, W_out):
    """One (batch-block, Cout-tile, channel-shard) grid step.

    x_ref  : (Nb, Hp, Wp, Cin_l)   bf16  zero-upsampled + padded input shard
    w_ref  : (kH, kW, Cin_l, TC)   bf16  flipped transposed-conv weight slice
    b_ref  : (1, TC)               f32   bias tile (applied once, at shard 0)
    o_ref  : (Nb*H_out*W_out, TC)  f32   lane-dense output tile (written once)
    acc_ref: (Nb*H_out*W_out, TC)  f32   VMEM accumulator, resident across shards
    """
    p = pl.program_id(2)
    nb, _, _, cin_l = x_ref.shape

    @pl.when(p == 0)
    def _():
        # P_apply_bias semantics: bias is counted exactly once before the
        # reduce-scatter sums contributions over channel shards.
        acc_ref[...] = jnp.broadcast_to(b_ref[...], acc_ref.shape)

    m = nb * H_out * W_out
    # bf16 x bf16 -> f32 MXU matmuls, one per kernel tap, accumulated into the
    # resident f32 VMEM scratch.  For production shard configs Cin_l should be
    # a multiple of 128 so every tap is a full-K MXU pass.
    # TODO(synk): for tiny Cin_l fuse taps into one K=kH*kW*Cin_l matmul
    # (in-kernel im2col) once unaligned lane concatenation is cheap in Mosaic.
    for kh in range(kH):
        for kw in range(kW):
            patch = x_ref[:, kh * dh:kh * dh + H_out, kw * dw:kw * dw + W_out, :]
            patch = patch.reshape(m, cin_l)
            acc_ref[...] += jnp.dot(patch, w_ref[kh, kw, :, :],
                                    preferred_element_type=jnp.float32)

    @pl.when(p == pl.num_programs(2) - 1)
    def _():
        # Single lane-dense (128-wide) store of the reduced output tile.
        o_ref[...] = acc_ref[...].astype(o_ref.dtype)


@functools.partial(
    jax.jit,
    static_argnames=("num_channel_workers", "stride", "padding", "output_padding",
                     "dilation", "groups", "batch_block", "cout_block"))
def distributed_channel_rs_conv_transpose2d(x, weight, bias, *, num_channel_workers,
                                            stride=1, padding=0, output_padding=0,
                                            dilation=1, groups=1,
                                            batch_block=None, cout_block=128):
    """Simulated distributed channel-partitioned ConvTranspose2d + ReduceScatter.

    x:      (N, Cin, H, W)       float32, NCHW (global tensor)
    weight: (Cin, Cout, kH, kW)  global transposed-conv weight
    bias:   (Cout,) or None      global bias
    Returns (shards, full):
      shards: (P, N, Cout // P, H_out, W_out)  per-worker reduce-scattered outputs
      full:   (N, Cout, H_out, W_out)          the summed (pre-scatter) output
    """
    assert groups == 1  # TODO(synk): grouped transposed conv not implemented
    P = num_channel_workers
    N, Cin, H, W = x.shape
    Cin_w, Cout, kH, kW = weight.shape
    assert Cin_w == Cin and Cin % P == 0 and Cout % P == 0

    sh, sw = _pair(stride)
    ph, pw = _pair(padding)
    oph, opw = _pair(output_padding)
    dh, dw = _pair(dilation)
    # PyTorch requires output_padding to be smaller than either stride or dilation.
    assert oph < max(sh, dh) and opw < max(sw, dw), \
        "output_padding must be smaller than either stride or dilation"

    H_out = (H - 1) * sh - 2 * ph + dh * (kH - 1) + 1 + oph
    W_out = (W - 1) * sw - 2 * pw + dw * (kW - 1) + 1 + opw

    pad_t = dh * (kH - 1) - ph          # may be negative -> lax.pad crops
    pad_b = pad_t + oph
    pad_l = dw * (kW - 1) - pw
    pad_r = pad_l + opw

    Cin_l = Cin // P
    assert cout_block % 128 == 0
    Cout_pad = pl.cdiv(Cout, cout_block) * cout_block   # lane-dense output tiles
    TC = cout_block

    M_sp = H_out * W_out
    if batch_block is None:
        # Keep the resident f32 accumulator / output tile around <= 8 MiB.
        cap = max(1, (8 << 20) // (M_sp * TC * 4))
        Nb = _largest_divisor_at_most(N, cap)
        if Nb < N and (Nb * M_sp) % 8 != 0:
            Nb = N
    else:
        Nb = batch_block
    assert N % Nb == 0 and (Nb == N or (Nb * M_sp) % 8 == 0)

    # ---- glue (fused under jit): shard, channels-last, bf16, zero-upsample + pad ----
    # Cast to bf16 BEFORE the stride-stuffing pad so the inflated array is half size.
    x_sh = x.astype(jnp.bfloat16).reshape(N, P, Cin_l, H, W).transpose(1, 0, 3, 4, 2)
    xu = lax.pad(x_sh, jnp.array(0, jnp.bfloat16),
                 ((0, 0, 0), (0, 0, 0),
                  (pad_t, pad_b, sh - 1), (pad_l, pad_r, sw - 1), (0, 0, 0)))
    # TODO(synk): a stride-phase decomposition would avoid the sh*sw zero-stuffing
    # entirely; the stuffed (bf16) form is kept for generality across arbitrary
    # stride / dilation / output_padding combinations.
    Hp, Wp = xu.shape[2], xu.shape[3]
    assert Hp == H_out + (kH - 1) * dh and Wp == W_out + (kW - 1) * dw

    # Weight shard: spatial flip, channels-last, pad Cout to a multiple of 128,
    # cast bf16:  (P, kH, kW, Cin_l, Cout_pad)
    w_sh = weight.reshape(P, Cin_l, Cout, kH, kW)
    wf = jnp.flip(w_sh, axis=(3, 4)).transpose(0, 3, 4, 1, 2)
    wf = jnp.pad(wf, ((0, 0),) * 4 + ((0, Cout_pad - Cout),)).astype(jnp.bfloat16)

    if bias is None:
        b2d = jnp.zeros((1, Cout_pad), jnp.float32)
    else:
        b2d = jnp.pad(bias.reshape(1, Cout).astype(jnp.float32),
                      ((0, 0), (0, Cout_pad - Cout)))

    kernel = functools.partial(_convt_rs_kernel, kH=kH, kW=kW, dh=dh, dw=dw,
                               H_out=H_out, W_out=W_out)

    out2d = pl.pallas_call(
        kernel,
        out_shape=jax.ShapeDtypeStruct((N * M_sp, Cout_pad), jnp.float32),
        grid_spec=pltpu.PrefetchScalarGridSpec(
            num_scalar_prefetch=0,
            # (batch blocks, Cout tiles) parallel, channel-shard reduction last.
            grid=(N // Nb, Cout_pad // TC, P),
            in_specs=[
                pl.BlockSpec((None, Nb, Hp, Wp, Cin_l),
                             lambda n, c, p: (p, n, 0, 0, 0)),
                pl.BlockSpec((None, kH, kW, Cin_l, TC),
                             lambda n, c, p: (p, 0, 0, 0, c)),
                pl.BlockSpec((1, TC), lambda n, c, p: (0, c)),
            ],
            out_specs=pl.BlockSpec((Nb * M_sp, TC), lambda n, c, p: (n, c)),
            scratch_shapes=[pltpu.VMEM((Nb * M_sp, TC), jnp.float32)],
        ),
        compiler_params=pltpu.CompilerParams(
            dimension_semantics=("parallel", "parallel", "arbitrary"),
            vmem_limit_bytes=48 * 1024 * 1024),   # explicit; fits v7x's 64 MiB VMEM
    )(xu, wf, b2d)

    # ---- glue: drop Cout padding, back to NCHW, "scatter" channels across workers ----
    full = out2d.reshape(N, H_out, W_out, Cout_pad)[..., :Cout].transpose(0, 3, 1, 2)
    shards = full.reshape(N, P, Cout // P, H_out, W_out).transpose(1, 0, 2, 3, 4)
    return shards, full


if __name__ == "__main__":
    # Small, conv-transpose-shaped problem.
    N, Cin, Cout, H, W = 2, 8, 8, 8, 8
    kH = kW = 3
    stride, padding, output_padding, dilation = (2, 2), (1, 1), (1, 1), (1, 1)
    P = 2  # number of channel-partition (model-parallel) workers

    key = jax.random.PRNGKey(0)
    kx, kw_, kb = jax.random.split(key, 3)
    x = jax.random.normal(kx, (N, Cin, H, W), jnp.float32)

    # Deterministic kaiming-uniform-like init (a=sqrt(5) -> bound = 1/sqrt(fan_in)).
    fan_in = Cout * kH * kW
    bound = 1.0 / np.sqrt(fan_in)
    weight = jax.random.uniform(kw_, (Cin, Cout, kH, kW), jnp.float32, -bound, bound)
    bias = jax.random.uniform(kb, (Cout,), jnp.float32, -bound, bound)

    shards, full = distributed_channel_rs_conv_transpose2d(
        x, weight, bias, num_channel_workers=P, stride=stride, padding=padding,
        output_padding=output_padding, dilation=dilation, groups=1)
    jax.block_until_ready((shards, full))

    # Independent reference computed from the same bf16-rounded operands the
    # kernel feeds the MXU (accumulation stays f32 in both paths).
    xr = x.astype(jnp.bfloat16).astype(jnp.float32)
    wr = weight.astype(jnp.bfloat16).astype(jnp.float32)
    dh, dw = dilation
    ph, pw = padding
    oph, opw = output_padding
    w_conv = jnp.flip(wr, (2, 3)).transpose(1, 0, 2, 3)  # (Cout, Cin, kH, kW)
    ref = lax.conv_general_dilated(
        xr, w_conv, window_strides=(1, 1),
        padding=((dh * (kH - 1) - ph, dh * (kH - 1) - ph + oph),
                 (dw * (kW - 1) - pw, dw * (kW - 1) - pw + opw)),
        lhs_dilation=stride, rhs_dilation=dilation,
        dimension_numbers=("NCHW", "OIHW", "NCHW"),
        precision=lax.Precision.HIGHEST) + bias[None, :, None, None]

    np.testing.assert_allclose(np.asarray(full), np.asarray(ref), rtol=1e-3, atol=1e-3)
    # Per-worker shards are contiguous channel slices of the reduced output.
    np.testing.assert_allclose(
        np.asarray(shards[1]), np.asarray(ref[:, Cout // P:, :, :]), rtol=1e-3, atol=1e-3)
    print("KERNEL_OK")
</pallas_src>

<mosaic_0001>
module attributes {stable_mosaic.version = 11 : i64} {
  func.func @_convt_rs_kernel(%arg0: i32, %arg1: i32, %arg2: i32, %arg3: memref<1x2x18x18x4xbf16, #tpu.memory_space<vmem>>, %arg4: memref<1x3x3x4x128xbf16, #tpu.memory_space<vmem>>, %arg5: memref<1x128xf32, #tpu.memory_space<vmem>>, %arg6: memref<512x128xf32, #tpu.memory_space<vmem>>, %arg7: memref<512x128xf32, #tpu.memory_space<vmem>>) attributes {dimension_semantics = [#tpu.dimension_semantics<parallel>, #tpu.dimension_semantics<parallel>, #tpu.dimension_semantics<arbitrary>], iteration_bounds = array<i64: 1, 1, 2>, scalar_prefetch = 0 : i64, scratch_operands = 1 : i64, tpu.core_type = #tpu.core_type<tc>, window_params = [{transform_indices = @transform_0, window_bounds = array<i64: 1, 2, 18, 18, 4>}, {transform_indices = @transform_1, window_bounds = array<i64: 1, 3, 3, 4, 128>}, {transform_indices = @transform_2, window_bounds = array<i64: 1, 128>}, {transform_indices = @transform_3, window_bounds = array<i64: 512, 128>}]} {
    %c0_i32 = arith.constant 0 : i32
    %0 = arith.cmpi eq, %arg2, %c0_i32 : i32
    %1 = arith.extui %0 : i1 to i32
    %c0_i32_0 = arith.constant 0 : i32
    %2 = arith.cmpi ne, %1, %c0_i32_0 : i32
    scf.if %2 {
      %c0_133 = arith.constant 0 : index
      %c0_134 = arith.constant 0 : index
      %87 = vector.load %arg5[%c0_133, %c0_134] : memref<1x128xf32, #tpu.memory_space<vmem>>, vector<1x128xf32>
      %88 = vector.shape_cast %87 : vector<1x128xf32> to vector<1x128xf32>
      %89 = vector.broadcast %88 : vector<1x128xf32> to vector<512x128xf32>
      %c0_135 = arith.constant 0 : index
      %c0_136 = arith.constant 0 : index
      %90 = vector.load %arg7[%c0_135, %c0_136] : memref<512x128xf32, #tpu.memory_space<vmem>>, vector<512x128xf32>
      tpu.vector_store %arg7[%c0_135, %c0_136], %89 {strides = array<i32>} : memref<512x128xf32, #tpu.memory_space<vmem>>, vector<512x128xf32>,
    } else {
    }
    %c0 = arith.constant 0 : index
    %c0_1 = arith.constant 0 : index
    %c0_2 = arith.constant 0 : index
    %c0_3 = arith.constant 0 : index
    %c0_4 = arith.constant 0 : index
    %3 = vector.load %arg3[%c0, %c0_1, %c0_2, %c0_3, %c0_4] : memref<1x2x18x18x4xbf16, #tpu.memory_space<vmem>>, vector<1x2x16x16x4xbf16>
    %4 = vector.shape_cast %3 : vector<1x2x16x16x4xbf16> to vector<2x16x16x4xbf16>
    %5 = vector.shape_cast %4 : vector<2x16x16x4xbf16> to vector<512x4xbf16>
    %c0_5 = arith.constant 0 : index
    %c0_6 = arith.constant 0 : index
    %6 = vector.load %arg7[%c0_5, %c0_6] : memref<512x128xf32, #tpu.memory_space<vmem>>, vector<512x128xf32>
    %c0_7 = arith.constant 0 : index
    %c0_8 = arith.constant 0 : index
    %c0_9 = arith.constant 0 : index
    %c0_10 = arith.constant 0 : index
    %c0_11 = arith.constant 0 : index
    %7 = vector.load %arg4[%c0_7, %c0_8, %c0_9, %c0_10, %c0_11] : memref<1x3x3x4x128xbf16, #tpu.memory_space<vmem>>, vector<1x1x1x4x128xbf16>
    %8 = vector.shape_cast %7 : vector<1x1x1x4x128xbf16> to vector<4x128xbf16>
    %cst = arith.constant dense<0.000000e+00> : vector<512x128xf32>
    %9 = tpu.matmul %5, %8, %cst {dimension_numbers = #tpu.dot_dimension_numbers<[1], [0], [0], [1], [0, 0, 1, 1], [], []>} : vector<512x4xbf16>, vector<4x128xbf16>, vector<512x128xf32> -> vector<512x128xf32>
    %10 = arith.addf %6, %9 : vector<512x128xf32>
    %c0_12 = arith.constant 0 : index
    %c0_13 = arith.constant 0 : index
    %11 = vector.load %arg7[%c0_12, %c0_13] : memref<512x128xf32, #tpu.memory_space<vmem>>, vector<512x128xf32>
    tpu.vector_store %arg7[%c0_12, %c0_13], %10 {strides = array<i32>} : memref<512x128xf32, #tpu.memory_space<vmem>>, vector<512x128xf32>,
    %c0_14 = arith.constant 0 : index
    %c0_15 = arith.constant 0 : index
    %c0_16 = arith.constant 0 : index
    %c1 = arith.constant 1 : index
    %c0_17 = arith.constant 0 : index
    %12 = vector.load %arg3[%c0_14, %c0_15, %c0_16, %c1, %c0_17] : memref<1x2x18x18x4xbf16, #tpu.memory_space<vmem>>, vector<1x2x16x16x4xbf16>
    %13 = vector.shape_cast %12 : vector<1x2x16x16x4xbf16> to vector<2x16x16x4xbf16>
    %14 = vector.shape_cast %13 : vector<2x16x16x4xbf16> to vector<512x4xbf16>
    %c0_18 = arith.constant 0 : index
    %c0_19 = arith.constant 0 : index
    %15 = vector.load %arg7[%c0_18, %c0_19] : memref<512x128xf32, #tpu.memory_space<vmem>>, vector<512x128xf32>
    %c0_20 = arith.constant 0 : index
    %c0_21 = arith.constant 0 : index
    %c1_22 = arith.constant 1 : index
    %c0_23 = arith.constant 0 : index
    %c0_24 = arith.constant 0 : index
    %16 = vector.load %arg4[%c0_20, %c0_21, %c1_22, %c0_23, %c0_24] : memref<1x3x3x4x128xbf16, #tpu.memory_space<vmem>>, vector<1x1x1x4x128xbf16>
    %17 = vector.shape_cast %16 : vector<1x1x1x4x128xbf16> to vector<4x128xbf16>
    %cst_25 = arith.constant dense<0.000000e+00> : vector<512x128xf32>
    %18 = tpu.matmul %14, %17, %cst_25 {dimension_numbers = #tpu.dot_dimension_numbers<[1], [0], [0], [1], [0, 0, 1, 1], [], []>} : vector<512x4xbf16>, vector<4x128xbf16>, vector<512x128xf32> -> vector<512x128xf32>
    %19 = arith.addf %15, %18 : vector<512x128xf32>
    %c0_26 = arith.constant 0 : index
    %c0_27 = arith.constant 0 : index
    %20 = vector.load %arg7[%c0_26, %c0_27] : memref<512x128xf32, #tpu.memory_space<vmem>>, vector<512x128xf32>
    tpu.vector_store %arg7[%c0_26, %c0_27], %19 {strides = array<i32>} : memref<512x128xf32, #tpu.memory_space<vmem>>, vector<512x128xf32>,
    %c0_28 = arith.constant 0 : index
    %c0_29 = arith.constant 0 : index
    %c0_30 = arith.constant 0 : index
    %c2 = arith.constant 2 : index
    %c0_31 = arith.constant 0 : index
    %21 = vector.load %arg3[%c0_28, %c0_29, %c0_30, %c2, %c0_31] : memref<1x2x18x18x4xbf16, #tpu.memory_space<vmem>>, vector<1x2x16x16x4xbf16>
    %22 = vector.shape_cast %21 : vector<1x2x16x16x4xbf16> to vector<2x16x16x4xbf16>
    %23 = vector.shape_cast %22 : vector<2x16x16x4xbf16> to vector<512x4xbf16>
    %c0_32 = arith.constant 0 : index
    %c0_33 = arith.constant 0 : index
    %24 = vector.load %arg7[%c0_32, %c0_33] : memref<512x128xf32, #tpu.memory_space<vmem>>, vector<512x128xf32>
    %c0_34 = arith.constant 0 : index
    %c0_35 = arith.constant 0 : index
    %c2_36 = arith.constant 2 : index
    %c0_37 = arith.constant 0 : index
    %c0_38 = arith.constant 0 : index
    %25 = vector.load %arg4[%c0_34, %c0_35, %c2_36, %c0_37, %c0_38] : memref<1x3x3x4x128xbf16, #tpu.memory_space<vmem>>, vector<1x1x1x4x128xbf16>
    %26 = vector.shape_cast %25 : vector<1x1x1x4x128xbf16> to vector<4x128xbf16>
    %cst_39 = arith.constant dense<0.000000e+00> : vector<512x128xf32>
    %27 = tpu.matmul %23, %26, %cst_39 {dimension_numbers = #tpu.dot_dimension_numbers<[1], [0], [0], [1], [0, 0, 1, 1], [], []>} : vector<512x4xbf16>, vector<4x128xbf16>, vector<512x128xf32> -> vector<512x128xf32>
    %28 = arith.addf %24, %27 : vector<512x128xf32>
    %c0_40 = arith.constant 0 : index
    %c0_41 = arith.constant 0 : index
    %29 = vector.load %arg7[%c0_40, %c0_41] : memref<512x128xf32, #tpu.memory_space<vmem>>, vector<512x128xf32>
    tpu.vector_store %arg7[%c0_40, %c0_41], %28 {strides = array<i32>} : memref<512x128xf32, #tpu.memory_space<vmem>>, vector<512x128xf32>,
    %c0_42 = arith.constant 0 : index
    %c0_43 = arith.constant 0 : index
    %c1_44 = arith.constant 1 : index
    %c0_45 = arith.constant 0 : index
    %c0_46 = arith.constant 0 : index
    %30 = vector.load %arg3[%c0_42, %c0_43, %c1_44, %c0_45, %c0_46] : memref<1x2x18x18x4xbf16, #tpu.memory_space<vmem>>, vector<1x2x16x16x4xbf16>
    %31 = vector.shape_cast %30 : vector<1x2x16x16x4xbf16> to vector<2x16x16x4xbf16>
    %32 = vector.shape_cast %31 : vector<2x16x16x4xbf16> to vector<512x4xbf16>
    %c0_47 = arith.constant 0 : index
    %c0_48 = arith.constant 0 : index
    %33 = vector.load %arg7[%c0_47, %c0_48] : memref<512x128xf32, #tpu.memory_space<vmem>>, vector<512x128xf32>
    %c0_49 = arith.constant 0 : index
    %c1_50 = arith.constant 1 : index
    %c0_51 = arith.constant 0 : index
    %c0_52 = arith.constant 0 : index
    %c0_53 = arith.constant 0 : index
    %34 = vector.load %arg4[%c0_49, %c1_50, %c0_51, %c0_52, %c0_53] : memref<1x3x3x4x128xbf16, #tpu.memory_space<vmem>>, vector<1x1x1x4x128xbf16>
    %35 = vector.shape_cast %34 : vector<1x1x1x4x128xbf16> to vector<4x128xbf16>
    %cst_54 = arith.constant dense<0.000000e+00> : vector<512x128xf32>
    %36 = tpu.matmul %32, %35, %cst_54 {dimension_numbers = #tpu.dot_dimension_numbers<[1], [0], [0], [1], [0, 0, 1, 1], [], []>} : vector<512x4xbf16>, vector<4x128xbf16>, vector<512x128xf32> -> vector<512x128xf32>
    %37 = arith.addf %33, %36 : vector<512x128xf32>
    %c0_55 = arith.constant 0 : index
    %c0_56 = arith.constant 0 : index
    %38 = vector.load %arg7[%c0_55, %c0_56] : memref<512x128xf32, #tpu.memory_space<vmem>>, vector<512x128xf32>
    tpu.vector_store %arg7[%c0_55, %c0_56], %37 {strides = array<i32>} : memref<512x128xf32, #tpu.memory_space<vmem>>, vector<512x128xf32>,
    %c0_57 = arith.constant 0 : index
    %c0_58 = arith.constant 0 : index
    %c1_59 = arith.constant 1 : index
    %c1_60 = arith.constant 1 : index
    %c0_61 = arith.constant 0 : index
    %39 = vector.load %arg3[%c0_57, %c0_58, %c1_59, %c1_60, %c0_61] : memref<1x2x18x18x4xbf16, #tpu.memory_space<vmem>>, vector<1x2x16x16x4xbf16>
    %40 = vector.shape_cast %39 : vector<1x2x16x16x4xbf16> to vector<2x16x16x4xbf16>
    %41 = vector.shape_cast %40 : vector<2x16x16x4xbf16> to vector<512x4xbf16>
    %c0_62 = arith.constant 0 : index
    %c0_63 = arith.constant 0 : index
    %42 = vector.load %arg7[%c0_62, %c0_63] : memref<512x128xf32, #tpu.memory_space<vmem>>, vector<512x128xf32>
    %c0_64 = arith.constant 0 : index
    %c1_65 = arith.constant 1 : index
    %c1_66 = arith.constant 1 : index
    %c0_67 = arith.constant 0 : index
    %c0_68 = arith.constant 0 : index
    %43 = vector.load %arg4[%c0_64, %c1_65, %c1_66, %c0_67, %c0_68] : memref<1x3x3x4x128xbf16, #tpu.memory_space<vmem>>, vector<1x1x1x4x128xbf16>
    %44 = vector.shape_cast %43 : vector<1x1x1x4x128xbf16> to vector<4x128xbf16>
    %cst_69 = arith.constant dense<0.000000e+00> : vector<512x128xf32>
    %45 = tpu.matmul %41, %44, %cst_69 {dimension_numbers = #tpu.dot_dimension_numbers<[1], [0], [0], [1], [0, 0, 1, 1], [], []>} : vector<512x4xbf16>, vector<4x128xbf16>, vector<512x128xf32> -> vector<512x128xf32>
    %46 = arith.addf %42, %45 : vector<512x128xf32>
    %c0_70 = arith.constant 0 : index
    %c0_71 = arith.constant 0 : index
    %47 = vector.load %arg7[%c0_70, %c0_71] : memref<512x128xf32, #tpu.memory_space<vmem>>, vector<512x128xf32>
    tpu.vector_store %arg7[%c0_70, %c0_71], %46 {strides = array<i32>} : memref<512x128xf32, #tpu.memory_space<vmem>>, vector<512x128xf32>,
    %c0_72 = arith.constant 0 : index
    %c0_73 = arith.constant 0 : index
    %c1_74 = arith.constant 1 : index
    %c2_75 = arith.constant 2 : index
    %c0_76 = arith.constant 0 : index
    %48 = vector.load %arg3[%c0_72, %c0_73, %c1_74, %c2_75, %c0_76] : memref<1x2x18x18x4xbf16, #tpu.memory_space<vmem>>, vector<1x2x16x16x4xbf16>
    %49 = vector.shape_cast %48 : vector<1x2x16x16x4xbf16> to vector<2x16x16x4xbf16>
    %50 = vector.shape_cast %49 : vector<2x16x16x4xbf16> to vector<512x4xbf16>
    %c0_77 = arith.constant 0 : index
    %c0_78 = arith.constant 0 : index
    %51 = vector.load %arg7[%c0_77, %c0_78] : memref<512x128xf32, #tpu.memory_space<vmem>>, vector<512x128xf32>
    %c0_79 = arith.constant 0 : index
    %c1_80 = arith.constant 1 : index
    %c2_81 = arith.constant 2 : index
    %c0_82 = arith.constant 0 : index
    %c0_83 = arith.constant 0 : index
    %52 = vector.load %arg4[%c0_79, %c1_80, %c2_81, %c0_82, %c0_83] : memref<1x3x3x4x128xbf16, #tpu.memory_space<vmem>>, vector<1x1x1x4x128xbf16>
    %53 = vector.shape_cast %52 : vector<1x1x1x4x128xbf16> to vector<4x128xbf16>
    %cst_84 = arith.constant dense<0.000000e+00> : vector<512x128xf32>
    %54 = tpu.matmul %50, %53, %cst_84 {dimension_numbers = #tpu.dot_dimension_numbers<[1], [0], [0], [1], [0, 0, 1, 1], [], []>} : vector<512x4xbf16>, vector<4x128xbf16>, vector<512x128xf32> -> vector<512x128xf32>
    %55 = arith.addf %51, %54 : vector<512x128xf32>
    %c0_85 = arith.constant 0 : index
    %c0_86 = arith.constant 0 : index
    %56 = vector.load %arg7[%c0_85, %c0_86] : memref<512x128xf32, #tpu.memory_space<vmem>>, vector<512x128xf32>
    tpu.vector_store %arg7[%c0_85, %c0_86], %55 {strides = array<i32>} : memref<512x128xf32, #tpu.memory_space<vmem>>, vector<512x128xf32>,
    %c0_87 = arith.constant 0 : index
    %c0_88 = arith.constant 0 : index
    %c2_89 = arith.constant 2 : index
    %c0_90 = arith.constant 0 : index
    %c0_91 = arith.constant 0 : index
    %57 = vector.load %arg3[%c0_87, %c0_88, %c2_89, %c0_90, %c0_91] : memref<1x2x18x18x4xbf16, #tpu.memory_space<vmem>>, vector<1x2x16x16x4xbf16>
    %58 = vector.shape_cast %57 : vector<1x2x16x16x4xbf16> to vector<2x16x16x4xbf16>
    %59 = vector.shape_cast %58 : vector<2x16x16x4xbf16> to vector<512x4xbf16>
    %c0_92 = arith.constant 0 : index
    %c0_93 = arith.constant 0 : index
    %60 = vector.load %arg7[%c0_92, %c0_93] : memref<512x128xf32, #tpu.memory_space<vmem>>, vector<512x128xf32>
    %c0_94 = arith.constant 0 : index
    %c2_95 = arith.constant 2 : index
    %c0_96 = arith.constant 0 : index
    %c0_97 = arith.constant 0 : index
    %c0_98 = arith.constant 0 : index
    %61 = vector.load %arg4[%c0_94, %c2_95, %c0_96, %c0_97, %c0_98] : memref<1x3x3x4x128xbf16, #tpu.memory_space<vmem>>, vector<1x1x1x4x128xbf16>
    %62 = vector.shape_cast %61 : vector<1x1x1x4x128xbf16> to vector<4x128xbf16>
    %cst_99 = arith.constant dense<0.000000e+00> : vector<512x128xf32>
    %63 = tpu.matmul %59, %62, %cst_99 {dimension_numbers = #tpu.dot_dimension_numbers<[1], [0], [0], [1], [0, 0, 1, 1], [], []>} : vector<512x4xbf16>, vector<4x128xbf16>, vector<512x128xf32> -> vector<512x128xf32>
    %64 = arith.addf %60, %63 : vector<512x128xf32>
    %c0_100 = arith.constant 0 : index
    %c0_101 = arith.constant 0 : index
    %65 = vector.load %arg7[%c0_100, %c0_101] : memref<512x128xf32, #tpu.memory_space<vmem>>, vector<512x128xf32>
    tpu.vector_store %arg7[%c0_100, %c0_101], %64 {strides = array<i32>} : memref<512x128xf32, #tpu.memory_space<vmem>>, vector<512x128xf32>,
    %c0_102 = arith.constant 0 : index
    %c0_103 = arith.constant 0 : index
    %c2_104 = arith.constant 2 : index
    %c1_105 = arith.constant 1 : index
    %c0_106 = arith.constant 0 : index
    %66 = vector.load %arg3[%c0_102, %c0_103, %c2_104, %c1_105, %c0_106] : memref<1x2x18x18x4xbf16, #tpu.memory_space<vmem>>, vector<1x2x16x16x4xbf16>
    %67 = vector.shape_cast %66 : vector<1x2x16x16x4xbf16> to vector<2x16x16x4xbf16>
    %68 = vector.shape_cast %67 : vector<2x16x16x4xbf16> to vector<512x4xbf16>
    %c0_107 = arith.constant 0 : index
    %c0_108 = arith.constant 0 : index
    %69 = vector.load %arg7[%c0_107, %c0_108] : memref<512x128xf32, #tpu.memory_space<vmem>>, vector<512x128xf32>
    %c0_109 = arith.constant 0 : index
    %c2_110 = arith.constant 2 : index
    %c1_111 = arith.constant 1 : index
    %c0_112 = arith.constant 0 : index
    %c0_113 = arith.constant 0 : index
    %70 = vector.load %arg4[%c0_109, %c2_110, %c1_111, %c0_112, %c0_113] : memref<1x3x3x4x128xbf16, #tpu.memory_space<vmem>>, vector<1x1x1x4x128xbf16>
    %71 = vector.shape_cast %70 : vector<1x1x1x4x128xbf16> to vector<4x128xbf16>
    %cst_114 = arith.constant dense<0.000000e+00> : vector<512x128xf32>
    %72 = tpu.matmul %68, %71, %cst_114 {dimension_numbers = #tpu.dot_dimension_numbers<[1], [0], [0], [1], [0, 0, 1, 1], [], []>} : vector<512x4xbf16>, vector<4x128xbf16>, vector<512x128xf32> -> vector<512x128xf32>
    %73 = arith.addf %69, %72 : vector<512x128xf32>
    %c0_115 = arith.constant 0 : index
    %c0_116 = arith.constant 0 : index
    %74 = vector.load %arg7[%c0_115, %c0_116] : memref<512x128xf32, #tpu.memory_space<vmem>>, vector<512x128xf32>
    tpu.vector_store %arg7[%c0_115, %c0_116], %73 {strides = array<i32>} : memref<512x128xf32, #tpu.memory_space<vmem>>, vector<512x128xf32>,
    %c0_117 = arith.constant 0 : index
    %c0_118 = arith.constant 0 : index
    %c2_119 = arith.constant 2 : index
    %c2_120 = arith.constant 2 : index
    %c0_121 = arith.constant 0 : index
    %75 = vector.load %arg3[%c0_117, %c0_118, %c2_119, %c2_120, %c0_121] : memref<1x2x18x18x4xbf16, #tpu.memory_space<vmem>>, vector<1x2x16x16x4xbf16>
    %76 = vector.shape_cast %75 : vector<1x2x16x16x4xbf16> to vector<2x16x16x4xbf16>
    %77 = vector.shape_cast %76 : vector<2x16x16x4xbf16> to vector<512x4xbf16>
    %c0_122 = arith.constant 0 : index
    %c0_123 = arith.constant 0 : index
    %78 = vector.load %arg7[%c0_122, %c0_123] : memref<512x128xf32, #tpu.memory_space<vmem>>, vector<512x128xf32>
    %c0_124 = arith.constant 0 : index
    %c2_125 = arith.constant 2 : index
    %c2_126 = arith.constant 2 : index
    %c0_127 = arith.constant 0 : index
    %c0_128 = arith.constant 0 : index
    %79 = vector.load %arg4[%c0_124, %c2_125, %c2_126, %c0_127, %c0_128] : memref<1x3x3x4x128xbf16, #tpu.memory_space<vmem>>, vector<1x1x1x4x128xbf16>
    %80 = vector.shape_cast %79 : vector<1x1x1x4x128xbf16> to vector<4x128xbf16>
    %cst_129 = arith.constant dense<0.000000e+00> : vector<512x128xf32>
    %81 = tpu.matmul %77, %80, %cst_129 {dimension_numbers = #tpu.dot_dimension_numbers<[1], [0], [0], [1], [0, 0, 1, 1], [], []>} : vector<512x4xbf16>, vector<4x128xbf16>, vector<512x128xf32> -> vector<512x128xf32>
    %82 = arith.addf %78, %81 : vector<512x128xf32>
    %c0_130 = arith.constant 0 : index
    %c0_131 = arith.constant 0 : index
    %83 = vector.load %arg7[%c0_130, %c0_131] : memref<512x128xf32, #tpu.memory_space<vmem>>, vector<512x128xf32>
    tpu.vector_store %arg7[%c0_130, %c0_131], %82 {strides = array<i32>} : memref<512x128xf32, #tpu.memory_space<vmem>>, vector<512x128xf32>,
    %c1_i32 = arith.constant 1 : i32
    %84 = arith.cmpi eq, %arg2, %c1_i32 : i32
    %85 = arith.extui %84 : i1 to i32
    %c0_i32_132 = arith.constant 0 : i32
    %86 = arith.cmpi ne, %85, %c0_i32_132 : i32
    scf.if %86 {
      %c0_133 = arith.constant 0 : index
      %c0_134 = arith.constant 0 : index
      %87 = vector.load %arg7[%c0_133, %c0_134] : memref<512x128xf32, #tpu.memory_space<vmem>>, vector<512x128xf32>
      %c0_135 = arith.constant 0 : index
      %c0_136 = arith.constant 0 : index
      %88 = vector.load %arg6[%c0_135, %c0_136] : memref<512x128xf32, #tpu.memory_space<vmem>>, vector<512x128xf32>
      tpu.vector_store %arg6[%c0_135, %c0_136], %87 {strides = array<i32>} : memref<512x128xf32, #tpu.memory_space<vmem>>, vector<512x128xf32>,
    } else {
    }
    return
  }
  func.func @transform_0(%arg0: i32, %arg1: i32, %arg2: i32) -> (i32, i32, i32, i32, i32) {
    %c0_i32 = arith.constant 0 : i32
    %c0_i32_0 = arith.constant 0 : i32
    %c0_i32_1 = arith.constant 0 : i32
    %c0_i32_2 = arith.constant 0 : i32
    return %arg2, %arg0, %c0_i32, %c0_i32_0, %c0_i32_1 : i32, i32, i32, i32, i32
  }
  func.func @transform_1(%arg0: i32, %arg1: i32, %arg2: i32) -> (i32, i32, i32, i32, i32) {
    %c0_i32 = arith.constant 0 : i32
    %c0_i32_0 = arith.constant 0 : i32
    %c0_i32_1 = arith.constant 0 : i32
    %c0_i32_2 = arith.constant 0 : i32
    return %arg2, %c0_i32, %c0_i32_0, %c0_i32_1, %arg1 : i32, i32, i32, i32, i32
  }
  func.func @transform_2(%arg0: i32, %arg1: i32, %arg2: i32) -> (i32, i32) {
    %c0_i32 = arith.constant 0 : i32
    %c0_i32_0 = arith.constant 0 : i32
    return %c0_i32, %arg1 : i32, i32
  }
  func.func @transform_3(%arg0: i32, %arg1: i32, %arg2: i32) -> (i32, i32) {
    %c0_i32 = arith.constant 0 : i32
    return %arg0, %arg1 : i32, i32
  }
}

</mosaic_0001>

<bundles_post_ra>
// kernel: distributed_channel_rs_conv_transpose2d.1
= control target key start
LH: loop header
LB: loop body
LE: loop exit
PB: predicated region body
PF: predicated region fallthrough
CT: control target
= control target key end

     0   :  { %s14028_s12 = smov 0   ;;  %s14030_s13 = smov 0   ;;  %s16968_s0 = inlined_call_operand.vmem [shape: bf16[2,2,18,18,4], index: 0, kind: input, shape index: {}]   ;;  %s16969_s1 = inlined_call_operand.vmem [shape: bf16[2,3,3,4,128], index: 1, kind: input, shape index: {}]   ;;  %s16970_s2 = inlined_call_operand.vmem [shape: f32[1,128], index: 2, kind: input, shape index: {}]   ;;  %s16971_s3 = inlined_call_operand.vmem [shape: f32[512,128], index: 3, kind: output, shape index: {}]  }
   0x1   :  { %s14032_s14 = smov 0  }
   0x2 LB: > { %s25_s15 = sadd.s32 1, %s14002_s13  ;;  %p10924_p0 = scmp.ge.s32.totalorder %s14006_s14, 1  ;;  %s14006_s14 = sphi %s14032_s14, %s13_s14   ;;  %s14002_s13 = sphi %s14030_s13, %s16977_s13   ;;  %s13998_s12 = sphi %s14028_s12, %s16976_s12  }
   0x3   : > { %p26_p1 = scmp.ge.s32.totalorder %s25_s15, 2  ;;  %p189_p2 = scmp.lt.s32.totalorder %s14006_s14, 3 }
   0x5   : > { %s16979_s15 = smov (%p26_p1, %s25_s15), 0  ;;  %p190_p3 = pnand %p10924_p0, %p189_p2 }
   0x6   : > { %p233_p4 = scmp.lt.s32.totalorder (!%p190_p3), %s13998_s12, 1  ;;  %p10927_p5 = scmp.ne.s32.totalorder (!%p190_p3), %s13998_s12, 0 }
   0x7   : > { %193 = sbr.rel (%p190_p3) target bundleno = 873 (0x369), region = 32 }
   0xe   : > { %s234_s16 = scalar_select %p233_p4, %s13998_s12, 1 }
   0xf   : > { %267 = sbr.rel (%p10927_p5) target bundleno = 48 (0x30), region = 36  ;;  %v14064_v0 = vld [vmem:[%s16970_s2] ss:$0 sm:$0xff] (!%p10927_p5) }
  0x10   : > { %s13861_s17 = smul.u32 432, %s234_s16  ;;  %275 = vst [vmem:[#allocation2] sm:$0xff] (!%p10927_p5), %v14064_v0  ;;  %276 = vst [vmem:[#allocation2 + $0x8] sm:$0xff] (!%p10927_p5), %v14064_v0 }
  0x11   : > { %s13862_s18 = smul.u32 18, %s234_s16  ;;  %277 = vst [vmem:[#allocation2 + $0x10] sm:$0xff] (!%p10927_p5), %v14064_v0  ;;  %278 = vst [vmem:[#allocation2 + $0x18] sm:$0xff] (!%p10927_p5), %v14064_v0 }
  0x12   : > { %s14053_s21 = scalar_lea.vmem %s16968_s0, %s13861_s17  ;;  %279 = vst [vmem:[#allocation2 + $0x20] sm:$0xff] (!%p10927_p5), %v14064_v0  ;;  %280 = vst [vmem:[#allocation2 + $0x28] sm:$0xff] (!%p10927_p5), %v14064_v0 }
  0x13   : > { %s14058_s24 = scalar_lea.vmem %s16969_s1, %s13862_s18  ;;  %281 = vst [vmem:[#allocation2 + $0x30] sm:$0xff] (!%p10927_p5), %v14064_v0  ;;  %282 = vst [vmem:[#allocation2 + $0x38] sm:$0xff] (!%p10927_p5), %v14064_v0 }
  0x14   : > { %283 = vst [vmem:[#allocation2 + $0x40] sm:$0xff] (!%p10927_p5), %v14064_v0  ;;  %284 = vst [vmem:[#allocation2 + $0x48] sm:$0xff] (!%p10927_p5), %v14064_v0 }
  0x15   : > { %285 = vst [vmem:[#allocation2 + $0x50] sm:$0xff] (!%p10927_p5), %v14064_v0  ;;  %286 = vst [vmem:[#allocation2 + $0x58] sm:$0xff] (!%p10927_p5), %v14064_v0 }
  0x16   : > { %287 = vst [vmem:[#allocation2 + $0x60] sm:$0xff] %v14064_v0  ;;  %288 = vst [vmem:[#allocation2 + $0x68] sm:$0xff] %v14064_v0 }
  0x17   : > { %289 = vst [vmem:[#allocation2 + $0x70] sm:$0xff] %v14064_v0  ;;  %290 = vst [vmem:[#allocation2 + $0x78] sm:$0xff] %v14064_v0 }
  0x18   : > { %291 = vst [vmem:[#allocation2 + $0x80] sm:$0xff] %v14064_v0  ;;  %292 = vst [vmem:[#allocation2 + $0x88] sm:$0xff] %v14064_v0 }
  0x19   : > { %293 = vst [vmem:[#allocation2 + $0x90] sm:$0xff] %v14064_v0  ;;  %294 = vst [vmem:[#allocation2 + $0x98] sm:$0xff] %v14064_v0 }
  0x1a   : > { %295 = vst [vmem:[#allocation2 + $0xa0] sm:$0xff] %v14064_v0  ;;  %296 = vst [vmem:[#allocation2 + $0xa8] sm:$0xff] %v14064_v0 }
  0x1b   : > { %297 = vst [vmem:[#allocation2 + $0xb0] sm:$0xff] %v14064_v0  ;;  %298 = vst [vmem:[#allocation2 + $0xb8] sm:$0xff] %v14064_v0 }
  0x1c   : > { %299 = vst [vmem:[#allocation2 + $0xc0] sm:$0xff] %v14064_v0  ;;  %300 = vst [vmem:[#allocation2 + $0xc8] sm:$0xff] %v14064_v0 }
  0x1d   : > { %301 = vst [vmem:[#allocation2 + $0xd0] sm:$0xff] %v14064_v0  ;;  %302 = vst [vmem:[#allocation2 + $0xd8] sm:$0xff] %v14064_v0 }
  0x1e   : > { %303 = vst [vmem:[#allocation2 + $0xe0] sm:$0xff] %v14064_v0  ;;  %304 = vst [vmem:[#allocation2 + $0xe8] sm:$0xff] %v14064_v0 }
  0x1f   : > { %305 = vst [vmem:[#allocation2 + $0xf0] sm:$0xff] %v14064_v0  ;;  %306 = vst [vmem:[#allocation2 + $0xf8] sm:$0xff] %v14064_v0 }
  0x20   : > { %307 = vst [vmem:[#allocation2 + $0x100] sm:$0xff] %v14064_v0  ;;  %308 = vst [vmem:[#allocation2 + $0x108] sm:$0xff] %v14064_v0 }
  0x21   : > { %309 = vst [vmem:[#allocation2 + $0x110] sm:$0xff] %v14064_v0  ;;  %310 = vst [vmem:[#allocation2 + $0x118] sm:$0xff] %v14064_v0 }
  0x22   : > { %311 = vst [vmem:[#allocation2 + $0x120] sm:$0xff] %v14064_v0  ;;  %312 = vst [vmem:[#allocation2 + $0x128] sm:$0xff] %v14064_v0 }
  0x23   : > { %313 = vst [vmem:[#allocation2 + $0x130] sm:$0xff] %v14064_v0  ;;  %314 = vst [vmem:[#allocation2 + $0x138] sm:$0xff] %v14064_v0 }
  0x24   : > { %315 = vst [vmem:[#allocation2 + $0x140] sm:$0xff] %v14064_v0  ;;  %316 = vst [vmem:[#allocation2 + $0x148] sm:$0xff] %v14064_v0 }
  0x25   : > { %317 = vst [vmem:[#allocation2 + $0x150] sm:$0xff] %v14064_v0  ;;  %318 = vst [vmem:[#allocation2 + $0x158] sm:$0xff] %v14064_v0 }
  0x26   : > { %319 = vst [vmem:[#allocation2 + $0x160] sm:$0xff] %v14064_v0  ;;  %320 = vst [vmem:[#allocation2 + $0x168] sm:$0xff] %v14064_v0 }
  0x27   : > { %321 = vst [vmem:[#allocation2 + $0x170] sm:$0xff] %v14064_v0  ;;  %322 = vst [vmem:[#allocation2 + $0x178] sm:$0xff] %v14064_v0 }
  0x28   : > { %323 = vst [vmem:[#allocation2 + $0x180] sm:$0xff] %v14064_v0  ;;  %324 = vst [vmem:[#allocation2 + $0x188] sm:$0xff] %v14064_v0 }
  0x29   : > { %325 = vst [vmem:[#allocation2 + $0x190] sm:$0xff] %v14064_v0  ;;  %326 = vst [vmem:[#allocation2 + $0x198] sm:$0xff] %v14064_v0 }
  0x2a   : > { %327 = vst [vmem:[#allocation2 + $0x1a0] sm:$0xff] %v14064_v0  ;;  %328 = vst [vmem:[#allocation2 + $0x1a8] sm:$0xff] %v14064_v0 }
  0x2b   : > { %329 = vst [vmem:[#allocation2 + $0x1b0] sm:$0xff] %v14064_v0  ;;  %330 = vst [vmem:[#allocation2 + $0x1b8] sm:$0xff] %v14064_v0 }
  0x2c   : > { %331 = vst [vmem:[#allocation2 + $0x1c0] sm:$0xff] %v14064_v0  ;;  %332 = vst [vmem:[#allocation2 + $0x1c8] sm:$0xff] %v14064_v0 }
  0x2d   : > { %333 = vst [vmem:[#allocation2 + $0x1d0] sm:$0xff] %v14064_v0  ;;  %334 = vst [vmem:[#allocation2 + $0x1d8] sm:$0xff] %v14064_v0 }
  0x2e   : > { %335 = vst [vmem:[#allocation2 + $0x1e0] sm:$0xff] %v14064_v0  ;;  %336 = vst [vmem:[#allocation2 + $0x1e8] sm:$0xff] %v14064_v0 }
  0x2f   : > { %337 = vst [vmem:[#allocation2 + $0x1f0] sm:$0xff] %v14064_v0  ;;  %338 = vst [vmem:[#allocation2 + $0x1f8] sm:$0xff] %v14064_v0 }
  0x30 PF: > { %v467_v1 = vld [vmem:[%s14058_s24] sm:$0x3]  ;;  %vm725_vm0 = vcmask 1041408   ;;  %vm628_vm1 = vcmask 31744   ;;  %v13888_v4 = vld [vmem:[%s14053_s21 + $0xc] sm:$0xff]   ;;  %v13889_v8 = vld [vmem:[%s14053_s21 + $0x18] sm:$0xff]  }
  0x31   : > { %v13887_v2 = vld [vmem:[%s14053_s21] sm:$0xff]   ;;  %13851 = vmatprep.subr.msk.bf16.mxu1 %vm725_vm0, %v467_v1  ;;  %v727_v3 = vsel %vm725_vm0, %v467_v1, 0  ;;  %v11380_v7 = vld [vmem:[%s14058_s24 + $0x8] sm:$0x3]  ;;  %vm1242_vm2 = vsmask.f32 3328 }
  0x32   : > { %12424 = vmatpush3.bf16.msra.mxu1 %v727_v3  ;;  %12425 = vmatprep.mubr.msk.bf16.mxu1 %vm628_vm1, %v13887_v2  ;;  %v10993_v5 = vld [vmem:[%s14058_s24 + $0x2] sm:$0x3]  ;;  %v14143_v9 = vsel %vm725_vm0, %v11380_v7, 0  ;;  %vm1243_vm3 = vsmask.f32 7440  ;;  %v13890_v18 = vld [vmem:[%s14053_s21 + $0x24] sm:$0xff]  }
  0x33   : > { %13852 = vmatprep.subr.msk.bf16.mxu1 %vm725_vm0, %v10993_v5  ;;  %v2272_v6 = vsel %vm725_vm0, %v10993_v5, 0  ;;  %13855 = vmatprep.subr.msk.bf16.mxu0 %vm725_vm0, %v11380_v7  ;;  %v11284_v10 = vld [vmem:[%s14053_s21 + $0xc] sm:$0xf]  ;;  %v11285_v11 = vld [vmem:[%s14053_s21 + $0x10] sm:$0xf]  ;;  %vm14159_vm4 = vmor %vm1242_vm2, %vm1243_vm3  ;;  %vm2883_vm5 = vcmask 1042432  }
  0x34   : > { %12688 = vmatpush3.bf16.msra.mxu0 %v14143_v9  ;;  %v11286_v12 = vld [vmem:[%s14053_s21 + $0x14] sm:$0x1]  ;;  %v4692_v13 = vshrl.u32 %v11284_v10, 16  ;;  %v4695_v14 = vshll.u32 %v11284_v10, 16  ;;  %v4701_v15 = vshll.u32 %v11285_v11, 16  ;;  %v4705_v16 = vshrl.u32 %v11285_v11, 16 }
  0x35   : > { %12426 = vmatmul.mubr.msk.bf16.vlgmr.msra.gmra.mrb[0].mxu1 %vm628_vm1, %v13888_v4  ;;  %v4711_v17 = vshll.u32 %v11286_v12, 16  ;;  %v11287_v23 = vld [vmem:[%s14053_s21 + $0x18] sm:$0xf]  ;;  %v13891_v24 = vld [vmem:[%s14053_s21 + $0x30] sm:$0xff]   ;;  %v11288_v26 = vld [vmem:[%s14053_s21 + $0x1c] sm:$0xf] }
  0x36   : > { %12490 = vmatpush3.bf16.msra.mxu1 %v2272_v6  ;;  %12429 = vmatprep.mubr.msk.bf16.mxu1 %vm628_vm1, %v13889_v8  ;;  %v4694_v19 = vrot.slane %v4692_v13, 4  ;;  %v4697_v20 = vrot.slane %v4695_v14, 5  ;;  %v4703_v21 = vrot.slane %v4701_v15, 5  ;;  %v4707_v22 = vrot.slane %v4705_v16, 4  ;;  %v11289_v27 = vld [vmem:[%s14053_s21 + $0x20] sm:$0x1] }
  0x37   : > { %v4713_v25 = vrot.slane %v4711_v17, 5  ;;  %v4716_v28 = vshrl.u32 %v11287_v23, 16  ;;  %v4719_v31 = vshll.u32 %v11287_v23, 16  ;;  %v4725_v32 = vshll.u32 %v11288_v26, 16  ;;  %v11573_v33 = vld [vmem:[%s14058_s24 + $0xa] sm:$0x3] }
  0x38   : > { %v4698_v29 = vor.u32 %v4697_v20, %v4694_v19  ;;  %v4708_v30 = vor.u32 %v4707_v22, %v4703_v21  ;;  %v4729_v36 = vshrl.u32 %v11288_v26, 16  ;;  %v4735_v37 = vshll.u32 %v11289_v27, 16  ;;  %13857 = vmatprep.subr.msk.bf16.mxu0 %vm725_vm0, %v11573_v33  ;;  %v11290_v43 = vld [vmem:[%s14053_s21 + $0x24] sm:$0xf]  ;;  %v11291_v46 = vld [vmem:[%s14053_s21 + $0x28] sm:$0xf] }
  0x39   : > { %v4718_v35 = vrot.slane %v4716_v28, 4  ;;  %v6812_v38 = vsel %vm725_vm0, %v11573_v33, 0  ;;  %v4721_v41 = vrot.slane %v4719_v31, 5  ;;  %v4727_v42 = vrot.slane %v4725_v32, 5  ;;  %v11292_v47 = vld [vmem:[%s14053_s21 + $0x2c] sm:$0x1] }
  0x3a   : > { %v4699_v39 = vrot.slane %v4698_v29, 4  ;;  %v4709_v40 = vrot.slane %v4708_v30, 4  ;;  %v4731_v44 = vrot.slane %v4729_v36, 4  ;;  %v4737_v45 = vrot.slane %v4735_v37, 5  ;;  %v13892_v56 = vld [vmem:[%s14053_s21 + $0x3c] sm:$0xff]   ;;  %v13893_v8 = vld [vmem:[%s14053_s21 + $0x48] sm:$0xff]  }
  0x3b   : > { %v4722_v50 = vor.u32 %v4721_v41, %v4718_v35  ;;  %v4740_v51 = vshrl.u32 %v11290_v43, 16  ;;  %v4743_v54 = vshll.u32 %v11290_v43, 16  ;;  %v4749_v55 = vshll.u32 %v11291_v46, 16  ;;  %v11293_v57 = vld [vmem:[%s14053_s21 + $0x30] sm:$0xf]  ;;  %v13894_v33 = vld [vmem:[%s14053_s21 + $0x54] sm:$0xff]  }
  0x3c   : > { %v4704_v48 = vsel %vm14159_vm4, %v4699_v39, %v4703_v21  ;;  %v4714_v49 = vsel %vm14159_vm4, %v4709_v40, %v4713_v25  ;;  %v4732_v53 = vor.u32 %v4731_v44, %v4727_v42  ;;  %v11294_v58 = vld [vmem:[%s14053_s21 + $0x34] sm:$0xf]  ;;  %v4753_v61 = vshrl.u32 %v11291_v46, 16  ;;  %v11295_v63 = vld [vmem:[%s14053_s21 + $0x38] sm:$0x1]  ;;  %p12121_p6 = scmp.ne.s32.totalorder %s13998_s12, 1 }
  0x3d   : > { %12430 = vmatmul.mubr.msk.bf16.gmra.mrb[4].mxu1 %vm628_vm1, %v13890_v18  ;;  %v11381_v52 = vcombine.low %v4704_v48, %v4714_v49  ;;  %v4723_v59 = vrot.slane %v4722_v50, 4  ;;  %v4742_v60 = vrot.slane %v4740_v51, 4  ;;  %v4759_v62 = vshll.u32 %v11292_v47, 16  ;;  %v11296_v14 = vld [vmem:[%s14053_s21 + $0x3c] sm:$0xf] }
  0x3e   : > { %12433 = vmatprep.mubr.msk.bf16.mxu1 %vm628_vm1, %v13891_v24  ;;  %v4733_v0 = vrot.slane %v4732_v53, 4  ;;  %v4745_v1 = vrot.slane %v4743_v54, 5  ;;  %v4751_v2 = vrot.slane %v4749_v55, 5  ;;  %v4764_v3 = vshrl.u32 %v11293_v57, 16  ;;  %v11297_v19 = vld [vmem:[%s14053_s21 + $0x40] sm:$0xf] }
  0x3f   : > { %12689 = vmatprep.mubr.msk.bf16.mxu0 %vm628_vm1, %v11381_v52  ;;  %v4728_v4 = vsel %vm14159_vm4, %v4723_v59, %v4727_v42  ;;  %v4755_v5 = vrot.slane %v4753_v61, 4  ;;  %v4761_v6 = vrot.slane %v4759_v62, 5  ;;  %v4767_v7 = vshll.u32 %v11293_v57, 16  ;;  %v11298_v27 = vld [vmem:[%s14053_s21 + $0x44] sm:$0x1] }
  0x40   : > { %v4738_v10 = vsel %vm14159_vm4, %v4733_v0, %v4737_v45  ;;  %v4746_v11 = vor.u32 %v4745_v1, %v4742_v60  ;;  %v4766_v12 = vrot.slane %v4764_v3, 4  ;;  %v4773_v13 = vshll.u32 %v11294_v58, 16  ;;  %v11299_v35 = vld [vmem:[%s14053_s21 + $0x48] sm:$0xf]  ;;  %v11300_v41 = vld [vmem:[%s14053_s21 + $0x4c] sm:$0xf] }
  0x41   : > { %v11382_v15 = vcombine.low %v4728_v4, %v4738_v10  ;;  %v4756_v16 = vor.u32 %v4755_v5, %v4751_v2  ;;  %v4769_v17 = vrot.slane %v4767_v7, 5  ;;  %v4777_v18 = vshrl.u32 %v11294_v58, 16  ;;  %v13895_v45 = vld [vmem:[%s14053_s21 + $0x60] sm:$0xff]   ;;  %v11301_v49 = vld [vmem:[%s14053_s21 + $0x50] sm:$0x1] }
  0x42   : > { %v4747_v20 = vrot.slane %v4746_v11, 4  ;;  %v4775_v21 = vrot.slane %v4773_v13, 5  ;;  %v4783_v22 = vshll.u32 %v11295_v63, 16  ;;  %v4788_v23 = vshrl.u32 %v11296_v14, 16  ;;  %v11302_v51 = vld [vmem:[%s14053_s21 + $0x54] sm:$0xf] }
  0x43   : > { %12690 = vmatmul.mubr.msk.bf16.vlgmr.msra.gmra.mrb[0].mxu0 %vm628_vm1, %v11382_v15  ;;  %v4757_v24 = vrot.slane %v4756_v16, 4  ;;  %v4770_v25 = vor.u32 %v4769_v17, %v4766_v12  ;;  %v4779_v26 = vrot.slane %v4777_v18, 4  ;;  %v4791_v28 = vshll.u32 %v11296_v14, 16  ;;  %v11304_v1 = vld [vmem:[%s14053_s21 + $0x5c] sm:$0x1] }
  0x44   : > { %12754 = vmatpush3.bf16.msra.mxu0 %v6812_v38  ;;  %v4752_v29 = vsel %vm14159_vm4, %v4747_v20, %v4751_v2  ;;  %v4785_v30 = vrot.slane %v4783_v22, 5  ;;  %v4790_v31 = vrot.slane %v4788_v23, 4  ;;  %v4797_v32 = vshll.u32 %v11297_v19, 16  ;;  %v11306_v12 = vld [vmem:[%s14053_s21 + $0x64] sm:$0xf] }
  0x45   : > { %12434 = vmatmul.mubr.msk.bf16.gmra.mrb[8].mxu1 %vm628_vm1, %v13892_v56  ;;  %v4762_v36 = vsel %vm14159_vm4, %v4757_v24, %v4761_v6  ;;  %v4771_v37 = vrot.slane %v4770_v25, 4  ;;  %v4780_v39 = vor.u32 %v4779_v26, %v4775_v21  ;;  %v4793_v40 = vrot.slane %v4791_v28, 5  ;;  %v11303_v56 = vld [vmem:[%s14053_s21 + $0x58] sm:$0xf]  ;;  %v11305_v6 = vld [vmem:[%s14053_s21 + $0x60] sm:$0xf] }
  0x46   : > { %12437 = vmatprep.mubr.msk.bf16.mxu1 %vm628_vm1, %v13893_v8  ;;  %v11383_v42 = vcombine.low %v4752_v29, %v4762_v36  ;;  %v4799_v38 = vrot.slane %v4797_v32, 5  ;;  %v4801_v43 = vshrl.u32 %v11297_v19, 16  ;;  %v4807_v44 = vshll.u32 %v11298_v27, 16  ;;  %v13897_v26 = vld [vmem:[%s14053_s21 + $0x78] sm:$0xff]   ;;  %v11307_v29 = vld [vmem:[%s14053_s21 + $0x68] sm:$0x1] }
  0x47   : > { %v4776_v46 = vsel %vm14159_vm4, %v4771_v37, %v4775_v21  ;;  %v4781_v47 = vrot.slane %v4780_v39, 4  ;;  %v4794_v48 = vor.u32 %v4793_v40, %v4790_v31  ;;  %v4812_v50 = vshrl.u32 %v11299_v35, 16  ;;  %v13896_v21 = vld [vmem:[%s14053_s21 + $0x6c] sm:$0xff]  }
  0x48   : > { %12693 = vmatprep.mubr.msk.bf16.mxu0 %vm628_vm1, %v11383_v42  ;;  %v4803_v52 = vrot.slane %v4801_v43, 4  ;;  %v4809_v53 = vrot.slane %v4807_v44, 5  ;;  %v4815_v54 = vshll.u32 %v11299_v35, 16  ;;  %v4821_v55 = vshll.u32 %v11300_v41, 16  ;;  %v11308_v32 = vld [vmem:[%s14053_s21 + $0x6c] sm:$0xf] }
  0x49   : > { %v4786_v57 = vsel %vm14159_vm4, %v4781_v47, %v4785_v30  ;;  %v4795_v58 = vrot.slane %v4794_v48, 4  ;;  %v4814_v59 = vrot.slane %v4812_v50, 4  ;;  %v4825_v60 = vshrl.u32 %v11300_v41, 16  ;;  %v11310_v47 = vld [vmem:[%s14053_s21 + $0x74] sm:$0x1] }
  0x4a   : > { %v11384_v61 = vcombine.low %v4776_v46, %v4786_v57  ;;  %v4804_v62 = vor.u32 %v4803_v52, %v4799_v38  ;;  %v4817_v63 = vrot.slane %v4815_v54, 5  ;;  %v4823_v0 = vrot.slane %v4821_v55, 5  ;;  %v11311_v52 = vld [vmem:[%s14053_s21 + $0x78] sm:$0xf] }
  0x4b   : > { %v4800_v2 = vsel %vm14159_vm4, %v4795_v58, %v4799_v38  ;;  %v4827_v3 = vrot.slane %v4825_v60, 4  ;;  %v4831_v4 = vshll.u32 %v11301_v49, 16  ;;  %v4836_v5 = vshrl.u32 %v11302_v51, 16  ;;  %v11309_v38 = vld [vmem:[%s14053_s21 + $0x70] sm:$0xf] }
  0x4c   : > { %12694 = vmatmul.mubr.msk.bf16.gmra.mrb[4].mxu0 %vm628_vm1, %v11384_v61  ;;  %v4805_v7 = vrot.slane %v4804_v62, 4  ;;  %v4818_v8 = vor.u32 %v4817_v63, %v4814_v59  ;;  %v4839_v10 = vshll.u32 %v11302_v51, 16  ;;  %v4845_v11 = vshll.u32 %v11303_v56, 16  ;;  %v13898_v61 = vld [vmem:[%s14053_s21 + $0x84] sm:$0xff]   ;;  %v11312_v62 = vld [vmem:[%s14053_s21 + $0x7c] sm:$0xf] }
  0x4d   : > { %12438 = vmatmul.mubr.msk.bf16.gmra.mrb[12].mxu1 %vm628_vm1, %v13894_v33  ;;  %v4828_v13 = vor.u32 %v4827_v3, %v4823_v0  ;;  %v4833_v14 = vrot.slane %v4831_v4, 5  ;;  %v4838_v15 = vrot.slane %v4836_v5, 4  ;;  %v4849_v16 = vshrl.u32 %v11303_v56, 16  ;;  %v13899_v3 = vld [vmem:[%s14053_s21 + $0x90] sm:$0xff]  }
  0x4e   : > { %12441 = vmatprep.mubr.msk.bf16.mxu1 %vm628_vm1, %v13895_v45  ;;  %v4810_v17 = vsel %vm14159_vm4, %v4805_v7, %v4809_v53  ;;  %v4819_v18 = vrot.slane %v4818_v8, 4  ;;  %v4841_v19 = vrot.slane %v4839_v10, 5  ;;  %v4847_v20 = vrot.slane %v4845_v11, 5 }
  0x4f   : > { %v11385_v22 = vcombine.low %v4800_v2, %v4810_v17  ;;  %v4829_v23 = vrot.slane %v4828_v13, 4  ;;  %v4851_v24 = vrot.slane %v4849_v16, 4  ;;  %v4855_v25 = vshll.u32 %v11304_v1, 16 }
  0x50   : > { %v4824_v27 = vsel %vm14159_vm4, %v4819_v18, %v4823_v0  ;;  %v4842_v28 = vor.u32 %v4841_v19, %v4838_v15  ;;  %v4860_v30 = vshrl.u32 %v11305_v6, 16  ;;  %v4863_v31 = vshll.u32 %v11305_v6, 16  ;;  %v11313_v6 = vld [vmem:[%s14053_s21 + $0x80] sm:$0x1]  ;;  %v11314_v18 = vld [vmem:[%s14053_s21 + $0x84] sm:$0xf] }
  0x51   : > { %12697 = vmatprep.mubr.msk.bf16.mxu0 %vm628_vm1, %v11385_v22  ;;  %v4834_v33 = vsel %vm14159_vm4, %v4829_v23, %v4833_v14  ;;  %v4852_v35 = vor.u32 %v4851_v24, %v4847_v20  ;;  %v4857_v36 = vrot.slane %v4855_v25, 5  ;;  %v4869_v37 = vshll.u32 %v11306_v12, 16  ;;  %v11315_v23 = vld [vmem:[%s14053_s21 + $0x88] sm:$0xf]  ;;  %v11316_v24 = vld [vmem:[%s14053_s21 + $0x8c] sm:$0x1] }
  0x52   : > { %v11386_v39 = vcombine.low %v4824_v27, %v4834_v33  ;;  %v4843_v40 = vrot.slane %v4842_v28, 4  ;;  %v4862_v41 = vrot.slane %v4860_v30, 4  ;;  %v4865_v42 = vrot.slane %v4863_v31, 5 }
  0x53   : > { %v4853_v43 = vrot.slane %v4852_v35, 4  ;;  %v4871_v44 = vrot.slane %v4869_v37, 5  ;;  %v4873_v45 = vshrl.u32 %v11306_v12, 16  ;;  %v4879_v46 = vshll.u32 %v11307_v29, 16 }
  0x54   : > { %12698 = vmatmul.mubr.msk.bf16.gmra.mrb[8].mxu0 %vm628_vm1, %v11386_v39  ;;  %v4848_v48 = vsel %vm14159_vm4, %v4843_v40, %v4847_v20  ;;  %v4866_v49 = vor.u32 %v4865_v42, %v4862_v41  ;;  %v4884_v50 = vshrl.u32 %v11308_v32, 16  ;;  %v4887_v51 = vshll.u32 %v11308_v32, 16  ;;  %v13900_v39 = vld [vmem:[%s14053_s21 + $0x9c] sm:$0xff]   ;;  %v11317_v40 = vld [vmem:[%s14053_s21 + $0x90] sm:$0xf] }
  0x55   : > { %12442 = vmatmul.mubr.msk.bf16.gmra.mrb[16].mxu1 %vm628_vm1, %v13896_v21  ;;  %v4858_v53 = vsel %vm14159_vm4, %v4853_v43, %v4857_v36  ;;  %v4875_v54 = vrot.slane %v4873_v45, 4  ;;  %v4881_v55 = vrot.slane %v4879_v46, 5  ;;  %v4893_v56 = vshll.u32 %v11309_v38, 16  ;;  %v13901_v45 = vld [vmem:[%s14053_s21 + $0xa8] sm:$0xff]  }
  0x56   : > { %12445 = vmatprep.mubr.msk.bf16.mxu1 %vm628_vm1, %v13897_v26  ;;  %v11387_v57 = vcombine.low %v4848_v48, %v4858_v53  ;;  %v4867_v58 = vrot.slane %v4866_v49, 4  ;;  %v4886_v59 = vrot.slane %v4884_v50, 4  ;;  %v4889_v60 = vrot.slane %v4887_v51, 5  ;;  %v11319_v53 = vld [vmem:[%s14053_s21 + $0x98] sm:$0x1] }
  0x57   : > { %v4876_v63 = vor.u32 %v4875_v54, %v4871_v44  ;;  %v4895_v0 = vrot.slane %v4893_v56, 5  ;;  %v4897_v1 = vshrl.u32 %v11309_v38, 16  ;;  %v4903_v2 = vshll.u32 %v11310_v47, 16 }
  0x58   : > { %12701 = vmatprep.mubr.msk.bf16.mxu0 %vm628_vm1, %v11387_v57  ;;  %v4872_v4 = vsel %vm14159_vm4, %v4867_v58, %v4871_v44  ;;  %v4890_v5 = vor.u32 %v4889_v60, %v4886_v59  ;;  %v4908_v7 = vshrl.u32 %v11311_v52, 16  ;;  %v4911_v8 = vshll.u32 %v11311_v52, 16  ;;  %v11318_v44 = vld [vmem:[%s14053_s21 + $0x94] sm:$0xf]  ;;  %v11320_v59 = vld [vmem:[%s14053_s21 + $0x9c] sm:$0xf] }
  0x59   : > { %v4877_v10 = vrot.slane %v4876_v63, 4  ;;  %v4899_v11 = vrot.slane %v4897_v1, 4  ;;  %v4905_v12 = vrot.slane %v4903_v2, 5  ;;  %v4917_v13 = vshll.u32 %v11312_v62, 16 }
  0x5a   : > { %v4891_v14 = vrot.slane %v4890_v5, 4  ;;  %v4910_v15 = vrot.slane %v4908_v7, 4  ;;  %v4913_v16 = vrot.slane %v4911_v8, 5  ;;  %v4921_v17 = vshrl.u32 %v11312_v62, 16  ;;  %v11322_v7 = vld [vmem:[%s14053_s21 + $0xa4] sm:$0x1] }
  0x5b   : > { %v4882_v19 = vsel %vm14159_vm4, %v4877_v10, %v4881_v55  ;;  %v4900_v20 = vor.u32 %v4899_v11, %v4895_v0  ;;  %v4919_v21 = vrot.slane %v4917_v13, 5  ;;  %v4927_v22 = vshll.u32 %v11313_v6, 16  ;;  %v13902_v11 = vld [vmem:[%s14053_s21 + $0xb4] sm:$0xff]  }
  0x5c   : > { %v11388_v25 = vcombine.low %v4872_v4, %v4882_v19  ;;  %v4896_v26 = vsel %vm14159_vm4, %v4891_v14, %v4895_v0  ;;  %v4914_v27 = vor.u32 %v4913_v16, %v4910_v15  ;;  %v4923_v28 = vrot.slane %v4921_v17, 4  ;;  %v11321_v0 = vld [vmem:[%s14053_s21 + $0xa0] sm:$0xf]  ;;  %v11323_v16 = vld [vmem:[%s14053_s21 + $0xa8] sm:$0xf] }
  0x5d   : > { %12446 = vmatmul.mubr.msk.bf16.gmra.mrb[20].mxu1 %vm628_vm1, %v13898_v61  ;;  %v4901_v29 = vrot.slane %v4900_v20, 4  ;;  %v4929_v30 = vrot.slane %v4927_v22, 5  ;;  %v4932_v31 = vshrl.u32 %v11314_v18, 16  ;;  %v4935_v32 = vshll.u32 %v11314_v18, 16  ;;  %v11324_v17 = vld [vmem:[%s14053_s21 + $0xac] sm:$0xf] }
  0x5e   : > { %12449 = vmatprep.mubr.msk.bf16.mxu1 %vm628_vm1, %v13899_v3  ;;  %12702 = vmatmul.mubr.msk.bf16.gmra.mrb[12].mxu0 %vm628_vm1, %v11388_v25  ;;  %v4915_v33 = vrot.slane %v4914_v27, 4  ;;  %v4924_v35 = vor.u32 %v4923_v28, %v4919_v21  ;;  %v4941_v36 = vshll.u32 %v11315_v23, 16  ;;  %v4945_v37 = vshrl.u32 %v11315_v23, 16  ;;  %v13903_v22 = vld [vmem:[%s14053_s21 + $0xd8] sm:$0xff]  }
  0x5f   : > { %v4906_v41 = vsel %vm14159_vm4, %v4901_v29, %v4905_v12  ;;  %v4934_v42 = vrot.slane %v4932_v31, 4  ;;  %v4937_v38 = vrot.slane %v4935_v32, 5  ;;  %v4951_v43 = vshll.u32 %v11316_v24, 16 }
  0x60   : > { %v11389_v46 = vcombine.low %v4896_v26, %v4906_v41  ;;  %v4920_v47 = vsel %vm14159_vm4, %v4915_v33, %v4919_v21  ;;  %v4925_v48 = vrot.slane %v4924_v35, 4  ;;  %v4943_v49 = vrot.slane %v4941_v36, 5 }
  0x61   : > { %v4938_v50 = vor.u32 %v4937_v38, %v4934_v42  ;;  %v4947_v51 = vrot.slane %v4945_v37, 4  ;;  %v4953_v52 = vrot.slane %v4951_v43, 5  ;;  %v4956_v54 = vshrl.u32 %v11317_v40, 16  ;;  %v11326_v37 = vld [vmem:[%s14053_s21 + $0xb4] sm:$0xf] }
  0x62   : > { %12705 = vmatprep.mubr.msk.bf16.mxu0 %vm628_vm1, %v11389_v46  ;;  %v4930_v55 = vsel %vm14159_vm4, %v4925_v48, %v4929_v30  ;;  %v4959_v56 = vshll.u32 %v11317_v40, 16  ;;  %v4965_v57 = vshll.u32 %v11318_v44, 16  ;;  %v4969_v58 = vshrl.u32 %v11318_v44, 16  ;;  %v11325_v30 = vld [vmem:[%s14053_s21 + $0xb0] sm:$0x1] }
  0x63   : > { %v11390_v60 = vcombine.low %v4920_v47, %v4930_v55  ;;  %v4939_v61 = vrot.slane %v4938_v50, 4  ;;  %v4948_v62 = vor.u32 %v4947_v51, %v4943_v49  ;;  %v4958_v63 = vrot.slane %v4956_v54, 4  ;;  %v11328_v50 = vld [vmem:[%s14053_s21 + $0xbc] sm:$0x1] }
  0x64   : > { %v4961_v1 = vrot.slane %v4959_v56, 5  ;;  %v4967_v2 = vrot.slane %v4965_v57, 5  ;;  %v4971_v3 = vrot.slane %v4969_v58, 4  ;;  %v4975_v4 = vshll.u32 %v11319_v53, 16  ;;  %v13904_v56 = vld [vmem:[%s14053_s21 + $0xe4] sm:$0xff]  }
  0x65   : > { %12450 = vmatmul.mubr.msk.bf16.gmra.mrb[24].mxu1 %vm628_vm1, %v13900_v39  ;;  %v4944_v5 = vsel %vm14159_vm4, %v4939_v61, %v4943_v49  ;;  %v4949_v6 = vrot.slane %v4948_v62, 4  ;;  %v4980_v8 = vshrl.u32 %v11320_v59, 16  ;;  %v4983_v10 = vshll.u32 %v11320_v59, 16  ;;  %v11327_v39 = vld [vmem:[%s14053_s21 + $0xb8] sm:$0xf]  ;;  %v13905_v62 = vld [vmem:[%s14053_s21 + $0xf0] sm:$0xff]  }
  0x66   : > { %12453 = vmatprep.mubr.msk.bf16.mxu1 %vm628_vm1, %v13901_v45  ;;  %12706 = vmatmul.mubr.msk.bf16.gmra.mrb[16].mxu0 %vm628_vm1, %v11390_v60  ;;  %v4962_v12 = vor.u32 %v4961_v1, %v4958_v63  ;;  %v4972_v13 = vor.u32 %v4971_v3, %v4967_v2  ;;  %v4977_v14 = vrot.slane %v4975_v4, 5  ;;  %v4989_v15 = vshll.u32 %v11321_v0, 16  ;;  %v11329_v57 = vld [vmem:[%s14053_s21 + $0xc0] sm:$0xf]  ;;  %v11330_v3 = vld [vmem:[%s14053_s21 + $0xc4] sm:$0xf] }
  0x67   : > { %v4954_v18 = vsel %vm14159_vm4, %v4949_v6, %v4953_v52  ;;  %v4982_v19 = vrot.slane %v4980_v8, 4  ;;  %v4985_v20 = vrot.slane %v4983_v10, 5  ;;  %v4993_v21 = vshrl.u32 %v11321_v0, 16 }
  0x68   : > { %v11391_v23 = vcombine.low %v4944_v5, %v4954_v18  ;;  %v4963_v24 = vrot.slane %v4962_v12, 4  ;;  %v4973_v25 = vrot.slane %v4972_v13, 4  ;;  %v4991_v26 = vrot.slane %v4989_v15, 5  ;;  %v11446_v15 = vld [vmem:[%s14053_s21 + $0x10] sm:$0xf] }
  0x69   : > { %v4986_v27 = vor.u32 %v4985_v20, %v4982_v19  ;;  %v4995_v28 = vrot.slane %v4993_v21, 4  ;;  %v4999_v29 = vshll.u32 %v11322_v7, 16  ;;  %v5004_v31 = vshrl.u32 %v11323_v16, 16  ;;  %v11331_v7 = vld [vmem:[%s14053_s21 + $0xc8] sm:$0x1] }
  0x6a   : > { %12709 = vmatprep.mubr.msk.bf16.mxu0 %vm628_vm1, %v11391_v23  ;;  %v4968_v32 = vsel %vm14159_vm4, %v4963_v24, %v4967_v2  ;;  %v4978_v33 = vsel %vm14159_vm4, %v4973_v25, %v4977_v14  ;;  %v5007_v35 = vshll.u32 %v11323_v16, 16  ;;  %v5013_v36 = vshll.u32 %v11324_v17, 16  ;;  %v11445_v14 = vld [vmem:[%s14053_s21 + $0xc] sm:$0xe]  ;;  %v11447_v21 = vld [vmem:[%s14053_s21 + $0x14] sm:$0x1] }
  0x6b   : > { %v11392_v40 = vcombine.low %v4968_v32, %v4978_v33  ;;  %v4987_v41 = vrot.slane %v4986_v27, 4  ;;  %v4996_v42 = vor.u32 %v4995_v28, %v4991_v26  ;;  %v5001_v38 = vrot.slane %v4999_v29, 5  ;;  %v14306_v16 = vld [vmem:[%s14058_s24 + $0xc] sm:$0x3] }
  0x6c   : > { %v5006_v43 = vrot.slane %v5004_v31, 4  ;;  %v5009_v44 = vrot.slane %v5007_v35, 5  ;;  %v5015_v45 = vrot.slane %v5013_v36, 5  ;;  %v5017_v46 = vshrl.u32 %v11324_v17, 16  ;;  %13858 = vmatprep.subr.msk.bf16.mxu0 %vm725_vm0, %v14306_v16  ;;  %v11448_v31 = vld [vmem:[%s14053_s21 + $0x18] sm:$0xe] }
  0x6d   : > { %12454 = vmatmul.mubr.msk.bf16.gmra.mrb[28].mxu1 %vm628_vm1, %v13902_v11  ;;  %v4992_v47 = vsel %vm14159_vm4, %v4987_v41, %v4991_v26  ;;  %v4997_v48 = vrot.slane %v4996_v42, 4  ;;  %v5023_v49 = vshll.u32 %v11325_v30, 16  ;;  %v5028_v51 = vshrl.u32 %v11326_v37, 16  ;;  %v13906_v30 = vld [vmem:[%s14053_s21 + $0xfc] sm:$0xff]  }
  0x6e   : > { %12457 = vmatprep.mubr.msk.bf16.mxu1 %vm628_vm1, %v13903_v22  ;;  %12710 = vmatmul.mubr.msk.bf16.gmra.mrb[20].mxu0 %vm628_vm1, %v11392_v40  ;;  %v5010_v52 = vor.u32 %v5009_v44, %v5006_v43  ;;  %v5019_v53 = vrot.slane %v5017_v46, 4  ;;  %v5031_v54 = vshll.u32 %v11326_v37, 16  ;;  %v5037_v55 = vshll.u32 %v11327_v39, 16  ;;  %v11449_v36 = vld [vmem:[%s14053_s21 + $0x1c] sm:$0xf]  ;;  %v13907_v43 = vld [vmem:[%s14053_s21 + $0x108] sm:$0xff]  }
  0x6f   : > { %v5002_v58 = vsel %vm14159_vm4, %v4997_v48, %v5001_v38  ;;  %v5025_v59 = vrot.slane %v5023_v49, 5  ;;  %v5030_v60 = vrot.slane %v5028_v51, 4  ;;  %v5041_v61 = vshrl.u32 %v11327_v39, 16  ;;  %v11450_v37 = vld [vmem:[%s14053_s21 + $0x20] sm:$0x1] }
  0x70   : > { %v11393_v63 = vcombine.low %v4992_v47, %v5002_v58  ;;  %v5011_v0 = vrot.slane %v5010_v52, 4  ;;  %v5020_v1 = vor.u32 %v5019_v53, %v5015_v45  ;;  %v5033_v2 = vrot.slane %v5031_v54, 5  ;;  %v11451_v48 = vld [vmem:[%s14053_s21 + $0x24] sm:$0xe]  ;;  %v11452_v52 = vld [vmem:[%s14053_s21 + $0x28] sm:$0xf] }
  0x71   : > { %v5039_v4 = vrot.slane %v5037_v55, 5  ;;  %v5043_v5 = vrot.slane %v5041_v61, 4  ;;  %v5047_v6 = vshll.u32 %v11328_v50, 16  ;;  %v5052_v8 = vshrl.u32 %v11329_v57, 16  ;;  %v11453_v53 = vld [vmem:[%s14053_s21 + $0x2c] sm:$0x1] }
  0x72   : > { %12713 = vmatprep.mubr.msk.bf16.mxu0 %vm628_vm1, %v11393_v63  ;;  %v5016_v10 = vsel %vm14159_vm4, %v5011_v0, %v5015_v45  ;;  %v5021_v11 = vrot.slane %v5020_v1, 4  ;;  %v5034_v12 = vor.u32 %v5033_v2, %v5030_v60  ;;  %v5055_v13 = vshll.u32 %v11329_v57, 16  ;;  %v11454_v57 = vld [vmem:[%s14053_s21 + $0x30] sm:$0xe]  ;;  %v11455_v58 = vld [vmem:[%s14053_s21 + $0x34] sm:$0xf] }
  0x73   : > { %v5044_v17 = vor.u32 %v5043_v5, %v5039_v4  ;;  %v5049_v18 = vrot.slane %v5047_v6, 5  ;;  %v5054_v19 = vrot.slane %v5052_v8, 4  ;;  %v5061_v20 = vshll.u32 %v11330_v3, 16  ;;  %v11458_v5 = vld [vmem:[%s14053_s21 + $0x40] sm:$0xf] }
  0x74   : > { %v5026_v22 = vsel %vm14159_vm4, %v5021_v11, %v5025_v59  ;;  %v5035_v23 = vrot.slane %v5034_v12, 4  ;;  %v5057_v24 = vrot.slane %v5055_v13, 5  ;;  %v5065_v25 = vshrl.u32 %v11330_v3, 16  ;;  %v13908_v3 = vld [vmem:[%s14053_s21 + $0x114] sm:$0xff]   ;;  %v11460_v13 = vld [vmem:[%s14053_s21 + $0x48] sm:$0xe] }
  0x75   : > { %12458 = vmatmul.mubr.msk.bf16.gmra.mrb[32].mxu1 %vm628_vm1, %v13904_v56  ;;  %v11394_v26 = vcombine.low %v5016_v10, %v5026_v22  ;;  %v5045_v27 = vrot.slane %v5044_v17, 4  ;;  %v5063_v28 = vrot.slane %v5061_v20, 5  ;;  %v5071_v29 = vshll.u32 %v11331_v7, 16  ;;  %v11459_v10 = vld [vmem:[%s14053_s21 + $0x44] sm:$0x1] }
  0x76   : > { %12461 = vmatprep.mubr.msk.bf16.mxu1 %vm628_vm1, %v13905_v62  ;;  %v5040_v32 = vsel %vm14159_vm4, %v5035_v23, %v5039_v4  ;;  %v5058_v33 = vor.u32 %v5057_v24, %v5054_v19  ;;  %v5067_v35 = vrot.slane %v5065_v25, 4  ;;  %vm2884_vm6 = vcmask 1046532   ;;  %v11456_v62 = vld [vmem:[%s14053_s21 + $0x38] sm:$0x1]  ;;  %v11457_v4 = vld [vmem:[%s14053_s21 + $0x3c] sm:$0xe] }
  0x77   : > { %12714 = vmatmul.mubr.msk.bf16.gmra.mrb[24].mxu0 %vm628_vm1, %v11394_v26  ;;  %v5050_v39 = vsel %vm14159_vm4, %v5045_v27, %v5049_v18  ;;  %v5073_v40 = vrot.slane %v5071_v29, 5  ;;  %vm14324_vm7 = vmor %vm2883_vm5, %vm2884_vm6  ;;  %v11541_v42 = vrot.slane %v11445_v14, 9  ;;  %v6331_v38 = vrot.slane %v11446_v15, 5  ;;  %v13909_v18 = vld [vmem:[%s14053_s21 + $0x120] sm:$0xff]   ;;  %v11461_v20 = vld [vmem:[%s14053_s21 + $0x4c] sm:$0xf] }
  0x78   : > { %v11395_v44 = vcombine.low %v5040_v32, %v5050_v39  ;;  %v5059_v45 = vrot.slane %v5058_v33, 4  ;;  %v5068_v46 = vor.u32 %v5067_v35, %v5063_v28  ;;  %v6334_v47 = vrot.slane %v11447_v21, 5  ;;  %v11462_v23 = vld [vmem:[%s14053_s21 + $0x50] sm:$0x1]  ;;  %v11464_v32 = vld [vmem:[%s14053_s21 + $0x58] sm:$0xf] }
  0x79   : > { %v6332_v49 = vsel %vm14324_vm7, %v11541_v42, %v6331_v38  ;;  %v6333_v50 = vrot.slane %v6331_v38, 4  ;;  %v6338_v51 = vrot.slane %v11449_v36, 5  ;;  %v11542_v56 = vrot.slane %v11448_v31, 9  ;;  %v11463_v31 = vld [vmem:[%s14053_s21 + $0x54] sm:$0xe] }
  0x7a   : > { %12717 = vmatprep.mubr.msk.bf16.mxu0 %vm628_vm1, %v11395_v44  ;;  %v5064_v54 = vsel %vm14159_vm4, %v5059_v45, %v5063_v28  ;;  %v5069_v55 = vrot.slane %v5068_v46, 4  ;;  %v6341_v61 = vrot.slane %v11450_v37, 5  ;;  %v11543_v1 = vrot.slane %v11451_v48, 9  ;;  %v11465_v36 = vld [vmem:[%s14053_s21 + $0x5c] sm:$0x1] }
  0x7b   : > { %v6335_v59 = vsel %vm14324_vm7, %v6333_v50, %v6334_v47  ;;  %v6340_v60 = vrot.slane %v6338_v51, 4  ;;  %v6345_v2 = vrot.slane %v11452_v52, 5  ;;  %v6348_v7 = vrot.slane %v11453_v53, 5  ;;  %v13911_v46 = vld [vmem:[%s14053_s21 + $0x138] sm:$0xff]   ;;  %v11467_v48 = vld [vmem:[%s14053_s21 + $0x64] sm:$0xf] }
  0x7c   : > { %v5074_v63 = vsel %vm14159_vm4, %v5069_v55, %v5073_v40  ;;  %v11574_v0 = vcombine.low %v6332_v49, %v6335_v59  ;;  %v6352_v8 = vrot.slane %v11455_v58, 5  ;;  %v7619_v11 = vsel %vm725_vm0, %v14306_v16, 0  ;;  %v13910_v40 = vld [vmem:[%s14053_s21 + $0x12c] sm:$0xff]   ;;  %v11468_v49 = vld [vmem:[%s14053_s21 + $0x68] sm:$0x1] }
  0x7d   : > { %12462 = vmatmul.mubr.msk.bf16.gmra.mrb[36].mxu1 %vm628_vm1, %v13906_v30  ;;  %v11396_v6 = vcombine.low %v5064_v54, %v5074_v63  ;;  %v6347_v12 = vrot.slane %v6345_v2, 4  ;;  %v6339_v14 = vsel %vm14324_vm7, %v11542_v56, %v6338_v51  ;;  %v6342_v15 = vsel %vm14324_vm7, %v6340_v60, %v6341_v61  ;;  %v11469_v54 = vld [vmem:[%s14053_s21 + $0x6c] sm:$0xe]  ;;  %v11470_v55 = vld [vmem:[%s14053_s21 + $0x70] sm:$0xf] }
  0x7e   : > { %12465 = vmatprep.mubr.msk.bf16.mxu1 %vm628_vm1, %v13907_v43  ;;  %v11544_v17 = vrot.slane %v11454_v57, 9  ;;  %v6359_v19 = vrot.slane %v11458_v5, 5  ;;  %v6354_v21 = vrot.slane %v6352_v8, 4  ;;  %v6355_v16 = vrot.slane %v11456_v62, 5  ;;  %v11466_v43 = vld [vmem:[%s14053_s21 + $0x60] sm:$0xe] }
  0x7f   : > { %12718 = vmatmul.mubr.msk.bf16.gmra.mrb[28].mxu0 %vm628_vm1, %v11396_v6  ;;  %v11545_v22 = vrot.slane %v11457_v4, 9  ;;  %v6366_v24 = vrot.slane %v11461_v20, 5  ;;  %v6346_v25 = vsel %vm14324_vm7, %v11543_v1, %v6345_v2  ;;  %v6349_v26 = vsel %vm14324_vm7, %v6347_v12, %v6348_v7  ;;  %v11471_v56 = vld [vmem:[%s14053_s21 + $0x74] sm:$0x1]  ;;  %v11472_v1 = vld [vmem:[%s14053_s21 + $0x78] sm:$0xe] }
  0x80   : > { %12755 = vmatprep.mubr.msk.bf16.mxu0 %vm628_vm1, %v11574_v0  ;;  %v6362_v27 = vrot.slane %v11459_v10, 5  ;;  %v11546_v28 = vrot.slane %v11460_v13, 9  ;;  %v6361_v29 = vrot.slane %v6359_v19, 4  ;;  %v11575_v33 = vcombine.low %v6339_v14, %v6342_v15  ;;  %v11473_v2 = vld [vmem:[%s14053_s21 + $0x7c] sm:$0xf]  ;;  %v13912_v15 = vld [vmem:[%s14053_s21 + $0x144] sm:$0xff]  }
  0x81   : > { %v6368_v30 = vrot.slane %v6366_v24, 4  ;;  %v6369_v35 = vrot.slane %v11462_v23, 5  ;;  %v6373_v37 = vrot.slane %v11464_v32, 5  ;;  %v11576_v39 = vcombine.low %v6346_v25, %v6349_v26  ;;  %v11474_v5 = vld [vmem:[%s14053_s21 + $0x80] sm:$0x1] }
  0x82   : > { %v11547_v42 = vrot.slane %v11463_v31, 9  ;;  %v6376_v38 = vrot.slane %v11465_v36, 5  ;;  %v6353_v44 = vsel %vm14324_vm7, %v11544_v17, %v6352_v8  ;;  %v6356_v45 = vsel %vm14324_vm7, %v6354_v21, %v6355_v16  ;;  %v11475_v13 = vld [vmem:[%s14053_s21 + $0x84] sm:$0xe]  ;;  %v13913_v21 = vld [vmem:[%s14053_s21 + $0x150] sm:$0xff]  }
  0x83   : > { %v6375_v47 = vrot.slane %v6373_v37, 4  ;;  %v11548_v50 = vrot.slane %v11466_v43, 9  ;;  %v6380_v51 = vrot.slane %v11467_v48, 5  ;;  %v6383_v52 = vrot.slane %v11468_v49, 5  ;;  %v11478_v26 = vld [vmem:[%s14053_s21 + $0x90] sm:$0xe] }
  0x84   : > { %v6360_v53 = vsel %vm14324_vm7, %v11545_v22, %v6359_v19  ;;  %v11577_v57 = vcombine.low %v6353_v44, %v6356_v45  ;;  %v14389_v58 = vsel %vm14324_vm7, %v11546_v28, %v6366_v24  ;;  %v11549_v60 = vrot.slane %v11469_v54, 9  ;;  %v11477_v19 = vld [vmem:[%s14053_s21 + $0x8c] sm:$0x1]  ;;  %v11480_v28 = vld [vmem:[%s14053_s21 + $0x98] sm:$0x1] }
  0x85   : > { %12466 = vmatmul.mubr.msk.bf16.gmra.mrb[40].mxu1 %vm628_vm1, %v13908_v3  ;;  %v6382_v59 = vrot.slane %v6380_v51, 4  ;;  %v6363_v61 = vsel %vm14324_vm7, %v6361_v29, %v6362_v27  ;;  %v14395_v62 = vsel %vm14324_vm7, %v6368_v30, %v6369_v35  ;;  %v6387_v63 = vrot.slane %v11470_v55, 5  ;;  %v11479_v27 = vld [vmem:[%s14053_s21 + $0x94] sm:$0xf]  ;;  %v11483_v43 = vld [vmem:[%s14053_s21 + $0xa4] sm:$0x1] }
  0x86   : > { %12469 = vmatprep.mubr.msk.bf16.mxu1 %vm628_vm1, %v13909_v18  ;;  %v6390_v0 = vrot.slane %v11471_v56, 5  ;;  %v14402_v3 = vsel %vm14324_vm7, %v11547_v42, %v6373_v37  ;;  %v14406_v4 = vsel %vm14324_vm7, %v6375_v47, %v6376_v38  ;;  %v11550_v6 = vrot.slane %v11472_v1, 9  ;;  %v11476_v18 = vld [vmem:[%s14053_s21 + $0x88] sm:$0xf]  ;;  %v11485_v54 = vld [vmem:[%s14053_s21 + $0xac] sm:$0xf] }
  0x87   : > { %12756 = vmatmul.mubr.msk.bf16.vlgmr.msra.gmra.mrb[0].mxu0 %vm628_vm1, %v11575_v33  ;;  %v6394_v7 = vrot.slane %v11473_v2, 5  ;;  %v14412_v8 = vsel %vm14324_vm7, %v11548_v50, %v6380_v51  ;;  %v14416_v10 = vsel %vm14324_vm7, %v6382_v59, %v6383_v52  ;;  %v6397_v12 = vrot.slane %v11474_v5, 5  ;;  %v11484_v50 = vld [vmem:[%s14053_s21 + $0xa8] sm:$0xe]  ;;  %v11486_v55 = vld [vmem:[%s14053_s21 + $0xb0] sm:$0x1] }
  0x88   : > { %12820 = vmatpush3.bf16.msra.mxu0 %v7619_v11  ;;  %12759 = vmatprep.mubr.msk.bf16.mxu0 %vm628_vm1, %v11576_v39  ;;  %v6389_v11 = vrot.slane %v6387_v63, 4  ;;  %v11578_v14 = vcombine.low %v6360_v53, %v6363_v61  ;;  %v11551_v20 = vrot.slane %v11475_v13, 9  ;;  %v6401_v16 = vrot.slane %v11476_v18, 5  ;;  %v11481_v39 = vld [vmem:[%s14053_s21 + $0x9c] sm:$0xe] }
  0x89   : > { %v6396_v17 = vrot.slane %v6394_v7, 4  ;;  %v6404_v22 = vrot.slane %v11477_v19, 5  ;;  %v11579_v23 = vcombine.low %v14389_v58, %v14395_v62  ;;  %v11580_v24 = vcombine.low %v14402_v3, %v14406_v4  ;;  %v1146_v62 = vld [vmem:[%s14053_s21] sm:$0xf]  ;;  %v1148_v3 = vld [vmem:[%s14053_s21 + $0x8] sm:$0x1] }
  0x8a   : > { %v11581_v25 = vcombine.low %v14412_v8, %v14416_v10  ;;  %v14435_v29 = vsel %vm14324_vm7, %v11549_v60, %v6387_v63  ;;  %v14439_v30 = vsel %vm14324_vm7, %v6389_v11, %v6390_v0  ;;  %v6403_v31 = vrot.slane %v6401_v16, 4  ;;  %v1147_v63 = vld [vmem:[%s14053_s21 + $0x4] sm:$0xf]  ;;  %v13915_v0 = vld [vmem:[%s14053_s21 + $0x168] sm:$0xff]   ;;  %v1154_v10 = vld [vmem:[%s14053_s21 + $0x20] sm:$0x1] }
  0x8b   : > { %v11552_v32 = vrot.slane %v11478_v26, 9  ;;  %v14444_v33 = vsel %vm14324_vm7, %v11550_v6, %v6394_v7  ;;  %v14448_v35 = vsel %vm14324_vm7, %v6396_v17, %v6397_v12  ;;  %v6408_v36 = vrot.slane %v11479_v27, 5  ;;  %v11487_v6 = vld [vmem:[%s14053_s21 + $0xb4] sm:$0xe] }
  0x8c   : > { %v6411_v37 = vrot.slane %v11480_v28, 5  ;;  %v14454_v42 = vsel %vm14324_vm7, %v11551_v20, %v6401_v16  ;;  %v14458_v38 = vsel %vm14324_vm7, %v6403_v31, %v6404_v22  ;;  %v11553_v44 = vrot.slane %v11481_v39, 9  ;;  %v1150_v28 = vld [vmem:[%s14053_s21 + $0x10] sm:$0xf]  ;;  %v11090_v39 = vld [vmem:[%s14058_s24 + $0x4] sm:$0x3] }
  0x8d   : > { %12470 = vmatmul.mubr.msk.bf16.gmra.mrb[44].mxu1 %vm628_vm1, %v13910_v40  ;;  %v11482_v40 = vld [vmem:[%s14053_s21 + $0xa0] sm:$0xf]  ;;  %v14466_v47 = vsel %vm14324_vm7, %v11552_v32, %v6408_v36  ;;  %v6410_v48 = vrot.slane %v6408_v36, 4  ;;  %v6418_v49 = vrot.slane %v11483_v43, 5  ;;  %v11583_v51 = vcombine.low %v14444_v33, %v14448_v35  ;;  %13853 = vmatprep.subr.msk.bf16.mxu1 %vm725_vm0, %v11090_v39 }
  0x8e   : > { %12473 = vmatprep.mubr.msk.bf16.mxu1 %vm628_vm1, %v13911_v46  ;;  %v6415_v45 = vrot.slane %v11482_v40, 5  ;;  %v11582_v46 = vcombine.low %v14435_v29, %v14439_v30  ;;  %v11554_v56 = vrot.slane %v11484_v50, 9  ;;  %v11584_v58 = vcombine.low %v14454_v42, %v14458_v38  ;;  %v11493_v29 = vld [vmem:[%s14053_s21 + $0xe4] sm:$0xe] }
  0x8f   : > { %12760 = vmatmul.mubr.msk.bf16.gmra.mrb[4].mxu0 %vm628_vm1, %v11577_v57  ;;  %v13914_v57 = vld [vmem:[%s14053_s21 + $0x15c] sm:$0xff]   ;;  %v14483_v59 = vsel %vm14324_vm7, %v6410_v48, %v6411_v37  ;;  %v6422_v60 = vrot.slane %v11485_v54, 5  ;;  %v6425_v61 = vrot.slane %v11486_v55, 5  ;;  %v1246_v4 = vshrl.u32 %v1146_v62, 16  ;;  %v1151_v37 = vld [vmem:[%s14053_s21 + $0x14] sm:$0x1] }
  0x90   : > { %12763 = vmatprep.mubr.msk.bf16.mxu0 %vm628_vm1, %v11578_v14  ;;  %v14474_v52 = vsel %vm14324_vm7, %v11553_v44, %v6415_v45  ;;  %v6417_v53 = vrot.slane %v6415_v45, 4  ;;  %v11585_v1 = vcombine.low %v14466_v47, %v14483_v59  ;;  %v1249_v5 = vshll.u32 %v1146_v62, 16  ;;  %v11488_v14 = vld [vmem:[%s14053_s21 + $0xb8] sm:$0xf]  ;;  %v11490_v45 = vld [vmem:[%s14053_s21 + $0xc0] sm:$0xe] }
  0x91   : > { %v14500_v11 = vsel %vm14324_vm7, %v11554_v56, %v6422_v60  ;;  %v6424_v12 = vrot.slane %v6422_v60, 4  ;;  %v1255_v13 = vshll.u32 %v1147_v63, 16  ;;  %v1248_v17 = vrot.slane %v1246_v4, 4  ;;  %v11491_v54 = vld [vmem:[%s14053_s21 + $0xc4] sm:$0xf] }
  0x92   : > { %v14492_v2 = vsel %vm14324_vm7, %v6417_v53, %v6418_v49  ;;  %v1251_v18 = vrot.slane %v1249_v5, 5  ;;  %v1259_v19 = vshrl.u32 %v1147_v63, 16  ;;  %v1265_v20 = vshll.u32 %v1148_v3, 16  ;;  %v1152_v4 = vld [vmem:[%s14053_s21 + $0x18] sm:$0xf] }
  0x93   : > { %v11586_v7 = vcombine.low %v14474_v52, %v14492_v2  ;;  %v14509_v16 = vsel %vm14324_vm7, %v6424_v12, %v6425_v61  ;;  %v1257_v22 = vrot.slane %v1255_v13, 5  ;;  %v11555_v26 = vrot.slane %v11487_v6, 9  ;;  %v11492_v61 = vld [vmem:[%s14053_s21 + $0xc8] sm:$0x1]  ;;  %v13916_v5 = vld [vmem:[%s14053_s21 + $0x174] sm:$0xff]  }
  0x94   : > { %v6429_v27 = vrot.slane %v11488_v14, 5  ;;  %v1252_v31 = vor.u32 %v1251_v18, %v1248_v17  ;;  %v1261_v32 = vrot.slane %v1259_v19, 4  ;;  %v1267_v36 = vrot.slane %v1265_v20, 5 }
  0x95   : > { %12474 = vmatmul.mubr.msk.bf16.gmra.mrb[48].mxu1 %vm628_vm1, %v13912_v15  ;;  %v11489_v15 = vld [vmem:[%s14053_s21 + $0xbc] sm:$0x1]  ;;  %v1279_v53 = vshll.u32 %v1150_v28, 16  ;;  %v1289_v60 = vshll.u32 %v1151_v37, 16  ;;  %v11556_v14 = vrot.slane %v11490_v45, 9  ;;  %v6436_v19 = vrot.slane %v11491_v54, 5 }
  0x96   : > { %12477 = vmatprep.mubr.msk.bf16.mxu1 %vm628_vm1, %v13913_v21  ;;  %v1149_v21 = vld [vmem:[%s14053_s21 + $0xc] sm:$0xf]  ;;  %v6431_v40 = vrot.slane %v6429_v27, 4  ;;  %v6432_v43 = vrot.slane %v11489_v15, 5  ;;  %v1253_v48 = vrot.slane %v1252_v31, 4  ;;  %v1262_v49 = vor.u32 %v1261_v32, %v1257_v22  ;;  %v13917_v15 = vld [vmem:[%s14053_s21 + $0x180] sm:$0xff]  }
  0x97   : > { %12764 = vmatmul.mubr.msk.bf16.gmra.mrb[8].mxu0 %vm628_vm1, %v11579_v23  ;;  %v11587_v23 = vcombine.low %v14500_v11, %v14509_v16  ;;  %v1270_v44 = vshrl.u32 %v1149_v21, 16  ;;  %v1273_v50 = vshll.u32 %v1149_v21, 16  ;;  %v1281_v6 = vrot.slane %v1279_v53, 5  ;;  %v1153_v21 = vld [vmem:[%s14053_s21 + $0x1c] sm:$0xf] }
  0x98   : > { %12767 = vmatprep.mubr.msk.bf16.mxu0 %vm628_vm1, %v11580_v24  ;;  %v14519_v24 = vsel %vm14324_vm7, %v11555_v26, %v6429_v27  ;;  %v14527_v55 = vsel %vm14324_vm7, %v6431_v40, %v6432_v43  ;;  %v1258_v62 = vsel %vm14159_vm4, %v1253_v48, %v1257_v22  ;;  %v1263_v63 = vrot.slane %v1262_v49, 4  ;;  %v11495_v48 = vld [vmem:[%s14053_s21 + $0xec] sm:$0x1]  ;;  %v1155_v49 = vld [vmem:[%s14053_s21 + $0x24] sm:$0xf] }
  0x99   : > { %v1272_v56 = vrot.slane %v1270_v44, 4  ;;  %v1275_v3 = vrot.slane %v1273_v50, 5  ;;  %v1291_v13 = vrot.slane %v1289_v60, 5  ;;  %v6439_v20 = vrot.slane %v11492_v61, 5 }
  0x9a   : > { %v1268_v17 = vsel %vm14159_vm4, %v1263_v63, %v1267_v36  ;;  %v14549_v8 = vsel %vm725_vm0, %v11090_v39, 0  ;;  %v6438_v31 = vrot.slane %v6436_v19, 4  ;;  %v1297_v32 = vshll.u32 %v1152_v4, 16  ;;  %v11494_v39 = vld [vmem:[%s14053_s21 + $0xe8] sm:$0xf] }
  0x9b   : > { %v1276_v18 = vor.u32 %v1275_v3, %v1272_v56  ;;  %v10994_v22 = vcombine.low %v1258_v62, %v1268_v17  ;;  %v1303_v36 = vshll.u32 %v1153_v21, 16  ;;  %v1307_v37 = vshrl.u32 %v1153_v21, 16  ;;  %v1157_v3 = vld [vmem:[%s14053_s21 + $0x2c] sm:$0x1] }
  0x9c   : > { %v14564_v43 = vsel %vm14324_vm7, %v6438_v31, %v6439_v20  ;;  %v1299_v44 = vrot.slane %v1297_v32, 5  ;;  %v1313_v45 = vshll.u32 %v1154_v10, 16  ;;  %v11557_v63 = vrot.slane %v11493_v29, 9  ;;  %v11497_v20 = vld [vmem:[%s14053_s21 + $0xf4] sm:$0xf] }
  0x9d   : > { %12478 = vmatmul.mubr.msk.bf16.gmra.mrb[52].mxu1 %vm628_vm1, %v13914_v57  ;;  %v1283_v57 = vshrl.u32 %v1150_v28, 16  ;;  %v1277_v27 = vrot.slane %v1276_v18, 4  ;;  %v14554_v28 = vsel %vm14324_vm7, %v11556_v14, %v6436_v19  ;;  %v1305_v54 = vrot.slane %v1303_v36, 5  ;;  %v1158_v32 = vld [vmem:[%s14053_s21 + $0x30] sm:$0xf] }
  0x9e   : > { %12481 = vmatprep.mubr.msk.bf16.mxu1 %vm628_vm1, %v13915_v0  ;;  %v11588_v0 = vcombine.low %v14519_v24, %v14527_v55  ;;  %v11589_v53 = vcombine.low %v14554_v28, %v14564_v43  ;;  %v1309_v56 = vrot.slane %v1307_v37, 4  ;;  %v1315_v62 = vrot.slane %v1313_v45, 5 }
  0x9f   : > { %v1285_v12 = vrot.slane %v1283_v57, 4  ;;  %12768 = vmatmul.mubr.msk.bf16.gmra.mrb[12].mxu0 %vm628_vm1, %v11581_v25  ;;  %v1294_v25 = vshrl.u32 %v1152_v4, 16  ;;  %v1282_v40 = vsel %vm14159_vm4, %v1277_v27, %v1281_v6  ;;  %v1156_v57 = vld [vmem:[%s14053_s21 + $0x28] sm:$0xf]  ;;  %v13918_v4 = vld [vmem:[%s14053_s21 + $0x18c] sm:$0xff]   ;;  %v1318_v14 = vshrl.u32 %v1155_v49, 16 }
  0xa0   : > { %12771 = vmatprep.mubr.msk.bf16.mxu0 %vm628_vm1, %v11582_v46  ;;  %v1321_v17 = vshll.u32 %v1155_v49, 16  ;;  %v1327_v18 = vshll.u32 %v1156_v57, 16  ;;  %v1331_v19 = vshrl.u32 %v1156_v57, 16  ;;  %v1342_v49 = vshrl.u32 %v1158_v32, 16 }
  0xa1   : > { %v1286_v26 = vor.u32 %v1285_v12, %v1281_v6  ;;  %v1296_v46 = vrot.slane %v1294_v25, 4  ;;  %v6443_v6 = vrot.slane %v11494_v39, 5  ;;  %v6446_v12 = vrot.slane %v11495_v48, 5  ;;  %v1160_v48 = vld [vmem:[%s14053_s21 + $0x38] sm:$0x1] }
  0xa2   : > { %v1320_v35 = vrot.slane %v1318_v14, 4  ;;  %v1323_v25 = vrot.slane %v1321_v17, 5  ;;  %v1329_v27 = vrot.slane %v1327_v18, 5  ;;  %v1333_v31 = vrot.slane %v1331_v19, 4 }
  0xa3   : > { %v1287_v30 = vrot.slane %v1286_v26, 4  ;;  %v1300_v61 = vor.u32 %v1299_v44, %v1296_v46  ;;  %v14589_v26 = vsel %vm14324_vm7, %v11557_v63, %v6443_v6  ;;  %v6445_v33 = vrot.slane %v6443_v6, 4 }
  0xa4   : > { %v1324_v37 = vor.u32 %v1323_v25, %v1320_v35  ;;  %v1334_v39 = vor.u32 %v1333_v31, %v1329_v27  ;;  %v6450_v44 = vrot.slane %v11497_v20, 5  ;;  %v1344_v63 = vrot.slane %v1342_v49, 4  ;;  %v1163_v35 = vld [vmem:[%s14053_s21 + $0x44] sm:$0x1] }
  0xa5   : > { %12482 = vmatmul.mubr.msk.bf16.gmra.mrb[56].mxu1 %vm628_vm1, %v13916_v5  ;;  %v1292_v50 = vsel %vm14159_vm4, %v1287_v30, %v1291_v13  ;;  %v1310_v5 = vor.u32 %v1309_v56, %v1305_v54  ;;  %v11496_v13 = vld [vmem:[%s14053_s21 + $0xf0] sm:$0xe]  ;;  %v14600_v38 = vsel %vm14324_vm7, %v6445_v33, %v6446_v12  ;;  %v1159_v30 = vld [vmem:[%s14053_s21 + $0x34] sm:$0xf]  ;;  %v1345_v56 = vshll.u32 %v1158_v32, 16 }
  0xa6   : > { %12485 = vmatprep.mubr.msk.bf16.mxu1 %vm628_vm1, %v13917_v15  ;;  %v14573_v60 = vcombine.low %v1282_v40, %v1292_v50  ;;  %v1301_v15 = vrot.slane %v1300_v61, 4  ;;  %v11558_v29 = vrot.slane %v11496_v13, 9  ;;  %v11590_v36 = vcombine.low %v14589_v26, %v14600_v38  ;;  %v11499_v61 = vld [vmem:[%s14053_s21 + $0xfc] sm:$0xe]  ;;  %v11501_v13 = vld [vmem:[%s14053_s21 + $0x104] sm:$0x1] }
  0xa7   : > { %12772 = vmatmul.mubr.msk.bf16.gmra.mrb[16].mxu0 %vm628_vm1, %v11583_v51  ;;  %v1311_v21 = vrot.slane %v1310_v5, 4  ;;  %v11498_v51 = vld [vmem:[%s14053_s21 + $0xf8] sm:$0x1]  ;;  %v1325_v50 = vrot.slane %v1324_v37, 4  ;;  %v1351_v57 = vshll.u32 %v1159_v30, 16  ;;  %v1347_v12 = vrot.slane %v1345_v56, 5 }
  0xa8   : > { %12775 = vmatprep.mubr.msk.bf16.mxu0 %vm628_vm1, %v11584_v58  ;;  %v1306_v10 = vsel %vm14159_vm4, %v1301_v15, %v1305_v54  ;;  %v1337_v58 = vshll.u32 %v1157_v3, 16  ;;  %v6453_v45 = vrot.slane %v11498_v51, 5  ;;  %v1335_v54 = vrot.slane %v1334_v39, 4  ;;  %v1161_v15 = vld [vmem:[%s14053_s21 + $0x3c] sm:$0xf] }
  0xa9   : > { %v1316_v42 = vsel %vm14159_vm4, %v1311_v21, %v1315_v62  ;;  %v6452_v62 = vrot.slane %v6450_v44, 4  ;;  %v1355_v3 = vshrl.u32 %v1159_v30, 16  ;;  %v1330_v5 = vsel %vm14159_vm4, %v1325_v50, %v1329_v27  ;;  %v1162_v33 = vld [vmem:[%s14053_s21 + $0x40] sm:$0xf]  ;;  %v11503_v30 = vld [vmem:[%s14053_s21 + $0x10c] sm:$0xf] }
  0xaa   : > { %v10996_v46 = vcombine.low %v1306_v10, %v1316_v42  ;;  %v1339_v40 = vrot.slane %v1337_v58, 5  ;;  %v1353_v14 = vrot.slane %v1351_v57, 5  ;;  %v1361_v17 = vshll.u32 %v1160_v48, 16  ;;  %v11510_v26 = vld [vmem:[%s14053_s21 + $0x128] sm:$0x1] }
  0xab   : > { %v14629_v59 = vsel %vm14324_vm7, %v6452_v62, %v6453_v45  ;;  %v1348_v19 = vor.u32 %v1347_v12, %v1344_v63  ;;  %v11559_v20 = vrot.slane %v11499_v61, 9  ;;  %v1366_v51 = vshrl.u32 %v1161_v15, 16  ;;  %v1166_v63 = vld [vmem:[%s14053_s21 + $0x50] sm:$0x1]  ;;  %v11505_v12 = vld [vmem:[%s14053_s21 + $0x114] sm:$0xe] }
  0xac   : > { %v1340_v6 = vsel %vm14159_vm4, %v1335_v54, %v1339_v40  ;;  %v1363_v2 = vrot.slane %v1361_v17, 5  ;;  %v1369_v31 = vshll.u32 %v1161_v15, 16  ;;  %v1375_v58 = vshll.u32 %v1162_v33, 16  ;;  %v11504_v40 = vld [vmem:[%s14053_s21 + $0x110] sm:$0x1] }
  0xad   : > { %12486 = vmatmul.mubr.msk.bf16.gmra.mrb[60].mxu1 %vm628_vm1, %v13918_v4  ;;  %v11500_v4 = vld [vmem:[%s14053_s21 + $0x100] sm:$0xf]  ;;  %v10997_v47 = vcombine.low %v1330_v5, %v1340_v6  ;;  %v1349_v10 = vrot.slane %v1348_v19, 4  ;;  %v1368_v42 = vrot.slane %v1366_v51, 4  ;;  %v1385_v39 = vshll.u32 %v1163_v35, 16 }
  0xae   : > { %12491 = vmatprep.mubr.msk.bf16.mxu1 %vm628_vm1, %v10994_v22  ;;  %v14610_v22 = vsel %vm14324_vm7, %v11558_v29, %v6450_v44  ;;  %v6457_v21 = vrot.slane %v11500_v4, 5  ;;  %v1379_v29 = vshrl.u32 %v1162_v33, 16  ;;  %v1371_v37 = vrot.slane %v1369_v31, 5  ;;  %v1164_v44 = vld [vmem:[%s14053_s21 + $0x48] sm:$0xf] }
  0xaf   : > { %12776 = vmatmul.mubr.msk.bf16.gmra.mrb[20].mxu0 %vm628_vm1, %v11585_v1  ;;  %v1357_v1 = vrot.slane %v1355_v3, 4  ;;  %v11591_v18 = vcombine.low %v14610_v22, %v14629_v59  ;;  %v1377_v49 = vrot.slane %v1375_v58, 5  ;;  %v1165_v54 = vld [vmem:[%s14053_s21 + $0x4c] sm:$0xf]  ;;  %v1387_v61 = vrot.slane %v1385_v39, 5 }
  0xb0   : > { %12779 = vmatprep.mubr.msk.bf16.mxu0 %vm628_vm1, %v11586_v7  ;;  %v6460_v7 = vrot.slane %v11501_v13, 5  ;;  %v14641_v25 = vsel %vm14324_vm7, %v11559_v20, %v6457_v21  ;;  %v6459_v27 = vrot.slane %v6457_v21, 4  ;;  %v1381_v50 = vrot.slane %v1379_v29, 4  ;;  %v11506_v13 = vld [vmem:[%s14053_s21 + $0x118] sm:$0xf] }
  0xb1   : > { %v1358_v52 = vor.u32 %v1357_v1, %v1353_v14  ;;  %v1372_v57 = vor.u32 %v1371_v37, %v1368_v42  ;;  %v6464_v4 = vrot.slane %v11503_v30, 5  ;;  %v6467_v5 = vrot.slane %v11504_v40, 5  ;;  %v11507_v1 = vld [vmem:[%s14053_s21 + $0x11c] sm:$0x1]  ;;  %v1167_v33 = vld [vmem:[%s14053_s21 + $0x54] sm:$0xf] }
  0xb2   : > { %v1382_v3 = vor.u32 %v1381_v50, %v1377_v49  ;;  %v1390_v6 = vshrl.u32 %v1164_v44, 16  ;;  %v1393_v16 = vshll.u32 %v1164_v44, 16  ;;  %v1168_v35 = vld [vmem:[%s14053_s21 + $0x58] sm:$0xf]  ;;  %v6474_v42 = vrot.slane %v11507_v1, 5 }
  0xb3   : > { %v1359_v32 = vrot.slane %v1358_v52, 4  ;;  %v1373_v11 = vrot.slane %v1372_v57, 4  ;;  %v6466_v55 = vrot.slane %v6464_v4, 4  ;;  %v1169_v58 = vld [vmem:[%s14053_s21 + $0x5c] sm:$0x1]  ;;  %v1414_v29 = vshrl.u32 %v1167_v33, 16 }
  0xb4   : > { %v1383_v15 = vrot.slane %v1382_v3, 4  ;;  %v1395_v19 = vrot.slane %v1393_v16, 5  ;;  %v1417_v37 = vshll.u32 %v1167_v33, 16  ;;  %v1423_v39 = vshll.u32 %v1168_v35, 16  ;;  %v11508_v40 = vld [vmem:[%s14053_s21 + $0x120] sm:$0xe] }
  0xb5   : > { %12492 = vmatmul.mubr.msk.bf16.vlgmr.msra.gmra.mrb[0].mxu1 %vm628_vm1, %v14573_v60  ;;  %v11502_v60 = vld [vmem:[%s14053_s21 + $0x108] sm:$0xe]  ;;  %v1364_v45 = vsel %vm14159_vm4, %v1359_v32, %v1363_v2  ;;  %v1378_v17 = vsel %vm14159_vm4, %v1373_v11, %v1377_v49  ;;  %v14683_v52 = vsel %vm14324_vm7, %v6466_v55, %v6467_v5  ;;  %v1409_v2 = vshll.u32 %v1166_v63, 16  ;;  %v1170_v38 = vld [vmem:[%s14053_s21 + $0x60] sm:$0xf] }
  0xb6   : > { %12556 = vmatpush3.bf16.msra.mxu1 %v14549_v8  ;;  %12495 = vmatprep.mubr.msk.bf16.mxu1 %vm628_vm1, %v10996_v46  ;;  %v1354_v8 = vsel %vm14159_vm4, %v1349_v10, %v1353_v14  ;;  %v14649_v46 = vsel %vm14324_vm7, %v6459_v27, %v6460_v7  ;;  %v11560_v62 = vrot.slane %v11502_v60, 9  ;;  %v1403_v14 = vshrl.u32 %v1165_v54, 16  ;;  %v11511_v1 = vld [vmem:[%s14053_s21 + $0x12c] sm:$0xe]  ;;  %v11512_v33 = vld [vmem:[%s14053_s21 + $0x130] sm:$0xf] }
  0xb7   : > { %v11592_v48 = vcombine.low %v14641_v25, %v14649_v46  ;;  %12780 = vmatmul.mubr.msk.bf16.gmra.mrb[24].mxu0 %vm628_vm1, %v11587_v23  ;;  %v10998_v56 = vcombine.low %v1354_v8, %v1364_v45  ;;  %v1399_v23 = vshll.u32 %v1165_v54, 16  ;;  %v11561_v7 = vrot.slane %v11505_v12, 9 }
  0xb8   : > { %12783 = vmatprep.mubr.msk.bf16.mxu0 %vm628_vm1, %v11588_v0  ;;  %v14672_v24 = vsel %vm14324_vm7, %v11560_v62, %v6464_v4  ;;  %v1392_v0 = vrot.slane %v1390_v6, 4  ;;  %v1405_v21 = vrot.slane %v1403_v14, 4  ;;  %v1411_v60 = vrot.slane %v1409_v2, 5  ;;  %v1171_v6 = vld [vmem:[%s14053_s21 + $0x64] sm:$0xf] }
  0xb9   : > { %v1401_v20 = vrot.slane %v1399_v23, 5  ;;  %v11593_v10 = vcombine.low %v14672_v24, %v14683_v52  ;;  %v6471_v32 = vrot.slane %v11506_v13, 5  ;;  %v1416_v28 = vrot.slane %v1414_v29, 4  ;;  %v1172_v23 = vld [vmem:[%s14053_s21 + $0x68] sm:$0x1] }
  0xba   : > { %v1396_v27 = vor.u32 %v1395_v19, %v1392_v0  ;;  %v1427_v43 = vshrl.u32 %v1168_v35, 16  ;;  %v1419_v54 = vrot.slane %v1417_v37, 5  ;;  %v1433_v62 = vshll.u32 %v1169_v58, 16  ;;  %v11514_v37 = vld [vmem:[%s14053_s21 + $0x138] sm:$0xe] }
  0xbb   : > { %v1406_v31 = vor.u32 %v1405_v21, %v1401_v20  ;;  %v14700_v44 = vsel %vm14324_vm7, %v11561_v7, %v6471_v32  ;;  %v6473_v45 = vrot.slane %v6471_v32, 4  ;;  %v11562_v4 = vrot.slane %v11508_v40, 9 }
  0xbc   : > { %v1397_v30 = vrot.slane %v1396_v27, 4  ;;  %v1420_v3 = vor.u32 %v1419_v54, %v1416_v28  ;;  %v1435_v11 = vrot.slane %v1433_v62, 5  ;;  %v6481_v16 = vrot.slane %v11510_v26, 5  ;;  %v1173_v27 = vld [vmem:[%s14053_s21 + $0x6c] sm:$0xf] }
  0xbd   : > { %12496 = vmatmul.mubr.msk.bf16.gmra.mrb[4].mxu1 %vm628_vm1, %v10997_v47  ;;  %v1388_v47 = vsel %vm14159_vm4, %v1383_v15, %v1387_v61  ;;  %v1407_v8 = vrot.slane %v1406_v31, 4  ;;  %v14712_v57 = vsel %vm14324_vm7, %v6473_v45, %v6474_v42  ;;  %v1429_v61 = vrot.slane %v1427_v43, 4  ;;  %v11515_v43 = vld [vmem:[%s14053_s21 + $0x13c] sm:$0xf]  ;;  %v1176_v62 = vld [vmem:[%s14053_s21 + $0x78] sm:$0xf] }
  0xbe   : > { %12499 = vmatprep.mubr.msk.bf16.mxu1 %vm628_vm1, %v10998_v56  ;;  %v10999_v51 = vcombine.low %v1378_v17, %v1388_v47  ;;  %v1402_v49 = vsel %vm14159_vm4, %v1397_v30, %v1401_v20  ;;  %v1425_v56 = vrot.slane %v1423_v39, 5  ;;  %v11594_v63 = vcombine.low %v14700_v44, %v14712_v57  ;;  %v1175_v30 = vld [vmem:[%s14053_s21 + $0x74] sm:$0x1] }
  0xbf   : > { %12784 = vmatmul.mubr.msk.bf16.gmra.mrb[28].mxu0 %vm628_vm1, %v11589_v53  ;;  %v11509_v53 = vld [vmem:[%s14053_s21 + $0x124] sm:$0xf]  ;;  %v1412_v50 = vsel %vm14159_vm4, %v1407_v8, %v1411_v60  ;;  %v1438_v14 = vshrl.u32 %v1170_v38, 16  ;;  %v1421_v13 = vrot.slane %v1420_v3, 4  ;;  %v1441_v0 = vshll.u32 %v1170_v38, 16 }
  0xc0   : > { %12787 = vmatprep.mubr.msk.bf16.mxu0 %vm628_vm1, %v11590_v36  ;;  %v11000_v36 = vcombine.low %v1402_v49, %v1412_v50  ;;  %v6478_v5 = vrot.slane %v11509_v53, 5  ;;  %v1430_v12 = vor.u32 %v1429_v61, %v1425_v56  ;;  %v1447_v20 = vshll.u32 %v1171_v6, 16  ;;  %v1174_v60 = vld [vmem:[%s14053_s21 + $0x70] sm:$0xf] }
  0xc1   : > { %v1440_v19 = vrot.slane %v1438_v14, 4  ;;  %v1451_v21 = vshrl.u32 %v1171_v6, 16  ;;  %v1426_v47 = vsel %vm14159_vm4, %v1421_v13, %v1425_v56  ;;  %v1443_v7 = vrot.slane %v1441_v0, 5  ;;  %v11516_v56 = vld [vmem:[%s14053_s21 + $0x140] sm:$0x1] }
  0xc2   : > { %v14721_v15 = vsel %vm14324_vm7, %v11562_v4, %v6478_v5  ;;  %v6480_v55 = vrot.slane %v6478_v5, 4  ;;  %v1431_v17 = vrot.slane %v1430_v12, 4  ;;  %v1457_v35 = vshll.u32 %v1172_v23, 16  ;;  %v1177_v12 = vld [vmem:[%s14053_s21 + $0x7c] sm:$0xf] }
  0xc3   : > { %v1453_v31 = vrot.slane %v1451_v21, 4  ;;  %v1444_v42 = vor.u32 %v1443_v7, %v1440_v19  ;;  %v11563_v29 = vrot.slane %v11511_v1, 9  ;;  %v6485_v46 = vrot.slane %v11512_v33, 5  ;;  %v1178_v1 = vld [vmem:[%s14053_s21 + $0x80] sm:$0x1] }
  0xc4   : > { %v14733_v2 = vsel %vm14324_vm7, %v6480_v55, %v6481_v16  ;;  %v1436_v22 = vsel %vm14159_vm4, %v1431_v17, %v1435_v11  ;;  %v1459_v58 = vrot.slane %v1457_v35, 5  ;;  %v1465_v40 = vshll.u32 %v1173_v27, 16  ;;  %v11518_v33 = vld [vmem:[%s14053_s21 + $0x148] sm:$0xf] }
  0xc5   : > { %12500 = vmatmul.mubr.msk.bf16.gmra.mrb[8].mxu1 %vm628_vm1, %v10999_v51  ;;  %v11513_v51 = vld [vmem:[%s14053_s21 + $0x134] sm:$0x1]  ;;  %v11595_v59 = vcombine.low %v14721_v15, %v14733_v2  ;;  %v11001_v32 = vcombine.low %v1426_v47, %v1436_v22  ;;  %v1445_v39 = vrot.slane %v1444_v42, 4  ;;  %v1471_v45 = vshll.u32 %v1174_v60, 16  ;;  %v1179_v22 = vld [vmem:[%s14053_s21 + $0x84] sm:$0xf] }
  0xc6   : > { %12503 = vmatprep.mubr.msk.bf16.mxu1 %vm628_vm1, %v11000_v36  ;;  %v6488_v8 = vrot.slane %v11513_v51, 5  ;;  %v1475_v28 = vshrl.u32 %v1174_v60, 16  ;;  %v14752_v49 = vsel %vm14324_vm7, %v11563_v29, %v6485_v46  ;;  %v6487_v50 = vrot.slane %v6485_v46, 4 }
  0xc7   : > { %12788 = vmatmul.mubr.msk.bf16.gmra.mrb[32].mxu0 %vm628_vm1, %v11591_v18  ;;  %v1449_v18 = vrot.slane %v1447_v20, 5  ;;  %v1467_v38 = vrot.slane %v1465_v40, 5  ;;  %v1473_v36 = vrot.slane %v1471_v45, 5  ;;  %v1481_v5 = vshll.u32 %v1175_v30, 16  ;;  %v11517_v20 = vld [vmem:[%s14053_s21 + $0x144] sm:$0xe] }
  0xc8   : > { %12791 = vmatprep.mubr.msk.bf16.mxu0 %vm628_vm1, %v11592_v48  ;;  %v1462_v48 = vshrl.u32 %v1173_v27, 16  ;;  %v1477_v61 = vrot.slane %v1475_v28, 4  ;;  %v6489_v4 = vsel %vm14324_vm7, %v6487_v50, %v6488_v8  ;;  %v11564_v6 = vrot.slane %v11514_v37, 9  ;;  %v11519_v27 = vld [vmem:[%s14053_s21 + $0x14c] sm:$0x1] }
  0xc9   : > { %v1454_v25 = vor.u32 %v1453_v31, %v1449_v18  ;;  %v1450_v26 = vsel %vm14159_vm4, %v1445_v39, %v1449_v18  ;;  %v11596_v16 = vcombine.low %v14752_v49, %v6489_v4  ;;  %v1483_v13 = vrot.slane %v1481_v5, 5  ;;  %v1181_v37 = vld [vmem:[%s14053_s21 + $0x8c] sm:$0x1] }
  0xca   : > { %v1464_v54 = vrot.slane %v1462_v48, 4  ;;  %v1478_v14 = vor.u32 %v1477_v61, %v1473_v36  ;;  %v6492_v55 = vrot.slane %v11515_v43, 5  ;;  %v6495_v0 = vrot.slane %v11516_v56, 5  ;;  %v1182_v61 = vld [vmem:[%s14053_s21 + $0x90] sm:$0xf] }
  0xcb   : > { %v1455_v53 = vrot.slane %v1454_v25, 4  ;;  %v1486_v17 = vshrl.u32 %v1176_v62, 16  ;;  %v1495_v19 = vshll.u32 %v1177_v12, 16  ;;  %v1499_v21 = vshrl.u32 %v1177_v12, 16  ;;  %v1180_v25 = vld [vmem:[%s14053_s21 + $0x88] sm:$0xf] }
  0xcc   : > { %v1468_v23 = vor.u32 %v1467_v38, %v1464_v54  ;;  %v1479_v52 = vrot.slane %v1478_v14, 4  ;;  %v14777_v44 = vsel %vm14324_vm7, %v11564_v6, %v6492_v55  ;;  %v6494_v57 = vrot.slane %v6492_v55, 4  ;;  %v1183_v6 = vld [vmem:[%s14053_s21 + $0x94] sm:$0xf]  ;;  %v1184_v14 = vld [vmem:[%s14053_s21 + $0x98] sm:$0x1] }
  0xcd   : > { %12504 = vmatmul.mubr.msk.bf16.gmra.mrb[12].mxu1 %vm628_vm1, %v11001_v32  ;;  %v1460_v3 = vsel %vm14159_vm4, %v1455_v53, %v1459_v58  ;;  %v1497_v51 = vrot.slane %v1495_v19, 5  ;;  %v1501_v60 = vrot.slane %v1499_v21, 4  ;;  %v1505_v32 = vshll.u32 %v1178_v1, 16  ;;  %v11520_v53 = vld [vmem:[%s14053_s21 + $0x150] sm:$0xe] }
  0xce   : > { %v11002_v11 = vcombine.low %v1450_v26, %v1460_v3  ;;  %v1469_v24 = vrot.slane %v1468_v23, 4  ;;  %v1484_v7 = vsel %vm14159_vm4, %v1479_v52, %v1483_v13  ;;  %v6496_v31 = vsel %vm14324_vm7, %v6494_v57, %v6495_v0  ;;  %v11521_v26 = vld [vmem:[%s14053_s21 + $0x154] sm:$0xf] }
  0xcf   : > { %12792 = vmatmul.mubr.msk.bf16.gmra.mrb[36].mxu0 %vm628_vm1, %v11593_v10  ;;  %v1489_v10 = vshll.u32 %v1176_v62, 16  ;;  %v11597_v42 = vcombine.low %v14777_v44, %v6496_v31  ;;  %v11565_v29 = vrot.slane %v11517_v20, 9  ;;  %v6499_v30 = vrot.slane %v11518_v33, 5  ;;  %v11524_v20 = vld [vmem:[%s14053_s21 + $0x160] sm:$0xf] }
  0xd0   : > { %12795 = vmatprep.mubr.msk.bf16.mxu0 %vm628_vm1, %v11594_v63  ;;  %12507 = vmatprep.mubr.msk.bf16.mxu1 %vm628_vm1, %v11002_v11  ;;  %v1488_v63 = vrot.slane %v1486_v17, 4  ;;  %v1474_v47 = vsel %vm14159_vm4, %v1469_v24, %v1473_v36  ;;  %v1502_v46 = vor.u32 %v1501_v60, %v1497_v51  ;;  %v1507_v8 = vrot.slane %v1505_v32, 5  ;;  %v11522_v36 = vld [vmem:[%s14053_s21 + $0x158] sm:$0x1]  ;;  %v11523_v17 = vld [vmem:[%s14053_s21 + $0x15c] sm:$0xe] }
  0xd1   : > { %v1491_v35 = vrot.slane %v1489_v10, 5  ;;  %v11003_v18 = vcombine.low %v1474_v47, %v1484_v7  ;;  %v6502_v48 = vrot.slane %v11519_v27, 5  ;;  %v1510_v39 = vshrl.u32 %v1179_v22, 16  ;;  %v11525_v44 = vld [vmem:[%s14053_s21 + $0x164] sm:$0x1] }
  0xd2   : > { %v6500_v45 = vsel %vm14324_vm7, %v11565_v29, %v6499_v30  ;;  %v6501_v28 = vrot.slane %v6499_v30, 4  ;;  %v1513_v43 = vshll.u32 %v1179_v22, 16  ;;  %v1503_v49 = vrot.slane %v1502_v46, 4  ;;  %v1185_v47 = vld [vmem:[%s14053_s21 + $0x9c] sm:$0xf] }
  0xd3   : > { %v1492_v58 = vor.u32 %v1491_v35, %v1488_v63  ;;  %v1512_v50 = vrot.slane %v1510_v39, 4  ;;  %v1519_v54 = vshll.u32 %v1180_v25, 16  ;;  %v1523_v56 = vshrl.u32 %v1180_v25, 16  ;;  %v1186_v32 = vld [vmem:[%s14053_s21 + $0xa0] sm:$0xf] }
  0xd4   : > { %v6503_v2 = vsel %vm14324_vm7, %v6501_v28, %v6502_v48  ;;  %v1529_v38 = vshll.u32 %v1181_v37, 16  ;;  %v1508_v62 = vsel %vm14159_vm4, %v1503_v49, %v1507_v8  ;;  %v11566_v23 = vrot.slane %v11520_v53, 9  ;;  %v1187_v25 = vld [vmem:[%s14053_s21 + $0xa4] sm:$0x1]  ;;  %v11526_v39 = vld [vmem:[%s14053_s21 + $0x168] sm:$0xe] }
  0xd5   : > { %12508 = vmatmul.mubr.msk.bf16.gmra.mrb[16].mxu1 %vm628_vm1, %v11003_v18  ;;  %v1493_v40 = vrot.slane %v1492_v58, 4  ;;  %v11598_v3 = vcombine.low %v6500_v45, %v6503_v2  ;;  %v1521_v4 = vrot.slane %v1519_v54, 5  ;;  %v1525_v5 = vrot.slane %v1523_v56, 4  ;;  %v14831_v53 = vld [vmem:[%s14058_s24 + $0xe] sm:$0x3] }
  0xd6   : > { %v6506_v55 = vrot.slane %v11521_v26, 5  ;;  %v6509_v0 = vrot.slane %v11522_v36, 5  ;;  %v1534_v1 = vshrl.u32 %v1182_v61, 16  ;;  %v1537_v52 = vshll.u32 %v1182_v61, 16  ;;  %v11527_v26 = vld [vmem:[%s14053_s21 + $0x16c] sm:$0xf]  ;;  %13859 = vmatprep.subr.msk.bf16.mxu0 %vm725_vm0, %v14831_v53 }
  0xd7   : > { %12796 = vmatmul.mubr.msk.bf16.gmra.mrb[40].mxu0 %vm628_vm1, %v11595_v59  ;;  %v1498_v15 = vsel %vm14159_vm4, %v1493_v40, %v1497_v51  ;;  %v1515_v59 = vrot.slane %v1513_v43, 5  ;;  %v1526_v13 = vor.u32 %v1525_v5, %v1521_v4  ;;  %v1543_v10 = vshll.u32 %v1183_v6, 16  ;;  %v11528_v36 = vld [vmem:[%s14053_s21 + $0x170] sm:$0x1]  ;;  %v1188_v61 = vld [vmem:[%s14053_s21 + $0xa8] sm:$0xf] }
  0xd8   : > { %12799 = vmatprep.mubr.msk.bf16.mxu0 %vm628_vm1, %v11596_v16  ;;  %v11004_v12 = vcombine.low %v1498_v15, %v1508_v62  ;;  %v1531_v16 = vrot.slane %v1529_v38, 5  ;;  %v1547_v19 = vshrl.u32 %v1183_v6, 16  ;;  %v6507_v63 = vsel %vm14324_vm7, %v11566_v23, %v6506_v55  ;;  %v1189_v23 = vld [vmem:[%s14053_s21 + $0xac] sm:$0xf] }
  0xd9   : > { %v1516_v11 = vor.u32 %v1515_v59, %v1512_v50  ;;  %v1527_v57 = vrot.slane %v1526_v13, 4  ;;  %v6508_v21 = vrot.slane %v6506_v55, 4  ;;  %v1536_v33 = vrot.slane %v1534_v1, 4 }
  0xda   : > { %12511 = vmatprep.mubr.msk.bf16.mxu1 %vm628_vm1, %v11004_v12  ;;  %v1539_v35 = vrot.slane %v1537_v52, 5  ;;  %v1545_v51 = vrot.slane %v1543_v10, 5  ;;  %v1549_v27 = vrot.slane %v1547_v19, 4  ;;  %v1553_v31 = vshll.u32 %v1184_v14, 16  ;;  %v1190_v14 = vld [vmem:[%s14053_s21 + $0xb0] sm:$0x1] }
  0xdb   : > { %v1517_v24 = vrot.slane %v1516_v11, 4  ;;  %v1532_v22 = vsel %vm14159_vm4, %v1527_v57, %v1531_v16  ;;  %v6510_v18 = vsel %vm14324_vm7, %v6508_v21, %v6509_v0  ;;  %v11567_v60 = vrot.slane %v11523_v17, 9  ;;  %v11529_v17 = vld [vmem:[%s14053_s21 + $0x174] sm:$0xe] }
  0xdc   : > { %v11599_v58 = vcombine.low %v6507_v63, %v6510_v18  ;;  %v1540_v29 = vor.u32 %v1539_v35, %v1536_v33  ;;  %v1550_v30 = vor.u32 %v1549_v27, %v1545_v51  ;;  %v1555_v46 = vrot.slane %v1553_v31, 5  ;;  %v1191_v27 = vld [vmem:[%s14053_s21 + $0xb4] sm:$0xf] }
  0xdd   : > { %v1522_v7 = vsel %vm14159_vm4, %v1517_v24, %v1521_v4  ;;  %v6513_v8 = vrot.slane %v11524_v20, 5  ;;  %v6516_v48 = vrot.slane %v11525_v44, 5  ;;  %v1558_v37 = vshrl.u32 %v1185_v47, 16  ;;  %v11530_v20 = vld [vmem:[%s14053_s21 + $0x178] sm:$0xf] }
  0xde   : > { %v1541_v40 = vrot.slane %v1540_v29, 4  ;;  %v1551_v45 = vrot.slane %v1550_v30, 4  ;;  %v1561_v28 = vshll.u32 %v1185_v47, 16  ;;  %v1567_v43 = vshll.u32 %v1186_v32, 16 }
  0xdf   : > { %12800 = vmatmul.mubr.msk.bf16.gmra.mrb[44].mxu0 %vm628_vm1, %v11597_v42  ;;  %v11005_v42 = vcombine.low %v1522_v7, %v1532_v22  ;;  %v6514_v49 = vsel %vm14324_vm7, %v11567_v60, %v6513_v8  ;;  %v6515_v50 = vrot.slane %v6513_v8, 4  ;;  %v1560_v54 = vrot.slane %v1558_v37, 4 }
  0xe0   : > { %12803 = vmatprep.mubr.msk.bf16.mxu0 %vm628_vm1, %v11598_v3  ;;  %v1571_v56 = vshrl.u32 %v1186_v32, 16  ;;  %v1546_v15 = vsel %vm14159_vm4, %v1541_v40, %v1545_v51  ;;  %v1556_v2 = vsel %vm14159_vm4, %v1551_v45, %v1555_v46  ;;  %v1563_v59 = vrot.slane %v1561_v28, 5  ;;  %v11531_v51 = vld [vmem:[%s14053_s21 + $0x17c] sm:$0x1]  ;;  %v1192_v32 = vld [vmem:[%s14053_s21 + $0xb8] sm:$0xf] }
  0xe1   : > { %12512 = vmatmul.mubr.msk.bf16.gmra.mrb[20].mxu1 %vm628_vm1, %v11005_v42  ;;  %v1569_v38 = vrot.slane %v1567_v43, 5  ;;  %v11006_v62 = vcombine.low %v1546_v15, %v1556_v2  ;;  %v6517_v3 = vsel %vm14324_vm7, %v6515_v50, %v6516_v48  ;;  %v1577_v5 = vshll.u32 %v1187_v25, 16  ;;  %v1193_v25 = vld [vmem:[%s14053_s21 + $0xbc] sm:$0x1]  ;;  %v11534_v50 = vld [vmem:[%s14053_s21 + $0x188] sm:$0x1] }
  0xe2   : > { %v1573_v4 = vrot.slane %v1571_v56, 4  ;;  %v11600_v6 = vcombine.low %v6514_v49, %v6517_v3  ;;  %v1564_v12 = vor.u32 %v1563_v59, %v1560_v54  ;;  %v11568_v11 = vrot.slane %v11526_v39, 9  ;;  %v11532_v39 = vld [vmem:[%s14053_s21 + $0x180] sm:$0xe]  ;;  %v11533_v49 = vld [vmem:[%s14053_s21 + $0x184] sm:$0xf] }
  0xe3   : > { %v6520_v16 = vrot.slane %v11527_v26, 5  ;;  %12515 = vmatprep.mubr.msk.bf16.mxu1 %vm628_vm1, %v11006_v62  ;;  %v1579_v55 = vrot.slane %v1577_v5, 5  ;;  %v6523_v0 = vrot.slane %v11528_v36, 5  ;;  %v1582_v1 = vshrl.u32 %v1188_v61, 16  ;;  %v1194_v54 = vld [vmem:[%s14053_s21 + $0xd8] sm:$0xf] }
  0xe4   : > { %v1574_v13 = vor.u32 %v1573_v4, %v1569_v38  ;;  %v1565_v24 = vrot.slane %v1564_v12, 4  ;;  %v1585_v19 = vshll.u32 %v1188_v61, 16  ;;  %v1591_v63 = vshll.u32 %v1189_v23, 16 }
  0xe5   : > { %v6521_v52 = vsel %vm14324_vm7, %v11568_v11, %v6520_v16  ;;  %v6522_v10 = vrot.slane %v6520_v16, 4  ;;  %v1584_v57 = vrot.slane %v1582_v1, 4  ;;  %v1595_v21 = vshrl.u32 %v1189_v23, 16 }
  0xe6   : > { %v1575_v44 = vrot.slane %v1574_v13, 4  ;;  %v1570_v33 = vsel %vm14159_vm4, %v1565_v24, %v1569_v38  ;;  %v1587_v7 = vrot.slane %v1585_v19, 5  ;;  %v1601_v35 = vshll.u32 %v1190_v14, 16  ;;  %v1196_v14 = vld [vmem:[%s14053_s21 + $0xe0] sm:$0x1] }
  0xe7   : > { %12804 = vmatmul.mubr.msk.bf16.gmra.mrb[48].mxu0 %vm628_vm1, %v11599_v58  ;;  %v6524_v47 = vsel %vm14324_vm7, %v6522_v10, %v6523_v0  ;;  %v1593_v31 = vrot.slane %v1591_v63, 5  ;;  %v1597_v60 = vrot.slane %v1595_v21, 4  ;;  %v11569_v30 = vrot.slane %v11529_v17, 9  ;;  %v11535_v17 = vld [vmem:[%s14053_s21 + $0x18c] sm:$0xe] }
  0xe8   : > { %12807 = vmatprep.mubr.msk.bf16.mxu0 %vm628_vm1, %v11600_v6  ;;  %v1580_v22 = vsel %vm14159_vm4, %v1575_v44, %v1579_v55  ;;  %v11601_v18 = vcombine.low %v6521_v52, %v6524_v47  ;;  %v1588_v58 = vor.u32 %v1587_v7, %v1584_v57  ;;  %v1603_v29 = vrot.slane %v1601_v35, 5  ;;  %v1195_v6 = vld [vmem:[%s14053_s21 + $0xdc] sm:$0xf]  ;;  %v11536_v24 = vld [vmem:[%s14053_s21 + $0x190] sm:$0xf] }
  0xe9   : > { %v11007_v42 = vcombine.low %v1570_v33, %v1580_v22  ;;  %v1598_v46 = vor.u32 %v1597_v60, %v1593_v31  ;;  %v6527_v8 = vrot.slane %v11530_v20, 5  ;;  %v6530_v48 = vrot.slane %v11531_v51, 5  ;;  %v11537_v44 = vld [vmem:[%s14053_s21 + $0x194] sm:$0x1]  ;;  %v1197_v47 = vld [vmem:[%s14053_s21 + $0xe4] sm:$0xf] }
  0xea   : > { %v1606_v37 = vshrl.u32 %v1191_v27, 16  ;;  %v1589_v40 = vrot.slane %v1588_v58, 4  ;;  %v1609_v45 = vshll.u32 %v1191_v27, 16  ;;  %v1615_v28 = vshll.u32 %v1192_v32, 16 }
  0xeb   : > { %12516 = vmatmul.mubr.msk.bf16.gmra.mrb[24].mxu1 %vm628_vm1, %v11007_v42  ;;  %v1619_v43 = vshrl.u32 %v1192_v32, 16  ;;  %v1599_v56 = vrot.slane %v1598_v46, 4  ;;  %v6528_v26 = vsel %vm14324_vm7, %v11569_v30, %v6527_v8  ;;  %v6529_v15 = vrot.slane %v6527_v8, 4  ;;  %v1198_v32 = vld [vmem:[%s14053_s21 + $0xe8] sm:$0xf] }
  0xec   : > { %v1608_v2 = vrot.slane %v1606_v37, 4  ;;  %v1594_v59 = vsel %vm14159_vm4, %v1589_v40, %v1593_v31  ;;  %v1611_v38 = vrot.slane %v1609_v45, 5  ;;  %v1617_v36 = vrot.slane %v1615_v28, 5 }
  0xed   : > { %v1621_v61 = vrot.slane %v1619_v43, 4  ;;  %v1604_v62 = vsel %vm14159_vm4, %v1599_v56, %v1603_v29  ;;  %v6531_v3 = vsel %vm14324_vm7, %v6529_v15, %v6530_v48  ;;  %v1625_v4 = vshll.u32 %v1193_v25, 16  ;;  %v1199_v25 = vld [vmem:[%s14053_s21 + $0xec] sm:$0x1]  ;;  %v11540_v15 = vld [vmem:[%s14053_s21 + $0x1a0] sm:$0x1] }
  0xee   : > { %v11570_v5 = vrot.slane %v11532_v39, 9  ;;  %v11008_v12 = vcombine.low %v1594_v59, %v1604_v62  ;;  %v11602_v11 = vcombine.low %v6528_v26, %v6531_v3  ;;  %v1612_v16 = vor.u32 %v1611_v38, %v1608_v2  ;;  %v11538_v39 = vld [vmem:[%s14053_s21 + $0x198] sm:$0xe] }
  0xef   : > { %12808 = vmatmul.mubr.msk.bf16.gmra.mrb[52].mxu0 %vm628_vm1, %v11601_v18  ;;  %v1622_v23 = vor.u32 %v1621_v61, %v1617_v36  ;;  %v1627_v13 = vrot.slane %v1625_v4, 5  ;;  %v6534_v55 = vrot.slane %v11533_v49, 5  ;;  %v6537_v0 = vrot.slane %v11534_v50, 5  ;;  %v11539_v49 = vld [vmem:[%s14053_s21 + $0x19c] sm:$0xf] }
  0xf0   : > { %v1630_v1 = vshrl.u32 %v1194_v54, 16  ;;  %12519 = vmatprep.mubr.msk.bf16.mxu1 %vm628_vm1, %v11008_v12  ;;  %12811 = vmatprep.mubr.msk.bf16.mxu0 %vm628_vm1, %v11602_v11  ;;  %v1613_v52 = vrot.slane %v1612_v16, 4  ;;  %v1633_v19 = vshll.u32 %v1194_v54, 16  ;;  %v1639_v20 = vshll.u32 %v1195_v6, 16  ;;  %v1200_v61 = vld [vmem:[%s14053_s21 + $0xf0] sm:$0xf] }
  0xf1   : > { %v1623_v10 = vrot.slane %v1622_v23, 4  ;;  %v6535_v57 = vsel %vm14324_vm7, %v11570_v5, %v6534_v55  ;;  %v6536_v63 = vrot.slane %v6534_v55, 4  ;;  %v1643_v33 = vshrl.u32 %v1195_v6, 16  ;;  %v1201_v6 = vld [vmem:[%s14053_s21 + $0xf4] sm:$0xf] }
  0xf2   : > { %v1632_v21 = vrot.slane %v1630_v1, 4  ;;  %v1618_v7 = vsel %vm14159_vm4, %v1613_v52, %v1617_v36  ;;  %v1635_v51 = vrot.slane %v1633_v19, 5  ;;  %v1641_v27 = vrot.slane %v1639_v20, 5 }
  0xf3   : > { %v1628_v35 = vsel %vm14159_vm4, %v1623_v10, %v1627_v13  ;;  %v6538_v18 = vsel %vm14324_vm7, %v6536_v63, %v6537_v0  ;;  %v1645_v31 = vrot.slane %v1643_v33, 4  ;;  %v1649_v60 = vshll.u32 %v1196_v14, 16  ;;  %v1202_v14 = vld [vmem:[%s14053_s21 + $0xf8] sm:$0x1]  ;;  %v1203_v13 = vld [vmem:[%s14053_s21 + $0xfc] sm:$0xf] }
  0xf4   : > { %v11009_v22 = vcombine.low %v1618_v7, %v1628_v35  ;;  %v11603_v42 = vcombine.low %v6535_v57, %v6538_v18  ;;  %v1636_v58 = vor.u32 %v1635_v51, %v1632_v21  ;;  %v11571_v29 = vrot.slane %v11535_v17, 9  ;;  %v13919_v35 = vld [vmem:[%s14053_s21 + $0x18] sm:$0xff]   ;;  %v1204_v51 = vld [vmem:[%s14053_s21 + $0x100] sm:$0xf] }
  0xf5   : > { %v6541_v30 = vrot.slane %v11536_v24, 5  ;;  %v1646_v46 = vor.u32 %v1645_v31, %v1641_v27  ;;  %v1651_v8 = vrot.slane %v1649_v60, 5  ;;  %v6544_v48 = vrot.slane %v11537_v44, 5  ;;  %v1205_v31 = vld [vmem:[%s14053_s21 + $0x104] sm:$0x1] }
  0xf6   : > { %12520 = vmatmul.mubr.msk.bf16.gmra.mrb[28].mxu1 %vm628_vm1, %v11009_v22  ;;  %v1654_v37 = vshrl.u32 %v1197_v47, 16  ;;  %v1637_v40 = vrot.slane %v1636_v58, 4  ;;  %v1657_v43 = vshll.u32 %v1197_v47, 16  ;;  %v1663_v56 = vshll.u32 %v1198_v32, 16 }
  0xf7   : > { %12812 = vmatmul.mubr.msk.bf16.gmra.mrb[56].mxu0 %vm628_vm1, %v11603_v42  ;;  %v6542_v45 = vsel %vm14324_vm7, %v11571_v29, %v6541_v30  ;;  %v6543_v28 = vrot.slane %v6541_v30, 4  ;;  %v1647_v50 = vrot.slane %v1646_v46, 4  ;;  %v1667_v26 = vshrl.u32 %v1198_v32, 16  ;;  %v1206_v30 = vld [vmem:[%s14053_s21 + $0x108] sm:$0xf] }
  0xf8   : > { %v1656_v54 = vrot.slane %v1654_v37, 4  ;;  %v1642_v2 = vsel %vm14159_vm4, %v1637_v40, %v1641_v27  ;;  %v1659_v38 = vrot.slane %v1657_v43, 5  ;;  %v1673_v36 = vshll.u32 %v1199_v25, 16  ;;  %v1207_v37 = vld [vmem:[%s14053_s21 + $0x10c] sm:$0xf] }
  0xf9   : > { %v6545_v59 = vsel %vm14324_vm7, %v6543_v28, %v6544_v48  ;;  %v1652_v62 = vsel %vm14159_vm4, %v1647_v50, %v1651_v8  ;;  %v1665_v4 = vrot.slane %v1663_v56, 5  ;;  %v1669_v5 = vrot.slane %v1667_v26, 4 }
  0xfa   : > { %v11604_v3 = vcombine.low %v6542_v45, %v6545_v59  ;;  %v11010_v12 = vcombine.low %v1642_v2, %v1652_v62  ;;  %v1660_v11 = vor.u32 %v1659_v38, %v1656_v54  ;;  %v1675_v16 = vrot.slane %v1673_v36, 5  ;;  %v1209_v38 = vld [vmem:[%s14053_s21 + $0x114] sm:$0xf]  ;;  %v13920_v62 = vld [vmem:[%s14053_s21 + $0x24] sm:$0xff]  }
  0xfb   : > { %v11572_v23 = vrot.slane %v11538_v39, 9  ;;  %v1670_v55 = vor.u32 %v1669_v5, %v1665_v4  ;;  %v6548_v0 = vrot.slane %v11539_v49, 5  ;;  %v6551_v1 = vrot.slane %v11540_v15, 5  ;;  %v1208_v39 = vld [vmem:[%s14053_s21 + $0x110] sm:$0x1] }
  0xfc   : > { %12815 = vmatprep.mubr.msk.bf16.mxu0 %vm628_vm1, %v11604_v3  ;;  %v1678_v17 = vshrl.u32 %v1200_v61, 16  ;;  %12523 = vmatprep.mubr.msk.bf16.mxu1 %vm628_vm1, %v11010_v12  ;;  %v1661_v24 = vrot.slane %v1660_v11, 4  ;;  %v1681_v52 = vshll.u32 %v1200_v61, 16  ;;  %v1687_v10 = vshll.u32 %v1201_v6, 16  ;;  %v13921_v11 = vld [vmem:[%s14053_s21 + $0x30] sm:$0xff]  }
  0xfd   : > { %v1691_v19 = vshrl.u32 %v1201_v6, 16  ;;  %v1671_v20 = vrot.slane %v1670_v55, 4  ;;  %v6549_v44 = vsel %vm14324_vm7, %v11572_v23, %v6548_v0  ;;  %v6550_v57 = vrot.slane %v6548_v0, 4 }
  0xfe   : > { %v1680_v63 = vrot.slane %v1678_v17, 4  ;;  %v1666_v21 = vsel %vm14159_vm4, %v1661_v24, %v1665_v4  ;;  %v1683_v33 = vrot.slane %v1681_v52, 5  ;;  %v1689_v47 = vrot.slane %v1687_v10, 5  ;;  %v1211_v52 = vld [vmem:[%s14053_s21 + $0x11c] sm:$0x1] }
  0xff   : > { %v1693_v7 = vrot.slane %v1691_v19, 4  ;;  %v1676_v27 = vsel %vm14159_vm4, %v1671_v20, %v1675_v16  ;;  %v6552_v22 = vsel %vm14324_vm7, %v6550_v57, %v6551_v1  ;;  %v1697_v18 = vshll.u32 %v1202_v14, 16  ;;  %v1210_v14 = vld [vmem:[%s14053_s21 + $0x118] sm:$0xf]  ;;  %v1212_v57 = vld [vmem:[%s14053_s21 + $0x120] sm:$0xf] }
 0x100   : > { %v1702_v60 = vshrl.u32 %v1203_v13, 16  ;;  %v11011_v32 = vcombine.low %v1666_v21, %v1676_v27  ;;  %v11605_v42 = vcombine.low %v6549_v44, %v6552_v22  ;;  %v1684_v58 = vor.u32 %v1683_v33, %v1680_v63 }
 0x101   : > { %v1694_v29 = vor.u32 %v1693_v7, %v1689_v47  ;;  %v1699_v25 = vrot.slane %v1697_v18, 5  ;;  %v1705_v8 = vshll.u32 %v1203_v13, 16  ;;  %v1711_v48 = vshll.u32 %v1204_v51, 16  ;;  %v1213_v7 = vld [vmem:[%s14053_s21 + $0x124] sm:$0xf] }
 0x102   : > { %v1704_v46 = vrot.slane %v1702_v60, 4  ;;  %12524 = vmatmul.mubr.msk.bf16.gmra.mrb[32].mxu1 %vm628_vm1, %v11011_v32  ;;  %12816 = vmatmul.mubr.msk.bf16.gmra.mrb[60].mxu0 %vm628_vm1, %v11605_v42  ;;  %v1685_v40 = vrot.slane %v1684_v58, 4  ;;  %v1715_v28 = vshrl.u32 %v1204_v51, 16  ;;  %v1721_v43 = vshll.u32 %v1205_v31, 16  ;;  %v1214_v18 = vld [vmem:[%s14053_s21 + $0x128] sm:$0x1] }
 0x103   : > { %v1695_v45 = vrot.slane %v1694_v29, 4  ;;  %12821 = vmatprep.mubr.msk.bf16.mxu0 %vm628_vm1, %v13919_v35  ;;  %v1707_v49 = vrot.slane %v1705_v8, 5  ;;  %v1713_v50 = vrot.slane %v1711_v48, 5  ;;  %v9161_v54 = vsel %vm725_vm0, %v14831_v53, 0  ;;  %v1215_v31 = vld [vmem:[%s14053_s21 + $0x12c] sm:$0xf] }
 0x104   : > { %v1726_v56 = vshrl.u32 %v1206_v30, 16  ;;  %v1690_v26 = vsel %vm14159_vm4, %v1685_v40, %v1689_v47  ;;  %v1717_v2 = vrot.slane %v1715_v28, 4  ;;  %v1723_v59 = vrot.slane %v1721_v43, 5  ;;  %v13922_v58 = vld [vmem:[%s14053_s21 + $0x3c] sm:$0xff]   ;;  %v1216_v43 = vld [vmem:[%s14053_s21 + $0x130] sm:$0xf] }
 0x105   : > { %v1700_v15 = vsel %vm14159_vm4, %v1695_v45, %v1699_v25  ;;  %v1708_v61 = vor.u32 %v1707_v49, %v1704_v46  ;;  %v1729_v4 = vshll.u32 %v1206_v30, 16  ;;  %v1735_v53 = vshll.u32 %v1207_v37, 16  ;;  %v14957_v30 = vld [vmem:[%s14058_s24 + $0x6] sm:$0x3] }
 0x106   : > { %v11012_v36 = vcombine.low %v1690_v26, %v1700_v15  ;;  %v1728_v3 = vrot.slane %v1726_v56, 4  ;;  %v1718_v5 = vor.u32 %v1717_v2, %v1713_v50  ;;  %v1739_v6 = vshrl.u32 %v1207_v37, 16  ;;  %v13923_v37 = vld [vmem:[%s14053_s21 + $0x48] sm:$0xff]   ;;  %13854 = vmatprep.subr.msk.bf16.mxu1 %vm725_vm0, %v14957_v30  ;;  %v1217_v26 = vld [vmem:[%s14053_s21 + $0x134] sm:$0x1] }
 0x107   : > { %v1745_v12 = vshll.u32 %v1208_v39, 16  ;;  %v1709_v16 = vrot.slane %v1708_v61, 4  ;;  %v1731_v23 = vrot.slane %v1729_v4, 5  ;;  %v1750_v13 = vshrl.u32 %v1209_v38, 16  ;;  %v1218_v15 = vld [vmem:[%s14053_s21 + $0x138] sm:$0xf] }
 0x108   : > { %12527 = vmatprep.mubr.msk.bf16.mxu1 %vm628_vm1, %v11012_v36  ;;  %v1753_v55 = vshll.u32 %v1209_v38, 16  ;;  %v1719_v0 = vrot.slane %v1718_v5, 4  ;;  %v1737_v1 = vrot.slane %v1735_v53, 5  ;;  %v1741_v17 = vrot.slane %v1739_v6, 4 }
 0x109   : > { %v1747_v24 = vrot.slane %v1745_v12, 5  ;;  %v1714_v10 = vsel %vm14159_vm4, %v1709_v16, %v1713_v50  ;;  %v1732_v19 = vor.u32 %v1731_v23, %v1728_v3  ;;  %v1752_v20 = vrot.slane %v1750_v13, 4  ;;  %v1219_v13 = vld [vmem:[%s14053_s21 + $0x13c] sm:$0xf] }
 0x10a   : > { %v1755_v44 = vrot.slane %v1753_v55, 5  ;;  %v1724_v63 = vsel %vm14159_vm4, %v1719_v0, %v1723_v59  ;;  %12822 = vmatmul.mubr.msk.bf16.vlgmr.msra.gmra.mrb[0].mxu0 %vm628_vm1, %v13920_v62  ;;  %v1742_v21 = vor.u32 %v1741_v17, %v1737_v1  ;;  %v1759_v33 = vshll.u32 %v1210_v14, 16 }
 0x10b   : > { %v1763_v47 = vshrl.u32 %v1210_v14, 16  ;;  %v11013_v35 = vcombine.low %v1714_v10, %v1724_v63  ;;  %12886 = vmatpush3.bf16.msra.mxu0 %v9161_v54  ;;  %v1733_v51 = vrot.slane %v1732_v19, 4  ;;  %12825 = vmatprep.mubr.msk.bf16.mxu0 %vm628_vm1, %v13921_v11  ;;  %v1769_v22 = vshll.u32 %v1211_v52, 16  ;;  %v1220_v19 = vld [vmem:[%s14053_s21 + $0x140] sm:$0x1]  ;;  %v13924_v63 = vld [vmem:[%s14053_s21 + $0x54] sm:$0xff]  }
 0x10c   : > { %v1756_v27 = vor.u32 %v1755_v44, %v1752_v20  ;;  %v1743_v60 = vrot.slane %v1742_v21, 4  ;;  %v1761_v32 = vrot.slane %v1759_v33, 5  ;;  %v1774_v29 = vshrl.u32 %v1212_v57, 16 }
 0x10d   : > { %v1765_v42 = vrot.slane %v1763_v47, 4  ;;  %12528 = vmatmul.mubr.msk.bf16.gmra.mrb[36].mxu1 %vm628_vm1, %v11013_v35  ;;  %v1738_v25 = vsel %vm14159_vm4, %v1733_v51, %v1737_v1  ;;  %v1771_v8 = vrot.slane %v1769_v22, 5  ;;  %v1777_v48 = vshll.u32 %v1212_v57, 16  ;;  %v1221_v47 = vld [vmem:[%s14053_s21 + $0x144] sm:$0xf] }
 0x10e   : > { %v1757_v46 = vrot.slane %v1756_v27, 4  ;;  %v1748_v39 = vsel %vm14159_vm4, %v1743_v60, %v1747_v24  ;;  %v1776_v45 = vrot.slane %v1774_v29, 4  ;;  %v1783_v28 = vshll.u32 %v1213_v7, 16  ;;  %v13925_v22 = vld [vmem:[%s14053_s21 + $0x60] sm:$0xff]  }
 0x10f   : > { %v1766_v40 = vor.u32 %v1765_v42, %v1761_v32  ;;  %v11014_v49 = vcombine.low %v1738_v25, %v1748_v39  ;;  %v1779_v54 = vrot.slane %v1777_v48, 5  ;;  %v1787_v56 = vshrl.u32 %v1213_v7, 16 }
 0x110   : > { %v1762_v50 = vsel %vm14159_vm4, %v1757_v46, %v1761_v32  ;;  %v1785_v59 = vrot.slane %v1783_v28, 5  ;;  %v1793_v38 = vshll.u32 %v1214_v18, 16  ;;  %v1798_v36 = vshrl.u32 %v1215_v31, 16  ;;  %v1222_v18 = vld [vmem:[%s14053_s21 + $0x148] sm:$0xf] }
 0x111   : > { %v1767_v2 = vrot.slane %v1766_v40, 4  ;;  %12531 = vmatprep.mubr.msk.bf16.mxu1 %vm628_vm1, %v11014_v49  ;;  %v1780_v61 = vor.u32 %v1779_v54, %v1776_v45  ;;  %v1789_v62 = vrot.slane %v1787_v56, 4  ;;  %v1801_v3 = vshll.u32 %v1215_v31, 16  ;;  %v1223_v46 = vld [vmem:[%s14053_s21 + $0x14c] sm:$0x1] }
 0x112   : > { %v1807_v4 = vshll.u32 %v1216_v43, 16  ;;  %12826 = vmatmul.mubr.msk.bf16.gmra.mrb[4].mxu0 %vm628_vm1, %v13922_v58  ;;  %v1795_v53 = vrot.slane %v1793_v38, 5  ;;  %v1800_v6 = vrot.slane %v1798_v36, 4  ;;  %v1811_v12 = vshrl.u32 %v1216_v43, 16  ;;  %v1224_v45 = vld [vmem:[%s14053_s21 + $0x150] sm:$0xf] }
 0x113   : > { %v1772_v5 = vsel %vm14159_vm4, %v1767_v2, %v1771_v8  ;;  %v1781_v16 = vrot.slane %v1780_v61, 4  ;;  %v1790_v23 = vor.u32 %v1789_v62, %v1785_v59  ;;  %12829 = vmatprep.mubr.msk.bf16.mxu0 %vm628_vm1, %v13923_v37  ;;  %v1803_v14 = vrot.slane %v1801_v3, 5  ;;  %v1225_v54 = vld [vmem:[%s14053_s21 + $0x154] sm:$0xf]  ;;  %v1226_v36 = vld [vmem:[%s14053_s21 + $0x158] sm:$0x1] }
 0x114   : > { %v11015_v11 = vcombine.low %v1762_v50, %v1772_v5  ;;  %v1809_v55 = vrot.slane %v1807_v4, 5  ;;  %v1813_v0 = vrot.slane %v1811_v12, 4  ;;  %v1817_v1 = vshll.u32 %v1217_v26, 16  ;;  %v1227_v12 = vld [vmem:[%s14053_s21 + $0x15c] sm:$0xf] }
 0x115   : > { %v1822_v17 = vshrl.u32 %v1218_v15, 16  ;;  %v1786_v24 = vsel %vm14159_vm4, %v1781_v16, %v1785_v59  ;;  %v1791_v52 = vrot.slane %v1790_v23, 4  ;;  %v1804_v10 = vor.u32 %v1803_v14, %v1800_v6 }
 0x116   : > { %12532 = vmatmul.mubr.msk.bf16.gmra.mrb[40].mxu1 %vm628_vm1, %v11015_v11  ;;  %v1825_v20 = vshll.u32 %v1218_v15, 16  ;;  %v1814_v44 = vor.u32 %v1813_v0, %v1809_v55  ;;  %v1819_v57 = vrot.slane %v1817_v1, 5  ;;  %v1831_v33 = vshll.u32 %v1219_v13, 16 }
 0x117   : > { %v1824_v21 = vrot.slane %v1822_v17, 4  ;;  %v1796_v7 = vsel %vm14159_vm4, %v1791_v52, %v1795_v53  ;;  %v1805_v35 = vrot.slane %v1804_v10, 4  ;;  %v1835_v27 = vshrl.u32 %v1219_v13, 16  ;;  %v13926_v53 = vld [vmem:[%s14053_s21 + $0x6c] sm:$0xff]   ;;  %v13927_v13 = vld [vmem:[%s14053_s21 + $0x78] sm:$0xff]  }
 0x118   : > { %v1827_v51 = vrot.slane %v1825_v20, 5  ;;  %v11016_v31 = vcombine.low %v1786_v24, %v1796_v7  ;;  %v1815_v60 = vrot.slane %v1814_v44, 4  ;;  %v1833_v32 = vrot.slane %v1831_v33, 5  ;;  %v1229_v20 = vld [vmem:[%s14053_s21 + $0x164] sm:$0x1] }
 0x119   : > { %v1841_v42 = vshll.u32 %v1220_v19, 16  ;;  %v1810_v58 = vsel %vm14159_vm4, %v1805_v35, %v1809_v55  ;;  %v1837_v25 = vrot.slane %v1835_v27, 4  ;;  %v1846_v8 = vshrl.u32 %v1221_v47, 16  ;;  %v1228_v55 = vld [vmem:[%s14053_s21 + $0x160] sm:$0xf] }
 0x11a   : > { %v1828_v29 = vor.u32 %v1827_v51, %v1824_v21  ;;  %12535 = vmatprep.mubr.msk.bf16.mxu1 %vm628_vm1, %v11016_v31  ;;  %v1820_v48 = vsel %vm14159_vm4, %v1815_v60, %v1819_v57  ;;  %12830 = vmatmul.mubr.msk.bf16.gmra.mrb[8].mxu0 %vm628_vm1, %v13924_v63  ;;  %v1849_v39 = vshll.u32 %v1221_v47, 16  ;;  %v1855_v40 = vshll.u32 %v1222_v18, 16  ;;  %v1230_v47 = vld [vmem:[%s14053_s21 + $0x168] sm:$0xf] }
 0x11b   : > { %v1843_v37 = vrot.slane %v1841_v42, 5  ;;  %v11017_v28 = vcombine.low %v1810_v58, %v1820_v48  ;;  %v1838_v49 = vor.u32 %v1837_v25, %v1833_v32  ;;  %12833 = vmatprep.mubr.msk.bf16.mxu0 %vm628_vm1, %v13925_v22  ;;  %v1848_v50 = vrot.slane %v1846_v8, 4  ;;  %v1231_v22 = vld [vmem:[%s14053_s21 + $0x16c] sm:$0xf] }
 0x11c   : > { %v1829_v43 = vrot.slane %v1828_v29, 4  ;;  %v1851_v56 = vrot.slane %v1849_v39, 5  ;;  %v1857_v26 = vrot.slane %v1855_v40, 5  ;;  %v1859_v15 = vshrl.u32 %v1222_v18, 16 }
 0x11d   : > { %v1865_v2 = vshll.u32 %v1223_v46, 16  ;;  %v1839_v38 = vrot.slane %v1838_v49, 4  ;;  %v1870_v61 = vshrl.u32 %v1224_v45, 16  ;;  %v1873_v62 = vshll.u32 %v1224_v45, 16  ;;  %v1232_v46 = vld [vmem:[%s14053_s21 + $0x170] sm:$0x1] }
 0x11e   : > { %12536 = vmatmul.mubr.msk.bf16.gmra.mrb[44].mxu1 %vm628_vm1, %v11017_v28  ;;  %v1834_v59 = vsel %vm14159_vm4, %v1829_v43, %v1833_v32  ;;  %v1852_v3 = vor.u32 %v1851_v56, %v1848_v50  ;;  %v1861_v4 = vrot.slane %v1859_v15, 4  ;;  %v1879_v6 = vshll.u32 %v1225_v54, 16  ;;  %v1233_v45 = vld [vmem:[%s14053_s21 + $0x174] sm:$0xf]  ;;  %v1234_v56 = vld [vmem:[%s14053_s21 + $0x178] sm:$0xf] }
 0x11f   : > { %v1867_v5 = vrot.slane %v1865_v2, 5  ;;  %v1844_v11 = vsel %vm14159_vm4, %v1839_v38, %v1843_v37  ;;  %v1872_v16 = vrot.slane %v1870_v61, 4  ;;  %v1875_v23 = vrot.slane %v1873_v62, 5  ;;  %v13928_v37 = vld [vmem:[%s14053_s21 + $0x84] sm:$0xff]  }
 0x120   : > { %v1883_v14 = vshrl.u32 %v1225_v54, 16  ;;  %v11018_v0 = vcombine.low %v1834_v59, %v1844_v11  ;;  %v1853_v1 = vrot.slane %v1852_v3, 4  ;;  %v1862_v17 = vor.u32 %v1861_v4, %v1857_v26  ;;  %v13929_v54 = vld [vmem:[%s14053_s21 + $0x90] sm:$0xff]   ;;  %v1235_v3 = vld [vmem:[%s14053_s21 + $0x17c] sm:$0x1] }
 0x121   : > { %v1881_v24 = vrot.slane %v1879_v6, 5  ;;  %v1876_v52 = vor.u32 %v1875_v23, %v1872_v16  ;;  %v1889_v19 = vshll.u32 %v1226_v36, 16  ;;  %v1894_v44 = vshrl.u32 %v1227_v12, 16 }
 0x122   : > { %v1885_v10 = vrot.slane %v1883_v14, 4  ;;  %12539 = vmatprep.mubr.msk.bf16.mxu1 %vm628_vm1, %v11018_v0  ;;  %v1858_v57 = vsel %vm14159_vm4, %v1853_v1, %v1857_v26  ;;  %v1863_v63 = vrot.slane %v1862_v17, 4  ;;  %12834 = vmatmul.mubr.msk.bf16.gmra.mrb[12].mxu0 %vm628_vm1, %v13926_v53  ;;  %v1897_v21 = vshll.u32 %v1227_v12, 16  ;;  %v1236_v12 = vld [vmem:[%s14053_s21 + $0x180] sm:$0xf] }
 0x123   : > { %v1903_v33 = vshll.u32 %v1228_v55, 16  ;;  %v1877_v7 = vrot.slane %v1876_v52, 4  ;;  %v1891_v51 = vrot.slane %v1889_v19, 5  ;;  %12837 = vmatprep.mubr.msk.bf16.mxu0 %vm628_vm1, %v13927_v13  ;;  %v1896_v27 = vrot.slane %v1894_v44, 4  ;;  %v1237_v13 = vld [vmem:[%s14053_s21 + $0x184] sm:$0xf] }
 0x124   : > { %v1886_v35 = vor.u32 %v1885_v10, %v1881_v24  ;;  %v1868_v18 = vsel %vm14159_vm4, %v1863_v63, %v1867_v5  ;;  %v1899_v31 = vrot.slane %v1897_v21, 5  ;;  %v1907_v32 = vshrl.u32 %v1228_v55, 16  ;;  %v1238_v21 = vld [vmem:[%s14053_s21 + $0x188] sm:$0x1] }
 0x125   : > { %v1905_v60 = vrot.slane %v1903_v33, 5  ;;  %v11019_v42 = vcombine.low %v1858_v57, %v1868_v18  ;;  %v1882_v58 = vsel %vm14159_vm4, %v1877_v7, %v1881_v24  ;;  %v1913_v25 = vshll.u32 %v1229_v20, 16  ;;  %v13930_v20 = vld [vmem:[%s14053_s21 + $0x9c] sm:$0xff]  }
 0x126   : > { %v1887_v29 = vrot.slane %v1886_v35, 4  ;;  %v1900_v8 = vor.u32 %v1899_v31, %v1896_v27  ;;  %v1909_v48 = vrot.slane %v1907_v32, 4  ;;  %v1918_v39 = vshrl.u32 %v1230_v47, 16 }
 0x127   : > { %v1921_v40 = vshll.u32 %v1230_v47, 16  ;;  %12540 = vmatmul.mubr.msk.bf16.gmra.mrb[48].mxu1 %vm628_vm1, %v11019_v42  ;;  %v1915_v43 = vrot.slane %v1913_v25, 5  ;;  %v1927_v49 = vshll.u32 %v1231_v22, 16  ;;  %v1931_v50 = vshrl.u32 %v1231_v22, 16  ;;  %v13931_v47 = vld [vmem:[%s14053_s21 + $0xa8] sm:$0xff]  }
 0x128   : > { %v1892_v28 = vsel %vm14159_vm4, %v1887_v29, %v1891_v51  ;;  %v1901_v15 = vrot.slane %v1900_v8, 4  ;;  %v1910_v2 = vor.u32 %v1909_v48, %v1905_v60  ;;  %v1920_v59 = vrot.slane %v1918_v39, 4  ;;  %v1239_v22 = vld [vmem:[%s14053_s21 + $0x18c] sm:$0xf]  ;;  %v1240_v42 = vld [vmem:[%s14053_s21 + $0x190] sm:$0xf] }
 0x129   : > { %v11020_v26 = vcombine.low %v1882_v58, %v1892_v28  ;;  %v1923_v38 = vrot.slane %v1921_v40, 5  ;;  %v1929_v36 = vrot.slane %v1927_v49, 5  ;;  %v1933_v61 = vrot.slane %v1931_v50, 4  ;;  %v1241_v8 = vld [vmem:[%s14053_s21 + $0x194] sm:$0x1] }
 0x12a   : > { %v1937_v62 = vshll.u32 %v1232_v46, 16  ;;  %v1906_v4 = vsel %vm14159_vm4, %v1901_v15, %v1905_v60  ;;  %v1911_v5 = vrot.slane %v1910_v2, 4  ;;  %12838 = vmatmul.mubr.msk.bf16.gmra.mrb[16].mxu0 %vm628_vm1, %v13928_v37  ;;  %v1942_v53 = vshrl.u32 %v1233_v45, 16  ;;  %v2691_v48 = vld [vmem:[%s14053_s21] sm:$0xe] }
 0x12b   : > { %12543 = vmatprep.mubr.msk.bf16.mxu1 %vm628_vm1, %v11020_v26  ;;  %v1945_v6 = vshll.u32 %v1233_v45, 16  ;;  %v1924_v11 = vor.u32 %v1923_v38, %v1920_v59  ;;  %v1934_v16 = vor.u32 %v1933_v61, %v1929_v36  ;;  %12841 = vmatprep.mubr.msk.bf16.mxu0 %vm628_vm1, %v13929_v54  ;;  %v1951_v14 = vshll.u32 %v1234_v56, 16  ;;  %v2692_v28 = vld [vmem:[%s14053_s21 + $0x4] sm:$0xf]  ;;  %v2694_v26 = vld [vmem:[%s14053_s21 + $0xc] sm:$0xe] }
 0x12c   : > { %v1939_v23 = vrot.slane %v1937_v62, 5  ;;  %v1916_v55 = vsel %vm14159_vm4, %v1911_v5, %v1915_v43  ;;  %v1944_v0 = vrot.slane %v1942_v53, 4  ;;  %v1955_v17 = vshrl.u32 %v1234_v56, 16  ;;  %v2693_v56 = vld [vmem:[%s14053_s21 + $0x8] sm:$0x1]  ;;  %v13933_v5 = vld [vmem:[%s14053_s21 + $0xc0] sm:$0xff]  }
 0x12d   : > { %v1947_v1 = vrot.slane %v1945_v6, 5  ;;  %v11021_v24 = vcombine.low %v1906_v4, %v1916_v55  ;;  %v1925_v52 = vrot.slane %v1924_v11, 4  ;;  %v1935_v10 = vrot.slane %v1934_v16, 4  ;;  %v2695_v53 = vld [vmem:[%s14053_s21 + $0x10] sm:$0xf] }
 0x12e   : > { %v1953_v19 = vrot.slane %v1951_v14, 5  ;;  %v1957_v57 = vrot.slane %v1955_v17, 4  ;;  %v1961_v63 = vshll.u32 %v1235_v3, 16  ;;  %v1966_v33 = vshrl.u32 %v1236_v12, 16  ;;  %v2696_v6 = vld [vmem:[%s14053_s21 + $0x14] sm:$0x1] }
 0x12f   : > { %v1948_v44 = vor.u32 %v1947_v1, %v1944_v0  ;;  %12544 = vmatmul.mubr.msk.bf16.gmra.mrb[52].mxu1 %vm628_vm1, %v11021_v24  ;;  %v1930_v7 = vsel %vm14159_vm4, %v1925_v52, %v1929_v36  ;;  %v1940_v35 = vsel %vm14159_vm4, %v1935_v10, %v1939_v23  ;;  %v1969_v51 = vshll.u32 %v1236_v12, 16  ;;  %v13932_v36 = vld [vmem:[%s14053_s21 + $0xb4] sm:$0xff]  }
 0x130   : > { %v1975_v27 = vshll.u32 %v1237_v13, 16  ;;  %v11022_v18 = vcombine.low %v1930_v7, %v1940_v35  ;;  %v1958_v60 = vor.u32 %v1957_v57, %v1953_v19  ;;  %v1963_v32 = vrot.slane %v1961_v63, 5  ;;  %v2697_v14 = vld [vmem:[%s14053_s21 + $0x18] sm:$0xe]  ;;  %v2702_v7 = vld [vmem:[%s14053_s21 + $0x2c] sm:$0x1] }
 0x131   : > { %v1949_v31 = vrot.slane %v1948_v44, 4  ;;  %v1968_v58 = vrot.slane %v1966_v33, 4  ;;  %v1971_v29 = vrot.slane %v1969_v51, 5  ;;  %v1979_v46 = vshrl.u32 %v1237_v13, 16  ;;  %v2700_v44 = vld [vmem:[%s14053_s21 + $0x24] sm:$0xe] }
 0x132   : > { %v1977_v25 = vrot.slane %v1975_v27, 5  ;;  %12547 = vmatprep.mubr.msk.bf16.mxu1 %vm628_vm1, %v11022_v18  ;;  %v1959_v39 = vrot.slane %v1958_v60, 4  ;;  %12842 = vmatmul.mubr.msk.bf16.gmra.mrb[20].mxu0 %vm628_vm1, %v13930_v20  ;;  %v1985_v40 = vshll.u32 %v1238_v21, 16  ;;  %v1990_v45 = vshrl.u32 %v1239_v22, 16  ;;  %v2699_v20 = vld [vmem:[%s14053_s21 + $0x20] sm:$0x1] }
 0x133   : > { %v1954_v37 = vsel %vm14159_vm4, %v1949_v31, %v1953_v19  ;;  %v1972_v43 = vor.u32 %v1971_v29, %v1968_v58  ;;  %v1981_v49 = vrot.slane %v1979_v46, 4  ;;  %12845 = vmatprep.mubr.msk.bf16.mxu0 %vm628_vm1, %v13931_v47  ;;  %v1993_v50 = vshll.u32 %v1239_v22, 16  ;;  %v2698_v19 = vld [vmem:[%s14053_s21 + $0x1c] sm:$0xf]  ;;  %v2701_v47 = vld [vmem:[%s14053_s21 + $0x28] sm:$0xf] }
 0x134   : > { %v1999_v54 = vshll.u32 %v1240_v42, 16  ;;  %v1964_v15 = vsel %vm14159_vm4, %v1959_v39, %v1963_v32  ;;  %v1987_v2 = vrot.slane %v1985_v40, 5  ;;  %v1992_v59 = vrot.slane %v1990_v45, 4  ;;  %v2703_v35 = vld [vmem:[%s14053_s21 + $0x30] sm:$0xe] }
 0x135   : > { %v2003_v38 = vshrl.u32 %v1240_v42, 16  ;;  %v11023_v61 = vcombine.low %v1954_v37, %v1964_v15  ;;  %v1973_v62 = vrot.slane %v1972_v43, 4  ;;  %v1982_v3 = vor.u32 %v1981_v49, %v1977_v25  ;;  %v2704_v31 = vld [vmem:[%s14053_s21 + $0x34] sm:$0xf]  ;;  %v2705_v29 = vld [vmem:[%s14053_s21 + $0x38] sm:$0x1] }
 0x136   : > { %v1995_v4 = vrot.slane %v1993_v50, 5  ;;  %v2001_v12 = vrot.slane %v1999_v54, 5  ;;  %v2009_v16 = vshll.u32 %v1241_v8, 16  ;;  %v11058_v23 = vrot.slane %v2691_v48, 9  ;;  %v2706_v37 = vld [vmem:[%s14053_s21 + $0x3c] sm:$0xe] }
 0x137   : > { %v2005_v11 = vrot.slane %v2003_v38, 4  ;;  %12548 = vmatmul.mubr.msk.bf16.gmra.mrb[56].mxu1 %vm628_vm1, %v11023_v61  ;;  %v1978_v13 = vsel %vm14159_vm4, %v1973_v62, %v1977_v25  ;;  %v1983_v55 = vrot.slane %v1982_v3, 4  ;;  %v2888_v1 = vrot.slane %v2692_v28, 5  ;;  %v2707_v39 = vld [vmem:[%s14053_s21 + $0x40] sm:$0xf] }
 0x138   : > { %v1996_v0 = vor.u32 %v1995_v4, %v1992_v59  ;;  %v2011_v24 = vrot.slane %v2009_v16, 5  ;;  %v2891_v52 = vrot.slane %v2693_v56, 5  ;;  %v11059_v10 = vrot.slane %v2694_v26, 9  ;;  %v2708_v49 = vld [vmem:[%s14053_s21 + $0x44] sm:$0x1]  ;;  %v13935_v56 = vld [vmem:[%s14053_s21 + $0xf0] sm:$0xff]  }
 0x139   : > { %v2006_v17 = vor.u32 %v2005_v11, %v2001_v12  ;;  %v1988_v57 = vsel %vm14159_vm4, %v1983_v55, %v1987_v2  ;;  %v2889_v21 = vsel %vm14324_vm7, %v11058_v23, %v2888_v1  ;;  %v2890_v33 = vrot.slane %v2888_v1, 4  ;;  %v2709_v50 = vld [vmem:[%s14053_s21 + $0x48] sm:$0xe]  ;;  %v2710_v62 = vld [vmem:[%s14053_s21 + $0x4c] sm:$0xf] }
 0x13a   : > { %v1997_v63 = vrot.slane %v1996_v0, 4  ;;  %v11024_v51 = vcombine.low %v1978_v13, %v1988_v57  ;;  %12846 = vmatmul.mubr.msk.bf16.gmra.mrb[24].mxu0 %vm628_vm1, %v13932_v36  ;;  %v2895_v22 = vrot.slane %v2695_v53, 5  ;;  %v2898_v18 = vrot.slane %v2696_v6, 5  ;;  %v2711_v3 = vld [vmem:[%s14053_s21 + $0x50] sm:$0x1] }
 0x13b   : > { %v2007_v27 = vrot.slane %v2006_v17, 4  ;;  %v2892_v32 = vsel %vm14324_vm7, %v2890_v33, %v2891_v52  ;;  %12849 = vmatprep.mubr.msk.bf16.mxu0 %vm628_vm1, %v13933_v5  ;;  %v15087_v42 = vsel %vm725_vm0, %v14957_v30, 0  ;;  %v11060_v58 = vrot.slane %v2697_v14, 9  ;;  %v13934_v30 = vld [vmem:[%s14053_s21 + $0xcc] sm:$0xff]   ;;  %v2712_v4 = vld [vmem:[%s14053_s21 + $0x54] sm:$0xe] }
 0x13c   : > { %v2002_v60 = vsel %vm14159_vm4, %v1997_v63, %v2001_v12  ;;  %12551 = vmatprep.mubr.msk.bf16.mxu1 %vm628_vm1, %v11024_v51  ;;  %v11091_v46 = vcombine.low %v2889_v21, %v2892_v32  ;;  %v15095_v8 = vsel %vm14324_vm7, %v11059_v10, %v2895_v22  ;;  %v2897_v48 = vrot.slane %v2895_v22, 4  ;;  %v2713_v11 = vld [vmem:[%s14053_s21 + $0x58] sm:$0xf]  ;;  %v2714_v16 = vld [vmem:[%s14053_s21 + $0x5c] sm:$0x1] }
 0x13d   : > { %v2012_v25 = vsel %vm14159_vm4, %v2007_v27, %v2011_v24  ;;  %v2902_v45 = vrot.slane %v2698_v19, 5  ;;  %v2905_v28 = vrot.slane %v2699_v20, 5  ;;  %v11061_v43 = vrot.slane %v2700_v44, 9  ;;  %v2715_v23 = vld [vmem:[%s14053_s21 + $0x60] sm:$0xe] }
 0x13e   : > { %v11025_v40 = vcombine.low %v2002_v60, %v2012_v25  ;;  %v2899_v54 = vsel %vm14324_vm7, %v2897_v48, %v2898_v18  ;;  %v2909_v26 = vrot.slane %v2701_v47, 5  ;;  %v2912_v15 = vrot.slane %v2702_v7, 5  ;;  %v2716_v1 = vld [vmem:[%s14053_s21 + $0x64] sm:$0xf]  ;;  %v2717_v19 = vld [vmem:[%s14053_s21 + $0x68] sm:$0x1] }
 0x13f   : > { %v11062_v2 = vrot.slane %v2703_v35, 9  ;;  %v11092_v59 = vcombine.low %v15095_v8, %v2899_v54  ;;  %v2903_v38 = vsel %vm14324_vm7, %v11060_v58, %v2902_v45  ;;  %v2904_v36 = vrot.slane %v2902_v45, 4  ;;  %v2718_v20 = vld [vmem:[%s14053_s21 + $0x6c] sm:$0xe]  ;;  %v2719_v33 = vld [vmem:[%s14053_s21 + $0x70] sm:$0xf] }
 0x140   : > { %12552 = vmatmul.mubr.msk.bf16.gmra.mrb[60].mxu1 %vm628_vm1, %v11025_v40  ;;  %v2916_v61 = vrot.slane %v2704_v31, 5  ;;  %v15115_v5 = vsel %vm14324_vm7, %v11061_v43, %v2909_v26  ;;  %v2911_v53 = vrot.slane %v2909_v26, 4  ;;  %v2919_v6 = vrot.slane %v2705_v29, 5  ;;  %v2720_v27 = vld [vmem:[%s14053_s21 + $0x74] sm:$0x1]  ;;  %v13936_v22 = vld [vmem:[%s14053_s21 + $0xfc] sm:$0xff]  }
 0x141   : > { %12557 = vmatprep.mubr.msk.bf16.mxu1 %vm628_vm1, %v11091_v46  ;;  %v11063_v12 = vrot.slane %v2706_v37, 9  ;;  %v2906_v14 = vsel %vm14324_vm7, %v2904_v36, %v2905_v28  ;;  %v2923_v0 = vrot.slane %v2707_v39, 5  ;;  %v2926_v52 = vrot.slane %v2708_v49, 5  ;;  %v2721_v58 = vld [vmem:[%s14053_s21 + $0x78] sm:$0xe]  ;;  %v13937_v40 = vld [vmem:[%s14053_s21 + $0x108] sm:$0xff]  }
 0x142   : > { %v15124_v13 = vsel %vm14324_vm7, %v11062_v2, %v2916_v61  ;;  %v2918_v55 = vrot.slane %v2916_v61, 4  ;;  %12850 = vmatmul.mubr.msk.bf16.gmra.mrb[28].mxu0 %vm628_vm1, %v13934_v30  ;;  %v11093_v17 = vcombine.low %v2903_v38, %v2906_v14  ;;  %v15130_v24 = vsel %vm14324_vm7, %v2911_v53, %v2912_v15  ;;  %v2722_v48 = vld [vmem:[%s14053_s21 + $0x7c] sm:$0xf]  ;;  %v2723_v37 = vld [vmem:[%s14053_s21 + $0x80] sm:$0x1] }
 0x143   : > { %v11064_v10 = vrot.slane %v2709_v50, 9  ;;  %12853 = vmatprep.mubr.msk.bf16.mxu0 %vm628_vm1, %v13935_v56  ;;  %v11094_v44 = vcombine.low %v15115_v5, %v15130_v24  ;;  %v15143_v63 = vsel %vm14324_vm7, %v11063_v12, %v2923_v0  ;;  %v2925_v21 = vrot.slane %v2923_v0, 4  ;;  %v2724_v39 = vld [vmem:[%s14053_s21 + $0x84] sm:$0xe]  ;;  %v2725_v49 = vld [vmem:[%s14053_s21 + $0x88] sm:$0xf] }
 0x144   : > { %v15139_v57 = vsel %vm14324_vm7, %v2918_v55, %v2919_v6  ;;  %v2930_v7 = vrot.slane %v2710_v62, 5  ;;  %v2933_v35 = vrot.slane %v2711_v3, 5  ;;  %v11065_v51 = vrot.slane %v2712_v4, 9  ;;  %v2726_v50 = vld [vmem:[%s14053_s21 + $0x8c] sm:$0x1] }
 0x145   : > { %v11095_v47 = vcombine.low %v15124_v13, %v15139_v57  ;;  %v15152_v18 = vsel %vm14324_vm7, %v2925_v21, %v2926_v52  ;;  %v2937_v31 = vrot.slane %v2713_v11, 5  ;;  %v2940_v60 = vrot.slane %v2714_v16, 5  ;;  %v2727_v2 = vld [vmem:[%s14053_s21 + $0x90] sm:$0xe]  ;;  %v2728_v61 = vld [vmem:[%s14053_s21 + $0x94] sm:$0xf] }
 0x146   : > { %v11066_v32 = vrot.slane %v2715_v23, 9  ;;  %v11096_v29 = vcombine.low %v15143_v63, %v15152_v18  ;;  %v15159_v25 = vsel %vm14324_vm7, %v11064_v10, %v2930_v7  ;;  %v2932_v46 = vrot.slane %v2930_v7, 4  ;;  %v2729_v62 = vld [vmem:[%s14053_s21 + $0x98] sm:$0x1]  ;;  %v13983_v3 = vld [vmem:[%s14058_s24 + $0x8] sm:$0x3] }
 0x147   : > { %v2944_v8 = vrot.slane %v2716_v1, 5  ;;  %v15168_v30 = vsel %vm14324_vm7, %v11065_v51, %v2937_v31  ;;  %v2939_v45 = vrot.slane %v2937_v31, 4  ;;  %v2947_v28 = vrot.slane %v2717_v19, 5  ;;  %v2730_v11 = vld [vmem:[%s14053_s21 + $0x9c] sm:$0xe]  ;;  %v13939_v31 = vld [vmem:[%s14053_s21 + $0x120] sm:$0xff]  }
 0x148   : > { %12558 = vmatmul.mubr.msk.bf16.vlgmr.msra.gmra.mrb[0].mxu1 %vm628_vm1, %v11092_v59  ;;  %v11067_v43 = vrot.slane %v2718_v20, 9  ;;  %v15176_v54 = vsel %vm14324_vm7, %v2932_v46, %v2933_v35  ;;  %v2951_v15 = vrot.slane %v2719_v33, 5  ;;  %v2954_v38 = vrot.slane %v2720_v27, 5  ;;  %v2731_v16 = vld [vmem:[%s14053_s21 + $0xa0] sm:$0xf] }
 0x149   : > { %12622 = vmatpush3.bf16.msra.mxu1 %v15087_v42  ;;  %12561 = vmatprep.mubr.msk.bf16.mxu1 %vm628_vm1, %v11093_v17  ;;  %v15180_v56 = vsel %vm14324_vm7, %v11066_v32, %v2944_v8  ;;  %v2946_v26 = vrot.slane %v2944_v8, 4  ;;  %v11097_v59 = vcombine.low %v15159_v25, %v15176_v54  ;;  %v15187_v42 = vsel %vm14324_vm7, %v2939_v45, %v2940_v60  ;;  %v2732_v1 = vld [vmem:[%s14053_s21 + $0xa4] sm:$0x1]  ;;  %v13938_v17 = vld [vmem:[%s14053_s21 + $0x114] sm:$0xff]   ;;  %v2733_v21 = vld [vmem:[%s14053_s21 + $0xa8] sm:$0xe] }
 0x14a   : > { %v11068_v36 = vrot.slane %v2721_v58, 9  ;;  %13856 = vmatprep.subr.msk.bf16.mxu1 %vm725_vm0, %v13983_v3  ;;  %12854 = vmatmul.mubr.msk.bf16.gmra.mrb[32].mxu0 %vm628_vm1, %v13936_v22  ;;  %v11098_v4 = vcombine.low %v15168_v30, %v15187_v42  ;;  %v15202_v6 = vsel %vm14324_vm7, %v11067_v43, %v2951_v15  ;;  %v2953_v12 = vrot.slane %v2951_v15, 4  ;;  %v2734_v27 = vld [vmem:[%s14053_s21 + $0xac] sm:$0xf]  ;;  %v2735_v22 = vld [vmem:[%s14053_s21 + $0xb0] sm:$0x1] }
 0x14b   : > { %v15198_v53 = vsel %vm14324_vm7, %v2946_v26, %v2947_v28  ;;  %12857 = vmatprep.mubr.msk.bf16.mxu0 %vm628_vm1, %v13937_v40  ;;  %v2958_v14 = vrot.slane %v2722_v48, 5  ;;  %v2961_v55 = vrot.slane %v2723_v37, 5  ;;  %v11069_v0 = vrot.slane %v2724_v39, 9  ;;  %v2736_v8 = vld [vmem:[%s14053_s21 + $0xb4] sm:$0xe] }
 0x14c   : > { %v11099_v23 = vcombine.low %v15180_v56, %v15198_v53  ;;  %v15213_v52 = vsel %vm14324_vm7, %v2953_v12, %v2954_v38  ;;  %v2965_v10 = vrot.slane %v2725_v49, 5  ;;  %v2968_v19 = vrot.slane %v2726_v50, 5  ;;  %v2737_v45 = vld [vmem:[%s14053_s21 + $0xb8] sm:$0xf]  ;;  %v2738_v28 = vld [vmem:[%s14053_s21 + $0xbc] sm:$0x1] }
 0x14d   : > { %v11070_v20 = vrot.slane %v2727_v2, 9  ;;  %v11100_v33 = vcombine.low %v15202_v6, %v15213_v52  ;;  %v15220_v7 = vsel %vm14324_vm7, %v11068_v36, %v2958_v14  ;;  %v2960_v35 = vrot.slane %v2958_v14, 4  ;;  %v2739_v49 = vld [vmem:[%s14053_s21 + $0xd8] sm:$0xe]  ;;  %v15256_v50 = vld [vmem:[%s14058_s24 + $0x10] sm:$0x3] }
 0x14e   : > { %v2972_v51 = vrot.slane %v2728_v61, 5  ;;  %v15227_v60 = vsel %vm14324_vm7, %v11069_v0, %v2965_v10  ;;  %v2967_v32 = vrot.slane %v2965_v10, 4  ;;  %v2975_v58 = vrot.slane %v2729_v62, 5  ;;  %v2740_v15 = vld [vmem:[%s14053_s21 + $0xdc] sm:$0xf]  ;;  %13860 = vmatprep.subr.msk.bf16.mxu0 %vm725_vm0, %v15256_v50 }
 0x14f   : > { %v11071_v46 = vrot.slane %v2730_v11, 9  ;;  %v15236_v48 = vsel %vm14324_vm7, %v2960_v35, %v2961_v55  ;;  %v2979_v40 = vrot.slane %v2731_v16, 5  ;;  %v11072_v43 = vrot.slane %v2733_v21, 9  ;;  %v2741_v2 = vld [vmem:[%s14053_s21 + $0xe0] sm:$0x1]  ;;  %v13940_v21 = vld [vmem:[%s14053_s21 + $0x12c] sm:$0xff]  }
 0x150   : > { %12562 = vmatmul.mubr.msk.bf16.gmra.mrb[4].mxu1 %vm628_vm1, %v11094_v44  ;;  %v15240_v37 = vsel %vm14324_vm7, %v11070_v20, %v2972_v51  ;;  %v2974_v39 = vrot.slane %v2972_v51, 4  ;;  %v11101_v5 = vcombine.low %v15220_v7, %v15236_v48  ;;  %v15252_v24 = vsel %vm14324_vm7, %v2967_v32, %v2968_v19  ;;  %v2742_v3 = vld [vmem:[%s14053_s21 + $0xe4] sm:$0xe]  ;;  %v2743_v55 = vld [vmem:[%s14053_s21 + $0xe8] sm:$0xf] }
 0x151   : > { %12565 = vmatprep.mubr.msk.bf16.mxu1 %vm628_vm1, %v11095_v47  ;;  %v2982_v44 = vrot.slane %v2732_v1, 5  ;;  %v11102_v26 = vcombine.low %v15227_v60, %v15252_v24  ;;  %v15266_v57 = vsel %vm14324_vm7, %v11071_v46, %v2979_v40  ;;  %v2981_v47 = vrot.slane %v2979_v40, 4  ;;  %v2744_v19 = vld [vmem:[%s14053_s21 + $0xec] sm:$0x1]  ;;  %v2745_v20 = vld [vmem:[%s14053_s21 + $0xf0] sm:$0xe] }
 0x152   : > { %v15262_v13 = vsel %vm14324_vm7, %v2974_v39, %v2975_v58  ;;  %12858 = vmatmul.mubr.msk.bf16.gmra.mrb[36].mxu0 %vm628_vm1, %v13938_v17  ;;  %v2986_v36 = vrot.slane %v2734_v27, 5  ;;  %v2989_v61 = vrot.slane %v2735_v22, 5  ;;  %v11073_v62 = vrot.slane %v2736_v8, 9  ;;  %v2747_v39 = vld [vmem:[%s14053_s21 + $0xf8] sm:$0x1] }
 0x153   : > { %v11103_v38 = vcombine.low %v15240_v37, %v15262_v13  ;;  %12861 = vmatprep.mubr.msk.bf16.mxu0 %vm628_vm1, %v13939_v31  ;;  %v15279_v12 = vsel %vm14324_vm7, %v2981_v47, %v2982_v44  ;;  %v2993_v11 = vrot.slane %v2737_v45, 5  ;;  %v2996_v16 = vrot.slane %v2738_v28, 5  ;;  %v2746_v31 = vld [vmem:[%s14053_s21 + $0xf4] sm:$0xf]  ;;  %v11767_v40 = vld [vmem:[%s14053_s21 + $0x18] sm:$0xf] }
 0x154   : > { %v11074_v14 = vrot.slane %v2739_v49, 9  ;;  %v11104_v0 = vcombine.low %v15266_v57, %v15279_v12  ;;  %v15286_v1 = vsel %vm14324_vm7, %v11072_v43, %v2986_v36  ;;  %v2988_v17 = vrot.slane %v2986_v36, 4  ;;  %v13941_v45 = vld [vmem:[%s14053_s21 + $0x138] sm:$0xff]   ;;  %v11777_v48 = vld [vmem:[%s14053_s21 + $0x40] sm:$0xf] }
 0x155   : > { %v3000_v10 = vrot.slane %v2740_v15, 5  ;;  %v15293_v35 = vsel %vm14324_vm7, %v11073_v62, %v2993_v11  ;;  %v2995_v51 = vrot.slane %v2993_v11, 4  ;;  %v3003_v27 = vrot.slane %v2741_v2, 5  ;;  %v11768_v47 = vld [vmem:[%s14053_s21 + $0x1c] sm:$0xf] }
 0x156   : > { %v11075_v22 = vrot.slane %v2742_v3, 9  ;;  %v15298_v32 = vsel %vm14324_vm7, %v2988_v17, %v2989_v61  ;;  %v3007_v8 = vrot.slane %v2743_v55, 5  ;;  %v3010_v43 = vrot.slane %v2744_v19, 5  ;;  %v11769_v2 = vld [vmem:[%s14053_s21 + $0x20] sm:$0x1] }
 0x157   : > { %v15302_v58 = vsel %vm14324_vm7, %v11074_v14, %v3000_v10  ;;  %v3002_v46 = vrot.slane %v3000_v10, 4  ;;  %v11105_v28 = vcombine.low %v15286_v1, %v15298_v32  ;;  %v15315_v44 = vsel %vm14324_vm7, %v2995_v51, %v2996_v16  ;;  %v2748_v36 = vld [vmem:[%s14053_s21 + $0xfc] sm:$0xe]  ;;  %v2749_v62 = vld [vmem:[%s14053_s21 + $0x100] sm:$0xf] }
 0x158   : > { %12566 = vmatmul.mubr.msk.bf16.gmra.mrb[8].mxu1 %vm628_vm1, %v11096_v29  ;;  %v11076_v49 = vrot.slane %v2745_v20, 9  ;;  %v11106_v63 = vcombine.low %v15293_v35, %v15315_v44  ;;  %v15330_v29 = vsel %vm14324_vm7, %v11075_v22, %v3007_v8  ;;  %v3009_v15 = vrot.slane %v3007_v8, 4  ;;  %v2750_v55 = vld [vmem:[%s14053_s21 + $0x104] sm:$0x1] }
 0x159   : > { %12569 = vmatprep.mubr.msk.bf16.mxu1 %vm628_vm1, %v11097_v59  ;;  %v15326_v18 = vsel %vm14324_vm7, %v3002_v46, %v3003_v27  ;;  %v3014_v54 = vrot.slane %v2746_v31, 5  ;;  %v3017_v59 = vrot.slane %v2747_v39, 5  ;;  %v8135_v61 = vshrl.u32 %v11767_v40, 16  ;;  %v11770_v31 = vld [vmem:[%s14053_s21 + $0x24] sm:$0xf] }
 0x15a   : > { %v11107_v25 = vcombine.low %v15302_v58, %v15326_v18  ;;  %12862 = vmatmul.mubr.msk.bf16.gmra.mrb[40].mxu0 %vm628_vm1, %v13940_v21  ;;  %v15340_v3 = vsel %vm14324_vm7, %v3009_v15, %v3010_v43  ;;  %v8138_v11 = vshll.u32 %v11767_v40, 16  ;;  %v8144_v16 = vshll.u32 %v11768_v47, 16  ;;  %v13942_v43 = vld [vmem:[%s14053_s21 + $0x144] sm:$0xff]  }
 0x15b   : > { %v8148_v14 = vshrl.u32 %v11768_v47, 16  ;;  %12865 = vmatprep.mubr.msk.bf16.mxu0 %vm628_vm1, %v13941_v45  ;;  %v11108_v17 = vcombine.low %v15330_v29, %v15340_v3  ;;  %v15348_v10 = vsel %vm14324_vm7, %v11076_v49, %v3014_v54  ;;  %v3016_v19 = vrot.slane %v3014_v54, 4  ;;  %v11771_v45 = vld [vmem:[%s14053_s21 + $0x28] sm:$0xf] }
 0x15c   : > { %v8137_v20 = vrot.slane %v8135_v61, 4  ;;  %v8140_v21 = vrot.slane %v8138_v11, 5  ;;  %v8146_v51 = vrot.slane %v8144_v16, 5  ;;  %v8154_v22 = vshll.u32 %v11769_v2, 16  ;;  %v11772_v61 = vld [vmem:[%s14053_s21 + $0x2c] sm:$0x1] }
 0x15d   : > { %v8150_v27 = vrot.slane %v8148_v14, 4  ;;  %v15353_v46 = vsel %vm14324_vm7, %v3016_v19, %v3017_v59  ;;  %v11077_v8 = vrot.slane %v2748_v36, 9  ;;  %v3021_v39 = vrot.slane %v2749_v62, 5  ;;  %v13943_v2 = vld [vmem:[%s14053_s21 + $0x150] sm:$0xff]   ;;  %v2751_v16 = vld [vmem:[%s14053_s21 + $0x108] sm:$0xe] }
 0x15e   : > { %v3024_v40 = vrot.slane %v2750_v55, 5  ;;  %v11109_v49 = vcombine.low %v15348_v10, %v15353_v46  ;;  %v8141_v47 = vor.u32 %v8140_v21, %v8137_v20  ;;  %v8156_v54 = vrot.slane %v8154_v22, 5  ;;  %v2752_v55 = vld [vmem:[%s14053_s21 + $0x10c] sm:$0xf]  ;;  %v2753_v22 = vld [vmem:[%s14053_s21 + $0x110] sm:$0x1] }
 0x15f   : > { %v8151_v15 = vor.u32 %v8150_v27, %v8146_v51  ;;  %v15367_v36 = vsel %vm14324_vm7, %v11077_v8, %v3021_v39  ;;  %v3023_v59 = vrot.slane %v3021_v39, 4  ;;  %v8159_v62 = vshrl.u32 %v11770_v31, 16  ;;  %v11773_v8 = vld [vmem:[%s14053_s21 + $0x30] sm:$0xf] }
 0x160   : > { %12570 = vmatmul.mubr.msk.bf16.gmra.mrb[12].mxu1 %vm628_vm1, %v11098_v4  ;;  %v8162_v11 = vshll.u32 %v11770_v31, 16  ;;  %v8142_v14 = vrot.slane %v8141_v47, 4  ;;  %v8168_v42 = vshll.u32 %v11771_v45, 16  ;;  %v8172_v4 = vshrl.u32 %v11771_v45, 16  ;;  %v11774_v47 = vld [vmem:[%s14053_s21 + $0x34] sm:$0xf] }
 0x161   : > { %12573 = vmatprep.mubr.msk.bf16.mxu1 %vm628_vm1, %v11099_v23  ;;  %v8152_v30 = vrot.slane %v8151_v15, 4  ;;  %v15377_v19 = vsel %vm14324_vm7, %v3023_v59, %v3024_v40  ;;  %v8161_v20 = vrot.slane %v8159_v62, 4  ;;  %v8178_v27 = vshll.u32 %v11772_v61, 16  ;;  %v11775_v59 = vld [vmem:[%s14053_s21 + $0x38] sm:$0x1] }
 0x162   : > { %v8164_v21 = vrot.slane %v8162_v11, 5  ;;  %12866 = vmatmul.mubr.msk.bf16.gmra.mrb[44].mxu0 %vm628_vm1, %v13942_v43  ;;  %v8147_v56 = vsel %vm14159_vm4, %v8142_v14, %v8146_v51  ;;  %v11110_v23 = vcombine.low %v15367_v36, %v15377_v19  ;;  %v8170_v31 = vrot.slane %v8168_v42, 5  ;;  %v13944_v42 = vld [vmem:[%s14053_s21 + $0x15c] sm:$0xff]  }
 0x163   : > { %v8157_v53 = vsel %vm14159_vm4, %v8152_v30, %v8156_v54  ;;  %12869 = vmatprep.mubr.msk.bf16.mxu0 %vm628_vm1, %v13943_v2  ;;  %v8174_v45 = vrot.slane %v8172_v4, 4  ;;  %v8180_v43 = vrot.slane %v8178_v27, 5  ;;  %v15394_v51 = vsel %vm725_vm0, %v15256_v50, 0  ;;  %v2754_v30 = vld [vmem:[%s14053_s21 + $0x114] sm:$0xe] }
 0x164   : > { %v15389_v39 = vcombine.low %v8147_v56, %v8157_v53  ;;  %v8165_v40 = vor.u32 %v8164_v21, %v8161_v20  ;;  %v11078_v15 = vrot.slane %v2751_v16, 9  ;;  %v3028_v54 = vrot.slane %v2752_v55, 5  ;;  %v2755_v16 = vld [vmem:[%s14053_s21 + $0x118] sm:$0xf]  ;;  %v13945_v55 = vld [vmem:[%s14053_s21 + $0x168] sm:$0xff]  }
 0x165   : > { %v3031_v61 = vrot.slane %v2753_v22, 5  ;;  %v8175_v11 = vor.u32 %v8174_v45, %v8170_v31  ;;  %v8183_v2 = vshrl.u32 %v11773_v8, 16  ;;  %v8186_v14 = vshll.u32 %v11773_v8, 16  ;;  %v2756_v8 = vld [vmem:[%s14053_s21 + $0x11c] sm:$0x1] }
 0x166   : > { %v8166_v62 = vrot.slane %v8165_v40, 4  ;;  %v15401_v4 = vsel %vm14324_vm7, %v11078_v15, %v3028_v54  ;;  %v3030_v20 = vrot.slane %v3028_v54, 4  ;;  %v8192_v50 = vshll.u32 %v11774_v47, 16  ;;  %v11776_v45 = vld [vmem:[%s14053_s21 + $0x3c] sm:$0xf] }
 0x167   : > { %v8196_v21 = vshrl.u32 %v11774_v47, 16  ;;  %v8176_v22 = vrot.slane %v8175_v11, 4  ;;  %v8185_v56 = vrot.slane %v8183_v2, 4  ;;  %v8188_v53 = vrot.slane %v8186_v14, 5 }
 0x168   : > { %12574 = vmatmul.mubr.msk.bf16.gmra.mrb[16].mxu1 %vm628_vm1, %v11100_v33  ;;  %v8171_v27 = vsel %vm14159_vm4, %v8166_v62, %v8170_v31  ;;  %v15418_v6 = vsel %vm14324_vm7, %v3030_v20, %v3031_v61  ;;  %v8194_v52 = vrot.slane %v8192_v50, 5  ;;  %v8202_v40 = vshll.u32 %v11775_v59, 16  ;;  %v11778_v59 = vld [vmem:[%s14053_s21 + $0x44] sm:$0x1]  ;;  %v2757_v20 = vld [vmem:[%s14053_s21 + $0x120] sm:$0xe] }
 0x169   : > { %12577 = vmatprep.mubr.msk.bf16.mxu1 %vm628_vm1, %v11101_v5  ;;  %v8198_v33 = vrot.slane %v8196_v21, 4  ;;  %v8181_v31 = vsel %vm14159_vm4, %v8176_v22, %v8180_v43  ;;  %v11111_v47 = vcombine.low %v15401_v4, %v15418_v6  ;;  %v8189_v15 = vor.u32 %v8188_v53, %v8185_v56  ;;  %v2759_v53 = vld [vmem:[%s14053_s21 + $0x128] sm:$0x1] }
 0x16a   : > { %v11079_v7 = vrot.slane %v2754_v30, 9  ;;  %12870 = vmatmul.mubr.msk.bf16.gmra.mrb[48].mxu0 %vm628_vm1, %v13944_v42  ;;  %v15427_v5 = vcombine.low %v8171_v27, %v8181_v31  ;;  %v8204_v61 = vrot.slane %v8202_v40, 5  ;;  %v3035_v62 = vrot.slane %v2755_v16, 5  ;;  %v2758_v16 = vld [vmem:[%s14053_s21 + $0x124] sm:$0xf] }
 0x16b   : > { %v8199_v54 = vor.u32 %v8198_v33, %v8194_v52  ;;  %12873 = vmatprep.mubr.msk.bf16.mxu0 %vm628_vm1, %v13945_v55  ;;  %v8190_v43 = vrot.slane %v8189_v15, 4  ;;  %v3038_v11 = vrot.slane %v2756_v8, 5  ;;  %v8207_v2 = vshrl.u32 %v11776_v45, 16  ;;  %v13946_v8 = vld [vmem:[%s14053_s21 + $0x174] sm:$0xff]   ;;  %v11779_v15 = vld [vmem:[%s14053_s21 + $0x48] sm:$0xf] }
 0x16c   : > { %v8210_v14 = vshll.u32 %v11776_v45, 16  ;;  %v15434_v42 = vsel %vm14324_vm7, %v11079_v7, %v3035_v62  ;;  %v3037_v50 = vrot.slane %v3035_v62, 4  ;;  %v8216_v21 = vshll.u32 %v11777_v48, 16  ;;  %v11780_v62 = vld [vmem:[%s14053_s21 + $0x4c] sm:$0xf] }
 0x16d   : > { %v8200_v30 = vrot.slane %v8199_v54, 4  ;;  %v8195_v27 = vsel %vm14159_vm4, %v8190_v43, %v8194_v52  ;;  %v8209_v55 = vrot.slane %v8207_v2, 4  ;;  %v8220_v56 = vshrl.u32 %v11777_v48, 16  ;;  %v13947_v52 = vld [vmem:[%s14053_s21 + $0x180] sm:$0xff]   ;;  %v11781_v43 = vld [vmem:[%s14053_s21 + $0x50] sm:$0x1] }
 0x16e   : > { %v8212_v22 = vrot.slane %v8210_v14, 5  ;;  %v15445_v40 = vsel %vm14324_vm7, %v3037_v50, %v3038_v11  ;;  %v8218_v45 = vrot.slane %v8216_v21, 5  ;;  %v8226_v31 = vshll.u32 %v11778_v59, 16  ;;  %v2760_v50 = vld [vmem:[%s14053_s21 + $0x12c] sm:$0xe] }
 0x16f   : > { %v8205_v33 = vsel %vm14159_vm4, %v8200_v30, %v8204_v61  ;;  %v11112_v48 = vcombine.low %v15434_v42, %v15445_v40  ;;  %v8222_v61 = vrot.slane %v8220_v56, 4  ;;  %v11080_v60 = vrot.slane %v2757_v20, 9  ;;  %v2761_v20 = vld [vmem:[%s14053_s21 + $0x130] sm:$0xf]  ;;  %v2762_v56 = vld [vmem:[%s14053_s21 + $0x134] sm:$0x1] }
 0x170   : > { %12578 = vmatmul.mubr.msk.bf16.gmra.mrb[20].mxu1 %vm628_vm1, %v11102_v26  ;;  %v15453_v7 = vcombine.low %v8195_v27, %v8205_v33  ;;  %v8213_v54 = vor.u32 %v8212_v22, %v8209_v55  ;;  %v8228_v59 = vrot.slane %v8226_v31, 5  ;;  %v3042_v24 = vrot.slane %v2758_v16, 5 }
 0x171   : > { %12581 = vmatprep.mubr.msk.bf16.mxu1 %vm628_vm1, %v11103_v38  ;;  %v3045_v26 = vrot.slane %v2759_v53, 5  ;;  %v8223_v2 = vor.u32 %v8222_v61, %v8218_v45  ;;  %v8231_v14 = vshrl.u32 %v11779_v15, 16  ;;  %v8234_v30 = vshll.u32 %v11779_v15, 16  ;;  %v11782_v15 = vld [vmem:[%s14053_s21 + $0x54] sm:$0xf] }
 0x172   : > { %v8214_v11 = vrot.slane %v8213_v54, 4  ;;  %12874 = vmatmul.mubr.msk.bf16.gmra.mrb[52].mxu0 %vm628_vm1, %v13946_v8  ;;  %v15467_v37 = vsel %vm14324_vm7, %v11080_v60, %v3042_v24  ;;  %v3044_v13 = vrot.slane %v3042_v24, 4  ;;  %v8240_v38 = vshll.u32 %v11780_v62, 16  ;;  %v13948_v60 = vld [vmem:[%s14053_s21 + $0x18c] sm:$0xff]   ;;  %v13949_v24 = vld [vmem:[%s14053_s21 + $0x198] sm:$0xff]  }
 0x173   : > { %v8244_v21 = vshrl.u32 %v11780_v62, 16  ;;  %12877 = vmatprep.mubr.msk.bf16.mxu0 %vm628_vm1, %v13947_v52  ;;  %v8224_v27 = vrot.slane %v8223_v2, 4  ;;  %v8233_v55 = vrot.slane %v8231_v14, 4  ;;  %v8236_v22 = vrot.slane %v8234_v30, 5  ;;  %v11783_v62 = vld [vmem:[%s14053_s21 + $0x58] sm:$0xf] }
 0x174   : > { %v8219_v16 = vsel %vm14159_vm4, %v8214_v11, %v8218_v45  ;;  %v15476_v53 = vsel %vm14324_vm7, %v3044_v13, %v3045_v26  ;;  %v8242_v8 = vrot.slane %v8240_v38, 5  ;;  %v8250_v31 = vshll.u32 %v11781_v43, 16  ;;  %v11784_v43 = vld [vmem:[%s14053_s21 + $0x5c] sm:$0x1]  ;;  %v2763_v38 = vld [vmem:[%s14053_s21 + $0x138] sm:$0xe] }
 0x175   : > { %v8246_v33 = vrot.slane %v8244_v21, 4  ;;  %v8229_v52 = vsel %vm14159_vm4, %v8224_v27, %v8228_v59  ;;  %v11113_v45 = vcombine.low %v15467_v37, %v15476_v53  ;;  %v8237_v54 = vor.u32 %v8236_v22, %v8233_v55  ;;  %v11801_v53 = vld [vmem:[%s14053_s21 + $0xa0] sm:$0xf] }
 0x176   : > { %v11081_v61 = vrot.slane %v2760_v50, 9  ;;  %v15486_v11 = vcombine.low %v8219_v16, %v8229_v52  ;;  %v8252_v2 = vrot.slane %v8250_v31, 5  ;;  %v3049_v14 = vrot.slane %v2761_v20, 5  ;;  %v11785_v31 = vld [vmem:[%s14053_s21 + $0x60] sm:$0xf] }
 0x177   : > { %v8247_v26 = vor.u32 %v8246_v33, %v8242_v8  ;;  %v8238_v59 = vrot.slane %v8237_v54, 4  ;;  %v3052_v30 = vrot.slane %v2762_v56, 5  ;;  %v8255_v13 = vshrl.u32 %v11782_v15, 16  ;;  %v2765_v56 = vld [vmem:[%s14053_s21 + $0x140] sm:$0x1] }
 0x178   : > { %12582 = vmatmul.mubr.msk.bf16.gmra.mrb[24].mxu1 %vm628_vm1, %v11104_v0  ;;  %v8258_v50 = vshll.u32 %v11782_v15, 16  ;;  %v15500_v20 = vsel %vm14324_vm7, %v11081_v61, %v3049_v14  ;;  %v3051_v57 = vrot.slane %v3049_v14, 4  ;;  %v8264_v12 = vshll.u32 %v11783_v62, 16  ;;  %v2764_v0 = vld [vmem:[%s14053_s21 + $0x13c] sm:$0xf] }
 0x179   : > { %12585 = vmatprep.mubr.msk.bf16.mxu1 %vm628_vm1, %v11105_v28  ;;  %v8248_v21 = vrot.slane %v8247_v26, 4  ;;  %v8243_v16 = vsel %vm14159_vm4, %v8238_v59, %v8242_v8  ;;  %v8257_v27 = vrot.slane %v8255_v13, 4  ;;  %v8268_v22 = vshrl.u32 %v11783_v62, 16  ;;  %v11786_v61 = vld [vmem:[%s14053_s21 + $0x64] sm:$0xf] }
 0x17a   : > { %v8260_v55 = vrot.slane %v8258_v50, 5  ;;  %12878 = vmatmul.mubr.msk.bf16.gmra.mrb[56].mxu0 %vm628_vm1, %v13948_v60  ;;  %v15511_v32 = vsel %vm14324_vm7, %v3051_v57, %v3052_v30  ;;  %v8266_v28 = vrot.slane %v8264_v12, 5  ;;  %v8274_v33 = vshll.u32 %v11784_v43, 16  ;;  %v11787_v14 = vld [vmem:[%s14053_s21 + $0x68] sm:$0x1] }
 0x17b   : > { %v8253_v1 = vsel %vm14159_vm4, %v8248_v21, %v8252_v2  ;;  %12881 = vmatprep.mubr.msk.bf16.mxu0 %vm628_vm1, %v13949_v24  ;;  %v11114_v15 = vcombine.low %v15500_v20, %v15511_v32  ;;  %v8270_v54 = vrot.slane %v8268_v22, 4  ;;  %v11082_v60 = vrot.slane %v2763_v38, 9  ;;  %v2766_v13 = vld [vmem:[%s14053_s21 + $0x144] sm:$0xe] }
 0x17c   : > { %v15515_v8 = vcombine.low %v8243_v16, %v8253_v1  ;;  %v8261_v52 = vor.u32 %v8260_v55, %v8257_v27  ;;  %v8276_v62 = vrot.slane %v8274_v33, 5  ;;  %v3056_v26 = vrot.slane %v2764_v0, 5  ;;  %v13950_v50 = vld [vmem:[%s14053_s21 + $0x1a4] sm:$0xff]   ;;  %v11788_v33 = vld [vmem:[%s14053_s21 + $0x6c] sm:$0xf] }
 0x17d   : > { %v3059_v2 = vrot.slane %v2765_v56, 5  ;;  %v8271_v59 = vor.u32 %v8270_v54, %v8266_v28  ;;  %v8279_v30 = vshrl.u32 %v11785_v31, 16  ;;  %v8282_v24 = vshll.u32 %v11785_v31, 16  ;;  %v2767_v27 = vld [vmem:[%s14053_s21 + $0x148] sm:$0xf] }
 0x17e   : > { %v8262_v43 = vrot.slane %v8261_v52, 4  ;;  %v15525_v21 = vsel %vm14324_vm7, %v11082_v60, %v3056_v26  ;;  %v3058_v57 = vrot.slane %v3056_v26, 4  ;;  %v8288_v12 = vshll.u32 %v11786_v61, 16  ;;  %v2768_v56 = vld [vmem:[%s14053_s21 + $0x14c] sm:$0x1] }
 0x17f   : > { %v8292_v16 = vshrl.u32 %v11786_v61, 16  ;;  %v8272_v0 = vrot.slane %v8271_v59, 4  ;;  %v8281_v55 = vrot.slane %v8279_v30, 4  ;;  %v8284_v22 = vrot.slane %v8282_v24, 5  ;;  %v11790_v26 = vld [vmem:[%s14053_s21 + $0x74] sm:$0x1] }
 0x180   : > { %12586 = vmatmul.mubr.msk.bf16.gmra.mrb[28].mxu1 %vm628_vm1, %v11106_v63  ;;  %v8267_v38 = vsel %vm14159_vm4, %v8262_v43, %v8266_v28  ;;  %v15541_v1 = vsel %vm14324_vm7, %v3058_v57, %v3059_v2  ;;  %v8290_v35 = vrot.slane %v8288_v12, 5  ;;  %v8298_v63 = vshll.u32 %v11787_v14, 16  ;;  %v2769_v59 = vld [vmem:[%s14053_s21 + $0x150] sm:$0xe]  ;;  %v2770_v30 = vld [vmem:[%s14053_s21 + $0x154] sm:$0xf] }
 0x181   : > { %12589 = vmatprep.mubr.msk.bf16.mxu1 %vm628_vm1, %v11107_v25  ;;  %v8294_v44 = vrot.slane %v8292_v16, 4  ;;  %v8277_v28 = vsel %vm14159_vm4, %v8272_v0, %v8276_v62  ;;  %v11115_v31 = vcombine.low %v15525_v21, %v15541_v1  ;;  %v8285_v58 = vor.u32 %v8284_v22, %v8281_v55  ;;  %v11789_v25 = vld [vmem:[%s14053_s21 + $0x70] sm:$0xf]  ;;  %v2771_v12 = vld [vmem:[%s14053_s21 + $0x158] sm:$0x1] }
 0x182   : > { %v11083_v18 = vrot.slane %v2766_v13, 9  ;;  %12882 = vmatmul.mubr.msk.bf16.gmra.mrb[60].mxu0 %vm628_vm1, %v13950_v50  ;;  %v15550_v52 = vcombine.low %v8267_v38, %v8277_v28  ;;  %v8300_v61 = vrot.slane %v8298_v63, 5  ;;  %v3063_v60 = vrot.slane %v2767_v27, 5 }
 0x183   : > { %v8295_v54 = vor.u32 %v8294_v44, %v8290_v35  ;;  %12887 = vmatprep.mubr.msk.bf16.mxu0 %vm628_vm1, %v15389_v39  ;;  %v8286_v62 = vrot.slane %v8285_v58, 4  ;;  %v3066_v2 = vrot.slane %v2768_v56, 5  ;;  %v8303_v14 = vshrl.u32 %v11788_v33, 16  ;;  %v11791_v44 = vld [vmem:[%s14053_s21 + $0x78] sm:$0xf] }
 0x184   : > { %v8306_v43 = vshll.u32 %v11788_v33, 16  ;;  %v15559_v13 = vsel %vm14324_vm7, %v11083_v18, %v3063_v60  ;;  %v3065_v50 = vrot.slane %v3063_v60, 4  ;;  %v8312_v57 = vshll.u32 %v11789_v25, 16  ;;  %v11792_v58 = vld [vmem:[%s14053_s21 + $0x7c] sm:$0xf] }
 0x185   : > { %v8296_v24 = vrot.slane %v8295_v54, 4  ;;  %v8291_v39 = vsel %vm14159_vm4, %v8286_v62, %v8290_v35  ;;  %v8305_v16 = vrot.slane %v8303_v14, 4  ;;  %v8316_v38 = vshrl.u32 %v11789_v25, 16  ;;  %v11793_v18 = vld [vmem:[%s14053_s21 + $0x80] sm:$0x1] }
 0x186   : > { %v8308_v27 = vrot.slane %v8306_v43, 5  ;;  %v15568_v55 = vsel %vm14324_vm7, %v3065_v50, %v3066_v2  ;;  %v8314_v22 = vrot.slane %v8312_v57, 5  ;;  %v8322_v56 = vshll.u32 %v11790_v26, 16  ;;  %v2772_v54 = vld [vmem:[%s14053_s21 + $0x15c] sm:$0xe] }
 0x187   : > { %v8301_v0 = vsel %vm14159_vm4, %v8296_v24, %v8300_v61  ;;  %v11116_v63 = vcombine.low %v15559_v13, %v15568_v55  ;;  %v8318_v28 = vrot.slane %v8316_v38, 4  ;;  %v11084_v29 = vrot.slane %v2769_v59, 9  ;;  %v2773_v2 = vld [vmem:[%s14053_s21 + $0x160] sm:$0xf]  ;;  %v2774_v43 = vld [vmem:[%s14053_s21 + $0x164] sm:$0x1] }
 0x188   : > { %12590 = vmatmul.mubr.msk.bf16.gmra.mrb[32].mxu1 %vm628_vm1, %v11108_v17  ;;  %v15575_v35 = vcombine.low %v8291_v39, %v8301_v0  ;;  %v8309_v33 = vor.u32 %v8308_v27, %v8305_v16  ;;  %v8324_v25 = vrot.slane %v8322_v56, 5  ;;  %v3070_v3 = vrot.slane %v2770_v30, 5  ;;  %v11794_v50 = vld [vmem:[%s14053_s21 + $0x84] sm:$0xf]  ;;  %v11809_v55 = vld [vmem:[%s14053_s21 + $0xc0] sm:$0xf] }
 0x189   : > { %12593 = vmatprep.mubr.msk.bf16.mxu1 %vm628_vm1, %v11109_v49  ;;  %v3073_v17 = vrot.slane %v2771_v12, 5  ;;  %v8319_v60 = vor.u32 %v8318_v28, %v8314_v22  ;;  %v8327_v26 = vshrl.u32 %v11791_v44, 16  ;;  %v8330_v62 = vshll.u32 %v11791_v44, 16  ;;  %v11796_v28 = vld [vmem:[%s14053_s21 + $0x8c] sm:$0x1] }
 0x18a   : > { %v8310_v61 = vrot.slane %v8309_v33, 4  ;;  %12888 = vmatmul.mubr.msk.bf16.vlgmr.msra.gmra.mrb[0].mxu0 %vm628_vm1, %v15427_v5  ;;  %v15591_v10 = vsel %vm14324_vm7, %v11084_v29, %v3070_v3  ;;  %v3072_v46 = vrot.slane %v3070_v3, 4  ;;  %v8336_v49 = vshll.u32 %v11792_v58, 16  ;;  %v2775_v3 = vld [vmem:[%s14053_s21 + $0x168] sm:$0xe] }
 0x18b   : > { %v8340_v14 = vshrl.u32 %v11792_v58, 16  ;;  %12952 = vmatpush3.bf16.msra.mxu0 %v15394_v51  ;;  %12891 = vmatprep.mubr.msk.bf16.mxu0 %vm628_vm1, %v15453_v7  ;;  %v8320_v30 = vrot.slane %v8319_v60, 4  ;;  %v8329_v24 = vrot.slane %v8327_v26, 4  ;;  %v8332_v5 = vrot.slane %v8330_v62, 5  ;;  %v11795_v51 = vld [vmem:[%s14053_s21 + $0x88] sm:$0xf] }
 0x18c   : > { %v8315_v59 = vsel %vm14159_vm4, %v8310_v61, %v8314_v22  ;;  %v15602_v57 = vsel %vm14324_vm7, %v3072_v46, %v3073_v17  ;;  %v8338_v12 = vrot.slane %v8336_v49, 5  ;;  %v8346_v16 = vshll.u32 %v11793_v18, 16  ;;  %v2776_v17 = vld [vmem:[%s14053_s21 + $0x16c] sm:$0xf]  ;;  %v2777_v61 = vld [vmem:[%s14053_s21 + $0x170] sm:$0x1] }
 0x18d   : > { %v8342_v39 = vrot.slane %v8340_v14, 4  ;;  %v8325_v7 = vsel %vm14159_vm4, %v8320_v30, %v8324_v25  ;;  %v11117_v27 = vcombine.low %v15591_v10, %v15602_v57  ;;  %v8333_v38 = vor.u32 %v8332_v5, %v8329_v24  ;;  %v11797_v49 = vld [vmem:[%s14053_s21 + $0x90] sm:$0xf]  ;;  %v11798_v14 = vld [vmem:[%s14053_s21 + $0x94] sm:$0xf] }
 0x18e   : > { %v11085_v0 = vrot.slane %v2772_v54, 9  ;;  %v15609_v22 = vcombine.low %v8315_v59, %v8325_v7  ;;  %v8348_v44 = vrot.slane %v8346_v16, 5  ;;  %v3077_v33 = vrot.slane %v2773_v2, 5  ;;  %v11799_v24 = vld [vmem:[%s14053_s21 + $0x98] sm:$0x1] }
 0x18f   : > { %v8343_v56 = vor.u32 %v8342_v39, %v8338_v12  ;;  %v8334_v58 = vrot.slane %v8333_v38, 4  ;;  %v3080_v18 = vrot.slane %v2774_v43, 5  ;;  %v8351_v25 = vshrl.u32 %v11794_v50, 16  ;;  %v2778_v16 = vld [vmem:[%s14053_s21 + $0x174] sm:$0xe] }
 0x190   : > { %12594 = vmatmul.mubr.msk.bf16.gmra.mrb[36].mxu1 %vm628_vm1, %v11110_v23  ;;  %v8354_v29 = vshll.u32 %v11794_v50, 16  ;;  %v15625_v36 = vsel %vm14324_vm7, %v11085_v0, %v3077_v33  ;;  %v3079_v19 = vrot.slane %v3077_v33, 4  ;;  %v8360_v23 = vshll.u32 %v11795_v51, 16 }
 0x191   : > { %12597 = vmatprep.mubr.msk.bf16.mxu1 %vm628_vm1, %v11111_v47  ;;  %v8344_v54 = vrot.slane %v8343_v56, 4  ;;  %v8339_v60 = vsel %vm14159_vm4, %v8334_v58, %v8338_v12  ;;  %v8353_v26 = vrot.slane %v8351_v25, 4  ;;  %v8364_v2 = vshrl.u32 %v11795_v51, 16  ;;  %v2780_v58 = vld [vmem:[%s14053_s21 + $0x17c] sm:$0x1] }
 0x192   : > { %v8356_v62 = vrot.slane %v8354_v29, 5  ;;  %12892 = vmatmul.mubr.msk.bf16.gmra.mrb[4].mxu0 %vm628_vm1, %v15486_v11  ;;  %v15635_v6 = vsel %vm14324_vm7, %v3079_v19, %v3080_v18  ;;  %v8362_v47 = vrot.slane %v8360_v23, 5  ;;  %v8370_v46 = vshll.u32 %v11796_v28, 16 }
 0x193   : > { %v8349_v4 = vsel %vm14159_vm4, %v8344_v54, %v8348_v44  ;;  %12895 = vmatprep.mubr.msk.bf16.mxu0 %vm628_vm1, %v15515_v8  ;;  %v11118_v11 = vcombine.low %v15625_v36, %v15635_v6  ;;  %v8366_v30 = vrot.slane %v8364_v2, 4  ;;  %v11086_v50 = vrot.slane %v2775_v3, 9  ;;  %v2779_v8 = vld [vmem:[%s14053_s21 + $0x178] sm:$0xf]  ;;  %v11802_v2 = vld [vmem:[%s14053_s21 + $0xa4] sm:$0x1] }
 0x194   : > { %v15641_v43 = vcombine.low %v8339_v60, %v8349_v4  ;;  %v8357_v59 = vor.u32 %v8356_v62, %v8353_v26  ;;  %v8372_v5 = vrot.slane %v8370_v46, 5  ;;  %v3084_v12 = vrot.slane %v2776_v17, 5  ;;  %v11800_v17 = vld [vmem:[%s14053_s21 + $0x9c] sm:$0xf] }
 0x195   : > { %v3087_v39 = vrot.slane %v2777_v61, 5  ;;  %v8367_v7 = vor.u32 %v8366_v30, %v8362_v47  ;;  %v8375_v38 = vshrl.u32 %v11797_v49, 16  ;;  %v8378_v0 = vshll.u32 %v11797_v49, 16 }
 0x196   : > { %v8358_v51 = vrot.slane %v8357_v59, 4  ;;  %v15650_v56 = vsel %vm14324_vm7, %v11086_v50, %v3084_v12  ;;  %v3086_v44 = vrot.slane %v3084_v12, 4  ;;  %v8384_v33 = vshll.u32 %v11798_v14, 16  ;;  %v2782_v59 = vld [vmem:[%s14053_s21 + $0x184] sm:$0xf] }
 0x197   : > { %v8388_v28 = vshrl.u32 %v11798_v14, 16  ;;  %v8368_v25 = vrot.slane %v8367_v7, 4  ;;  %v8377_v29 = vrot.slane %v8375_v38, 4  ;;  %v8380_v3 = vrot.slane %v8378_v0, 5  ;;  %v2781_v14 = vld [vmem:[%s14053_s21 + $0x180] sm:$0xe] }
 0x198   : > { %12598 = vmatmul.mubr.msk.bf16.gmra.mrb[40].mxu1 %vm628_vm1, %v11112_v48  ;;  %v8363_v18 = vsel %vm14159_vm4, %v8358_v51, %v8362_v47  ;;  %v15666_v61 = vsel %vm14324_vm7, %v3086_v44, %v3087_v39  ;;  %v8386_v42 = vrot.slane %v8384_v33, 5  ;;  %v8394_v48 = vshll.u32 %v11799_v24, 16  ;;  %v11804_v44 = vld [vmem:[%s14053_s21 + $0xac] sm:$0xf] }
 0x199   : > { %12601 = vmatprep.mubr.msk.bf16.mxu1 %vm628_vm1, %v11113_v45  ;;  %v8390_v40 = vrot.slane %v8388_v28, 4  ;;  %v8373_v54 = vsel %vm14159_vm4, %v8368_v25, %v8372_v5  ;;  %v11119_v19 = vcombine.low %v15650_v56, %v15666_v61  ;;  %v8381_v23 = vor.u32 %v8380_v3, %v8377_v29  ;;  %v11805_v25 = vld [vmem:[%s14053_s21 + $0xb0] sm:$0x1]  ;;  %v2784_v3 = vld [vmem:[%s14053_s21 + $0x18c] sm:$0xe] }
 0x19a   : > { %v11087_v37 = vrot.slane %v2778_v16, 9  ;;  %12896 = vmatmul.mubr.msk.bf16.gmra.mrb[8].mxu0 %vm628_vm1, %v15550_v52  ;;  %v15675_v45 = vcombine.low %v8363_v18, %v8373_v54  ;;  %v8396_v26 = vrot.slane %v8394_v48, 5  ;;  %v3091_v62 = vrot.slane %v2779_v8, 5  ;;  %v2783_v16 = vld [vmem:[%s14053_s21 + $0x188] sm:$0x1] }
 0x19b   : > { %v8391_v60 = vor.u32 %v8390_v40, %v8386_v42  ;;  %12899 = vmatprep.mubr.msk.bf16.mxu0 %vm628_vm1, %v15575_v35  ;;  %v8382_v4 = vrot.slane %v8381_v23, 4  ;;  %v3094_v47 = vrot.slane %v2780_v58, 5  ;;  %v8399_v46 = vshrl.u32 %v11800_v17, 16  ;;  %v11803_v8 = vld [vmem:[%s14053_s21 + $0xa8] sm:$0xf] }
 0x19c   : > { %v8402_v49 = vshll.u32 %v11800_v17, 16  ;;  %v15684_v52 = vsel %vm14324_vm7, %v11087_v37, %v3091_v62  ;;  %v3093_v24 = vrot.slane %v3091_v62, 4  ;;  %v8408_v5 = vshll.u32 %v11801_v53, 16  ;;  %v2785_v54 = vld [vmem:[%s14053_s21 + $0x190] sm:$0xf] }
 0x19d   : > { %v8392_v30 = vrot.slane %v8391_v60, 4  ;;  %v8387_v50 = vsel %vm14159_vm4, %v8382_v4, %v8386_v42  ;;  %v8401_v35 = vrot.slane %v8399_v46, 4  ;;  %v8412_v39 = vshrl.u32 %v11801_v53, 16  ;;  %v2786_v37 = vld [vmem:[%s14053_s21 + $0x194] sm:$0x1] }
 0x19e   : > { %v8404_v12 = vrot.slane %v8402_v49, 5  ;;  %v15693_v7 = vsel %vm14324_vm7, %v3093_v24, %v3094_v47  ;;  %v8410_v38 = vrot.slane %v8408_v5, 5  ;;  %v8418_v0 = vshll.u32 %v11802_v2, 16  ;;  %v11806_v53 = vld [vmem:[%s14053_s21 + $0xb4] sm:$0xf] }
 0x19f   : > { %v8397_v51 = vsel %vm14159_vm4, %v8392_v30, %v8396_v26  ;;  %v11120_v28 = vcombine.low %v15684_v52, %v15693_v7  ;;  %v8414_v18 = vrot.slane %v8412_v39, 4  ;;  %v11088_v20 = vrot.slane %v2781_v14, 9  ;;  %v11807_v30 = vld [vmem:[%s14053_s21 + $0xb8] sm:$0xf]  ;;  %v11821_v7 = vld [vmem:[%s14053_s21 + $0x108] sm:$0xf] }
 0x1a0   : > { %12602 = vmatmul.mubr.msk.bf16.gmra.mrb[44].mxu1 %vm628_vm1, %v11114_v15  ;;  %v15701_v33 = vcombine.low %v8387_v50, %v8397_v51  ;;  %v8405_v58 = vor.u32 %v8404_v12, %v8401_v35  ;;  %v8420_v29 = vrot.slane %v8418_v0, 5  ;;  %v3098_v32 = vrot.slane %v2782_v59, 5  ;;  %v11808_v12 = vld [vmem:[%s14053_s21 + $0xbc] sm:$0x1] }
 0x1a1   : > { %12605 = vmatprep.mubr.msk.bf16.mxu1 %vm628_vm1, %v11115_v31  ;;  %v3101_v15 = vrot.slane %v2783_v16, 5  ;;  %v8415_v42 = vor.u32 %v8414_v18, %v8410_v38  ;;  %v8423_v40 = vshrl.u32 %v11803_v8, 16  ;;  %v8426_v48 = vshll.u32 %v11803_v8, 16 }
 0x1a2   : > { %v8406_v17 = vrot.slane %v8405_v58, 4  ;;  %12900 = vmatmul.mubr.msk.bf16.gmra.mrb[12].mxu0 %vm628_vm1, %v15609_v22  ;;  %v15716_v21 = vsel %vm14324_vm7, %v11088_v20, %v3098_v32  ;;  %v3100_v1 = vrot.slane %v3098_v32, 4  ;;  %v8432_v31 = vshll.u32 %v11804_v44, 16  ;;  %v11811_v32 = vld [vmem:[%s14053_s21 + $0xc8] sm:$0x1] }
 0x1a3   : > { %v8436_v23 = vshrl.u32 %v11804_v44, 16  ;;  %12903 = vmatprep.mubr.msk.bf16.mxu0 %vm628_vm1, %v15641_v43  ;;  %v8416_v26 = vrot.slane %v8415_v42, 4  ;;  %v8425_v62 = vrot.slane %v8423_v40, 4  ;;  %v8428_v22 = vrot.slane %v8426_v48, 5  ;;  %v11812_v42 = vld [vmem:[%s14053_s21 + $0xcc] sm:$0xf] }
 0x1a4   : > { %v8411_v60 = vsel %vm14159_vm4, %v8406_v17, %v8410_v38  ;;  %v15726_v2 = vsel %vm14324_vm7, %v3100_v1, %v3101_v15  ;;  %v8434_v4 = vrot.slane %v8432_v31, 5  ;;  %v8442_v46 = vshll.u32 %v11805_v25, 16  ;;  %v11813_v31 = vld [vmem:[%s14053_s21 + $0xd0] sm:$0xf] }
 0x1a5   : > { %v8438_v47 = vrot.slane %v8436_v23, 4  ;;  %v8421_v49 = vsel %vm14159_vm4, %v8416_v26, %v8420_v29  ;;  %v11121_v43 = vcombine.low %v15716_v21, %v15726_v2  ;;  %v8429_v14 = vor.u32 %v8428_v22, %v8425_v62  ;;  %v11810_v29 = vld [vmem:[%s14053_s21 + $0xc4] sm:$0xf]  ;;  %v11814_v26 = vld [vmem:[%s14053_s21 + $0xd4] sm:$0x1]  ;;  %v13951_v21 = vld [vmem:[%s14053_s21 + $0xc] sm:$0xff]  }
 0x1a6   : > { %v11089_v59 = vrot.slane %v2784_v3, 9  ;;  %v15733_v24 = vcombine.low %v8411_v60, %v8421_v49  ;;  %v8444_v50 = vrot.slane %v8442_v46, 5  ;;  %v3105_v35 = vrot.slane %v2785_v54, 5 }
 0x1a7   : > { %v8439_v5 = vor.u32 %v8438_v47, %v8434_v4  ;;  %v8430_v39 = vrot.slane %v8429_v14, 4  ;;  %v3108_v16 = vrot.slane %v2786_v37, 5  ;;  %v8447_v51 = vshrl.u32 %v11806_v53, 16 }
 0x1a8   : > { %12606 = vmatmul.mubr.msk.bf16.gmra.mrb[48].mxu1 %vm628_vm1, %v11116_v63  ;;  %v8450_v38 = vshll.u32 %v11806_v53, 16  ;;  %v15746_v8 = vsel %vm14324_vm7, %v11089_v59, %v3105_v35  ;;  %v3107_v44 = vrot.slane %v3105_v35, 4  ;;  %v8456_v13 = vshll.u32 %v11807_v30, 16  ;;  %v11815_v35 = vld [vmem:[%s14053_s21 + $0xf0] sm:$0xf] }
 0x1a9   : > { %12609 = vmatprep.mubr.msk.bf16.mxu1 %vm628_vm1, %v11117_v27  ;;  %v8440_v0 = vrot.slane %v8439_v5, 4  ;;  %v8435_v63 = vsel %vm14159_vm4, %v8430_v39, %v8434_v4  ;;  %v8449_v58 = vrot.slane %v8447_v51, 4  ;;  %v8460_v25 = vshrl.u32 %v11807_v30, 16  ;;  %v11816_v39 = vld [vmem:[%s14053_s21 + $0xf4] sm:$0xf] }
 0x1aa   : > { %v8452_v18 = vrot.slane %v8450_v38, 5  ;;  %12904 = vmatmul.mubr.msk.bf16.gmra.mrb[16].mxu0 %vm628_vm1, %v15675_v45  ;;  %v15758_v57 = vsel %vm14324_vm7, %v3107_v44, %v3108_v16  ;;  %v8458_v27 = vrot.slane %v8456_v13, 5  ;;  %v8466_v20 = vshll.u32 %v11808_v12, 16 }
 0x1ab   : > { %v8445_v10 = vsel %vm14159_vm4, %v8440_v0, %v8444_v50  ;;  %12907 = vmatprep.mubr.msk.bf16.mxu0 %vm628_vm1, %v15701_v33  ;;  %v11122_v3 = vcombine.low %v15746_v8, %v15758_v57  ;;  %v8462_v17 = vrot.slane %v8460_v25, 4  ;;  %v8471_v48 = vshrl.u32 %v11809_v55, 16 }
 0x1ac   : > { %v11876_v15 = vcombine.low %v8435_v63, %v8445_v10  ;;  %v8453_v45 = vor.u32 %v8452_v18, %v8449_v58  ;;  %v8468_v40 = vrot.slane %v8466_v20, 5  ;;  %v8474_v54 = vshll.u32 %v11809_v55, 16  ;;  %v11817_v63 = vld [vmem:[%s14053_s21 + $0xf8] sm:$0x1]  ;;  %v11819_v20 = vld [vmem:[%s14053_s21 + $0x100] sm:$0xf] }
 0x1ad   : > { %v8480_v1 = vshll.u32 %v11810_v29, 16  ;;  %v8463_v37 = vor.u32 %v8462_v17, %v8458_v27  ;;  %v8484_v53 = vshrl.u32 %v11810_v29, 16  ;;  %v8490_v60 = vshll.u32 %v11811_v32, 16 }
 0x1ae   : > { %v8454_v23 = vrot.slane %v8453_v45, 4  ;;  %v8473_v62 = vrot.slane %v8471_v48, 4  ;;  %v8476_v33 = vrot.slane %v8474_v54, 5  ;;  %v8495_v4 = vshrl.u32 %v11812_v42, 16  ;;  %v11820_v54 = vld [vmem:[%s14053_s21 + $0x104] sm:$0x1] }
 0x1af   : > { %v8482_v22 = vrot.slane %v8480_v1, 5  ;;  %v8464_v46 = vrot.slane %v8463_v37, 4  ;;  %v8486_v49 = vrot.slane %v8484_v53, 4  ;;  %v8492_v14 = vrot.slane %v8490_v60, 5 }
 0x1b0   : > { %12610 = vmatmul.mubr.msk.bf16.gmra.mrb[52].mxu1 %vm628_vm1, %v11118_v11  ;;  %v8459_v47 = vsel %vm14159_vm4, %v8454_v23, %v8458_v27  ;;  %v8477_v59 = vor.u32 %v8476_v33, %v8473_v62  ;;  %v8497_v30 = vrot.slane %v8495_v4, 4  ;;  %v8498_v5 = vshll.u32 %v11812_v42, 16  ;;  %v11823_v4 = vld [vmem:[%s14053_s21 + $0x110] sm:$0x1] }
 0x1b1   : > { %12613 = vmatprep.mubr.msk.bf16.mxu1 %vm628_vm1, %v11119_v19  ;;  %v8504_v50 = vshll.u32 %v11813_v31, 16  ;;  %v8469_v36 = vsel %vm14159_vm4, %v8464_v46, %v8468_v40  ;;  %v8487_v6 = vor.u32 %v8486_v49, %v8482_v22  ;;  %v8508_v11 = vshrl.u32 %v11813_v31, 16 }
 0x1b2   : > { %v8514_v12 = vshll.u32 %v11814_v26, 16  ;;  %12908 = vmatmul.mubr.msk.bf16.gmra.mrb[20].mxu0 %vm628_vm1, %v15733_v24  ;;  %v11877_v56 = vcombine.low %v8459_v47, %v8469_v36  ;;  %v8478_v61 = vrot.slane %v8477_v59, 4  ;;  %v8500_v19 = vrot.slane %v8498_v5, 5  ;;  %v11818_v24 = vld [vmem:[%s14053_s21 + $0xfc] sm:$0xf] }
 0x1b3   : > { %v8506_v16 = vrot.slane %v8504_v50, 5  ;;  %12911 = vmatprep.mubr.msk.bf16.mxu0 %vm628_vm1, %v11876_v15  ;;  %v8488_v51 = vrot.slane %v8487_v6, 4  ;;  %v8510_v38 = vrot.slane %v8508_v11, 4  ;;  %v8519_v44 = vshrl.u32 %v11815_v35, 16  ;;  %v11824_v59 = vld [vmem:[%s14053_s21 + $0x114] sm:$0xf] }
 0x1b4   : > { %v8516_v0 = vrot.slane %v8514_v12, 5  ;;  %v8483_v13 = vsel %vm14159_vm4, %v8478_v61, %v8482_v22  ;;  %v8501_v55 = vor.u32 %v8500_v19, %v8497_v30  ;;  %v8522_v58 = vshll.u32 %v11815_v35, 16  ;;  %v11825_v36 = vld [vmem:[%s14053_s21 + $0x118] sm:$0xf] }
 0x1b5   : > { %v8528_v18 = vshll.u32 %v11816_v39, 16  ;;  %v8493_v25 = vsel %vm14159_vm4, %v8488_v51, %v8492_v14  ;;  %v8511_v29 = vor.u32 %v8510_v38, %v8506_v16  ;;  %v8521_v10 = vrot.slane %v8519_v44, 4  ;;  %v11826_v44 = vld [vmem:[%s14053_s21 + $0x11c] sm:$0x1] }
 0x1b6   : > { %v8532_v27 = vshrl.u32 %v11816_v39, 16  ;;  %v11878_v32 = vcombine.low %v8483_v13, %v8493_v25  ;;  %v8502_v15 = vrot.slane %v8501_v55, 4  ;;  %v8524_v45 = vrot.slane %v8522_v58, 5  ;;  %v13952_v25 = vld [vmem:[%s14053_s21 + $0x18] sm:$0xff]  }
 0x1b7   : > { %v8530_v17 = vrot.slane %v8528_v18, 5  ;;  %v8512_v42 = vrot.slane %v8511_v29, 4  ;;  %v8538_v48 = vshll.u32 %v11817_v63, 16  ;;  %v8543_v1 = vshrl.u32 %v11818_v24, 16 }
 0x1b8   : > { %12614 = vmatmul.mubr.msk.bf16.gmra.mrb[56].mxu1 %vm628_vm1, %v11120_v28  ;;  %v8534_v40 = vrot.slane %v8532_v27, 4  ;;  %v8507_v31 = vsel %vm14159_vm4, %v8502_v15, %v8506_v16  ;;  %v8525_v23 = vor.u32 %v8524_v45, %v8521_v10  ;;  %v8546_v37 = vshll.u32 %v11818_v24, 16  ;;  %v11822_v28 = vld [vmem:[%s14053_s21 + $0x10c] sm:$0xf]  ;;  %v11827_v24 = vld [vmem:[%s14053_s21 + $0x120] sm:$0xf] }
 0x1b9   : > { %12617 = vmatprep.mubr.msk.bf16.mxu1 %vm628_vm1, %v11121_v43  ;;  %v8552_v52 = vshll.u32 %v11819_v20, 16  ;;  %v8517_v53 = vsel %vm14159_vm4, %v8512_v42, %v8516_v0  ;;  %v8540_v26 = vrot.slane %v8538_v48, 5  ;;  %v8545_v62 = vrot.slane %v8543_v1, 4  ;;  %v11828_v15 = vld [vmem:[%s14053_s21 + $0x124] sm:$0xf] }
 0x1ba   : > { %v8535_v60 = vor.u32 %v8534_v40, %v8530_v17  ;;  %12912 = vmatmul.mubr.msk.bf16.gmra.mrb[24].mxu0 %vm628_vm1, %v11877_v56  ;;  %v11879_v2 = vcombine.low %v8507_v31, %v8517_v53  ;;  %v8526_v43 = vrot.slane %v8525_v23, 4  ;;  %v8548_v33 = vrot.slane %v8546_v37, 5  ;;  %v11829_v40 = vld [vmem:[%s14053_s21 + $0x128] sm:$0x1] }
 0x1bb   : > { %v8554_v22 = vrot.slane %v8552_v52, 5  ;;  %12915 = vmatprep.mubr.msk.bf16.mxu0 %vm628_vm1, %v11878_v32  ;;  %v8556_v46 = vshrl.u32 %v11819_v20, 16  ;;  %v8562_v49 = vshll.u32 %v11820_v54, 16  ;;  %v8567_v14 = vshrl.u32 %v11821_v7, 16  ;;  %v11830_v54 = vld [vmem:[%s14053_s21 + $0x12c] sm:$0xf] }
 0x1bc   : > { %v8536_v47 = vrot.slane %v8535_v60, 4  ;;  %v8531_v30 = vsel %vm14159_vm4, %v8526_v43, %v8530_v17  ;;  %v8549_v5 = vor.u32 %v8548_v33, %v8545_v62  ;;  %v8570_v50 = vshll.u32 %v11821_v7, 16  ;;  %v13953_v1 = vld [vmem:[%s14053_s21 + $0x24] sm:$0xff]   ;;  %v11831_v43 = vld [vmem:[%s14053_s21 + $0x130] sm:$0xf] }
 0x1bd   : > { %v8576_v35 = vshll.u32 %v11822_v28, 16  ;;  %v8558_v11 = vrot.slane %v8556_v46, 4  ;;  %v8564_v12 = vrot.slane %v8562_v49, 5  ;;  %v8569_v39 = vrot.slane %v8567_v14, 4 }
 0x1be   : > { %v8541_v6 = vsel %vm14159_vm4, %v8536_v47, %v8540_v26  ;;  %v8550_v61 = vrot.slane %v8549_v5, 4  ;;  %v8572_v19 = vrot.slane %v8570_v50, 5  ;;  %v8580_v38 = vshrl.u32 %v11822_v28, 16  ;;  %v11832_v47 = vld [vmem:[%s14053_s21 + $0x134] sm:$0x1] }
 0x1bf   : > { %v11880_v56 = vcombine.low %v8531_v30, %v8541_v6  ;;  %v8578_v16 = vrot.slane %v8576_v35, 5  ;;  %v8559_v51 = vor.u32 %v8558_v11, %v8554_v22  ;;  %v8586_v0 = vshll.u32 %v11823_v4, 16  ;;  %v13954_v5 = vld [vmem:[%s14053_s21 + $0x30] sm:$0xff]   ;;  %v11833_v11 = vld [vmem:[%s14053_s21 + $0x138] sm:$0xf] }
 0x1c0   : > { %12618 = vmatmul.mubr.msk.bf16.gmra.mrb[60].mxu1 %vm628_vm1, %v11122_v3  ;;  %v8591_v13 = vshrl.u32 %v11824_v59, 16  ;;  %v8555_v55 = vsel %vm14159_vm4, %v8550_v61, %v8554_v22  ;;  %v8573_v63 = vor.u32 %v8572_v19, %v8569_v39  ;;  %v8594_v58 = vshll.u32 %v11824_v59, 16  ;;  %v11834_v19 = vld [vmem:[%s14053_s21 + $0x13c] sm:$0xf] }
 0x1c1   : > { %12623 = vmatprep.mubr.msk.bf16.mxu1 %vm628_vm1, %v13951_v21  ;;  %v8600_v18 = vshll.u32 %v11825_v36, 16  ;;  %v8560_v8 = vrot.slane %v8559_v51, 4  ;;  %v8582_v57 = vrot.slane %v8580_v38, 4  ;;  %v8588_v3 = vrot.slane %v8586_v0, 5 }
 0x1c2   : > { %v8593_v29 = vrot.slane %v8591_v13, 4  ;;  %12916 = vmatmul.mubr.msk.bf16.gmra.mrb[28].mxu0 %vm628_vm1, %v11879_v2  ;;  %v8574_v10 = vrot.slane %v8573_v63, 4  ;;  %v8596_v27 = vrot.slane %v8594_v58, 5  ;;  %v8604_v32 = vshrl.u32 %v11825_v36, 16 }
 0x1c3   : > { %v8602_v20 = vrot.slane %v8600_v18, 5  ;;  %12919 = vmatprep.mubr.msk.bf16.mxu0 %vm628_vm1, %v11880_v56  ;;  %v8565_v45 = vsel %vm14159_vm4, %v8560_v8, %v8564_v12  ;;  %v8583_v17 = vor.u32 %v8582_v57, %v8578_v16  ;;  %v8610_v42 = vshll.u32 %v11826_v44, 16  ;;  %v13955_v12 = vld [vmem:[%s14053_s21 + $0x3c] sm:$0xff]  }
 0x1c4   : > { %v8615_v48 = vshrl.u32 %v11827_v24, 16  ;;  %v11881_v31 = vcombine.low %v8555_v55, %v8565_v45  ;;  %v8579_v23 = vsel %vm14159_vm4, %v8574_v10, %v8578_v16  ;;  %v8597_v37 = vor.u32 %v8596_v27, %v8593_v29  ;;  %v11835_v44 = vld [vmem:[%s14053_s21 + $0x140] sm:$0x1]  ;;  %v11836_v27 = vld [vmem:[%s14053_s21 + $0x144] sm:$0xf] }
 0x1c5   : > { %v8606_v52 = vrot.slane %v8604_v32, 4  ;;  %v8584_v7 = vrot.slane %v8583_v17, 4  ;;  %v8612_v28 = vrot.slane %v8610_v42, 5  ;;  %v8618_v60 = vshll.u32 %v11827_v24, 16 }
 0x1c6   : > { %v8617_v53 = vrot.slane %v8615_v48, 4  ;;  %v8598_v26 = vrot.slane %v8597_v37, 4  ;;  %v8624_v21 = vshll.u32 %v11828_v15, 16  ;;  %v8628_v2 = vshrl.u32 %v11828_v15, 16 }
 0x1c7   : > { %v8607_v62 = vor.u32 %v8606_v52, %v8602_v20  ;;  %v8589_v33 = vsel %vm14159_vm4, %v8584_v7, %v8588_v3  ;;  %v8620_v22 = vrot.slane %v8618_v60, 5  ;;  %v8634_v4 = vshll.u32 %v11829_v40, 16  ;;  %v11838_v52 = vld [vmem:[%s14053_s21 + $0x14c] sm:$0x1] }
 0x1c8   : > { %12624 = vmatmul.mubr.msk.bf16.vlgmr.msra.gmra.mrb[0].mxu1 %vm628_vm1, %v13952_v25  ;;  %v8639_v46 = vshrl.u32 %v11830_v54, 16  ;;  %v11882_v49 = vcombine.low %v8579_v23, %v8589_v33  ;;  %v8603_v14 = vsel %vm14159_vm4, %v8598_v26, %v8602_v20  ;;  %v8626_v30 = vrot.slane %v8624_v21, 5  ;;  %v11837_v20 = vld [vmem:[%s14053_s21 + $0x148] sm:$0xf]  ;;  %v11839_v21 = vld [vmem:[%s14053_s21 + $0x150] sm:$0xf] }
 0x1c9   : > { %13018 = vmatpush3.bf16.msra.mxu1 %v14143_v9  ;;  %12627 = vmatprep.mubr.msk.bf16.mxu1 %vm628_vm1, %v13953_v1  ;;  %v8608_v59 = vrot.slane %v8607_v62, 4  ;;  %v8621_v50 = vor.u32 %v8620_v22, %v8617_v53  ;;  %v8630_v35 = vrot.slane %v8628_v2, 4  ;;  %v8636_v36 = vrot.slane %v8634_v4, 5  ;;  %v13956_v1 = vld [vmem:[%s14053_s21 + $0x48] sm:$0xff]   ;;  %v11840_v2 = vld [vmem:[%s14053_s21 + $0x154] sm:$0xf] }
 0x1ca   : > { %v8641_v6 = vrot.slane %v8639_v46, 4  ;;  %12920 = vmatmul.mubr.msk.bf16.gmra.mrb[32].mxu0 %vm628_vm1, %v11881_v31  ;;  %v8642_v39 = vshll.u32 %v11830_v54, 16  ;;  %v8648_v56 = vshll.u32 %v11831_v43, 16  ;;  %v8652_v61 = vshrl.u32 %v11831_v43, 16 }
 0x1cb   : > { %v8613_v9 = vsel %vm14159_vm4, %v8608_v59, %v8612_v28  ;;  %12923 = vmatprep.mubr.msk.bf16.mxu0 %vm628_vm1, %v11882_v49  ;;  %v8622_v51 = vrot.slane %v8621_v50, 4  ;;  %v8631_v38 = vor.u32 %v8630_v35, %v8626_v30  ;;  %v8658_v0 = vshll.u32 %v11832_v47, 16  ;;  %v13957_v28 = vld [vmem:[%s14053_s21 + $0x54] sm:$0xff]  }
 0x1cc   : > { %v11883_v16 = vcombine.low %v8603_v14, %v8613_v9  ;;  %v8644_v13 = vrot.slane %v8642_v39, 5  ;;  %v8650_v55 = vrot.slane %v8648_v56, 5  ;;  %v8654_v63 = vrot.slane %v8652_v61, 4  ;;  %v11841_v59 = vld [vmem:[%s14053_s21 + $0x158] sm:$0x1] }
 0x1cd   : > { %v8663_v58 = vshrl.u32 %v11833_v11, 16  ;;  %v8627_v18 = vsel %vm14159_vm4, %v8622_v51, %v8626_v30  ;;  %v8632_v24 = vrot.slane %v8631_v38, 4  ;;  %v8660_v25 = vrot.slane %v8658_v0, 5  ;;  %v11843_v39 = vld [vmem:[%s14053_s21 + $0x160] sm:$0xf] }
 0x1ce   : > { %v8666_v8 = vshll.u32 %v11833_v11, 16  ;;  %v8645_v57 = vor.u32 %v8644_v13, %v8641_v6  ;;  %v8655_v3 = vor.u32 %v8654_v63, %v8650_v55  ;;  %v8672_v10 = vshll.u32 %v11834_v19, 16  ;;  %v11844_v13 = vld [vmem:[%s14053_s21 + $0x164] sm:$0x1] }
 0x1cf   : > { %v8665_v29 = vrot.slane %v8663_v58, 4  ;;  %v8637_v32 = vsel %vm14159_vm4, %v8632_v24, %v8636_v36  ;;  %v8676_v45 = vshrl.u32 %v11834_v19, 16  ;;  %v8682_v17 = vshll.u32 %v11835_v44, 16  ;;  %v11842_v36 = vld [vmem:[%s14053_s21 + $0x15c] sm:$0xf] }
 0x1d0   : > { %12628 = vmatmul.mubr.msk.bf16.gmra.mrb[4].mxu1 %vm628_vm1, %v13954_v5  ;;  %v8668_v15 = vrot.slane %v8666_v8, 5  ;;  %v11884_v42 = vcombine.low %v8627_v18, %v8637_v32  ;;  %v8646_v40 = vrot.slane %v8645_v57, 4  ;;  %v8656_v48 = vrot.slane %v8655_v3, 4  ;;  %v11845_v24 = vld [vmem:[%s14053_s21 + $0x168] sm:$0xf] }
 0x1d1   : > { %12631 = vmatprep.mubr.msk.bf16.mxu1 %vm628_vm1, %v13955_v12  ;;  %v8674_v54 = vrot.slane %v8672_v10, 5  ;;  %v8678_v23 = vrot.slane %v8676_v45, 4  ;;  %v8684_v37 = vrot.slane %v8682_v17, 5  ;;  %v8687_v7 = vshrl.u32 %v11836_v27, 16  ;;  %v13958_v10 = vld [vmem:[%s14053_s21 + $0x60] sm:$0xff]   ;;  %v13959_v45 = vld [vmem:[%s14053_s21 + $0x6c] sm:$0xff]  }
 0x1d2   : > { %v8669_v31 = vor.u32 %v8668_v15, %v8665_v29  ;;  %12924 = vmatmul.mubr.msk.bf16.gmra.mrb[36].mxu0 %vm628_vm1, %v11883_v16  ;;  %v8651_v53 = vsel %vm14159_vm4, %v8646_v40, %v8650_v55  ;;  %v8661_v60 = vsel %vm14159_vm4, %v8656_v48, %v8660_v25  ;;  %v8690_v26 = vshll.u32 %v11836_v27, 16  ;;  %v11846_v29 = vld [vmem:[%s14053_s21 + $0x16c] sm:$0xf] }
 0x1d3   : > { %v8696_v62 = vshll.u32 %v11837_v20, 16  ;;  %12927 = vmatprep.mubr.msk.bf16.mxu0 %vm628_vm1, %v11884_v42  ;;  %v11885_v43 = vcombine.low %v8651_v53, %v8661_v60  ;;  %v8679_v22 = vor.u32 %v8678_v23, %v8674_v54  ;;  %v8689_v4 = vrot.slane %v8687_v7, 4  ;;  %v11848_v60 = vld [vmem:[%s14053_s21 + $0x174] sm:$0xf] }
 0x1d4   : > { %v8670_v33 = vrot.slane %v8669_v31, 4  ;;  %v8692_v47 = vrot.slane %v8690_v26, 5  ;;  %v8700_v49 = vshrl.u32 %v11837_v20, 16  ;;  %v8706_v14 = vshll.u32 %v11838_v52, 16 }
 0x1d5   : > { %v8698_v46 = vrot.slane %v8696_v62, 5  ;;  %v8680_v5 = vrot.slane %v8679_v22, 4  ;;  %v8711_v50 = vshrl.u32 %v11839_v21, 16  ;;  %v8714_v35 = vshll.u32 %v11839_v21, 16 }
 0x1d6   : > { %v8675_v30 = vsel %vm14159_vm4, %v8670_v33, %v8674_v54  ;;  %v8693_v6 = vor.u32 %v8692_v47, %v8689_v4  ;;  %v8702_v11 = vrot.slane %v8700_v49, 4  ;;  %v8708_v12 = vrot.slane %v8706_v14, 5  ;;  %v11849_v47 = vld [vmem:[%s14053_s21 + $0x178] sm:$0xf] }
 0x1d7   : > { %v8720_v9 = vshll.u32 %v11840_v2, 16  ;;  %v8685_v56 = vsel %vm14159_vm4, %v8680_v5, %v8684_v37  ;;  %v8713_v61 = vrot.slane %v8711_v50, 4  ;;  %v8716_v19 = vrot.slane %v8714_v35, 5  ;;  %v11847_v37 = vld [vmem:[%s14053_s21 + $0x170] sm:$0x1]  ;;  %v13960_v5 = vld [vmem:[%s14053_s21 + $0x78] sm:$0xff]  }
 0x1d8   : > { %12632 = vmatmul.mubr.msk.bf16.gmra.mrb[8].mxu1 %vm628_vm1, %v13956_v1  ;;  %v8724_v16 = vshrl.u32 %v11840_v2, 16  ;;  %v11886_v51 = vcombine.low %v8675_v30, %v8685_v56  ;;  %v8694_v38 = vrot.slane %v8693_v6, 4  ;;  %v8703_v0 = vor.u32 %v8702_v11, %v8698_v46  ;;  %v11850_v30 = vld [vmem:[%s14053_s21 + $0x17c] sm:$0x1]  ;;  %v11851_v11 = vld [vmem:[%s14053_s21 + $0x180] sm:$0xf] }
 0x1d9   : > { %12635 = vmatprep.mubr.msk.bf16.mxu1 %vm628_vm1, %v13957_v28  ;;  %v8722_v44 = vrot.slane %v8720_v9, 5  ;;  %v8717_v55 = vor.u32 %v8716_v19, %v8713_v61  ;;  %v8730_v58 = vshll.u32 %v11841_v59, 16  ;;  %v8735_v18 = vshrl.u32 %v11842_v36, 16  ;;  %v13961_v61 = vld [vmem:[%s14053_s21 + $0x84] sm:$0xff]  }
 0x1da   : > { %v8726_v63 = vrot.slane %v8724_v16, 4  ;;  %12928 = vmatmul.mubr.msk.bf16.gmra.mrb[40].mxu0 %vm628_vm1, %v11885_v43  ;;  %v8699_v25 = vsel %vm14159_vm4, %v8694_v38, %v8698_v46  ;;  %v8704_v8 = vrot.slane %v8703_v0, 4  ;;  %v8738_v57 = vshll.u32 %v11842_v36, 16  ;;  %v11852_v0 = vld [vmem:[%s14053_s21 + $0x184] sm:$0xf] }
 0x1db   : > { %v8744_v3 = vshll.u32 %v11843_v39, 16  ;;  %12931 = vmatprep.mubr.msk.bf16.mxu0 %vm628_vm1, %v11886_v51  ;;  %v8718_v27 = vrot.slane %v8717_v55, 4  ;;  %v8732_v32 = vrot.slane %v8730_v58, 5  ;;  %v8737_v15 = vrot.slane %v8735_v18, 4  ;;  %v11853_v58 = vld [vmem:[%s14053_s21 + $0x188] sm:$0x1] }
 0x1dc   : > { %v8727_v20 = vor.u32 %v8726_v63, %v8722_v44  ;;  %v8709_v17 = vsel %vm14159_vm4, %v8704_v8, %v8708_v12  ;;  %v8740_v42 = vrot.slane %v8738_v57, 5  ;;  %v8748_v48 = vshrl.u32 %v11843_v39, 16  ;;  %v11854_v57 = vld [vmem:[%s14053_s21 + $0x18c] sm:$0xf] }
 0x1dd   : > { %v8746_v40 = vrot.slane %v8744_v3, 5  ;;  %v11887_v54 = vcombine.low %v8699_v25, %v8709_v17  ;;  %v8723_v1 = vsel %vm14159_vm4, %v8718_v27, %v8722_v44  ;;  %v8754_v23 = vshll.u32 %v11844_v13, 16  ;;  %v11855_v17 = vld [vmem:[%s14053_s21 + $0x190] sm:$0xf] }
 0x1de   : > { %v8728_v31 = vrot.slane %v8727_v20, 4  ;;  %v8741_v52 = vor.u32 %v8740_v42, %v8737_v15  ;;  %v8750_v7 = vrot.slane %v8748_v48, 4  ;;  %v8759_v28 = vshrl.u32 %v11845_v24, 16 }
 0x1df   : > { %v8762_v53 = vshll.u32 %v11845_v24, 16  ;;  %v8756_v62 = vrot.slane %v8754_v23, 5  ;;  %v8768_v21 = vshll.u32 %v11846_v29, 16  ;;  %v8772_v2 = vshrl.u32 %v11846_v29, 16 }
 0x1e0   : > { %12636 = vmatmul.mubr.msk.bf16.gmra.mrb[12].mxu1 %vm628_vm1, %v13958_v10  ;;  %v8733_v26 = vsel %vm14159_vm4, %v8728_v31, %v8732_v32  ;;  %v8742_v33 = vrot.slane %v8741_v52, 4  ;;  %v8751_v22 = vor.u32 %v8750_v7, %v8746_v40  ;;  %v8761_v4 = vrot.slane %v8759_v28, 4  ;;  %v11857_v31 = vld [vmem:[%s14053_s21 + $0x198] sm:$0xf]  ;;  %v13962_v28 = vld [vmem:[%s14053_s21 + $0x90] sm:$0xff]  }
 0x1e1   : > { %12639 = vmatprep.mubr.msk.bf16.mxu1 %vm628_vm1, %v13959_v45  ;;  %v11888_v43 = vcombine.low %v8723_v1, %v8733_v26  ;;  %v8764_v46 = vrot.slane %v8762_v53, 5  ;;  %v8770_v49 = vrot.slane %v8768_v21, 5  ;;  %v8774_v14 = vrot.slane %v8772_v2, 4  ;;  %v11856_v1 = vld [vmem:[%s14053_s21 + $0x194] sm:$0x1]  ;;  %v13963_v21 = vld [vmem:[%s14053_s21 + $0x9c] sm:$0xff]  }
 0x1e2   : > { %v8778_v59 = vshll.u32 %v11847_v37, 16  ;;  %12932 = vmatmul.mubr.msk.bf16.gmra.mrb[44].mxu0 %vm628_vm1, %v11887_v54  ;;  %v8747_v50 = vsel %vm14159_vm4, %v8742_v33, %v8746_v40  ;;  %v8752_v35 = vrot.slane %v8751_v22, 4  ;;  %v8783_v36 = vshrl.u32 %v11848_v60, 16 }
 0x1e3   : > { %v8786_v6 = vshll.u32 %v11848_v60, 16  ;;  %12935 = vmatprep.mubr.msk.bf16.mxu0 %vm628_vm1, %v11888_v43  ;;  %v8765_v12 = vor.u32 %v8764_v46, %v8761_v4  ;;  %v8775_v9 = vor.u32 %v8774_v14, %v8770_v49  ;;  %v8792_v56 = vshll.u32 %v11849_v47, 16  ;;  %v11858_v14 = vld [vmem:[%s14053_s21 + $0x19c] sm:$0xf] }
 0x1e4   : > { %v8780_v39 = vrot.slane %v8778_v59, 5  ;;  %v8757_v19 = vsel %vm14159_vm4, %v8752_v35, %v8756_v62  ;;  %v8785_v16 = vrot.slane %v8783_v36, 4  ;;  %v8796_v38 = vshrl.u32 %v11849_v47, 16  ;;  %v11859_v59 = vld [vmem:[%s14053_s21 + $0x1a0] sm:$0x1] }
 0x1e5   : > { %v8788_v51 = vrot.slane %v8786_v6, 5  ;;  %v11889_v44 = vcombine.low %v8747_v50, %v8757_v19  ;;  %v8766_v13 = vrot.slane %v8765_v12, 4  ;;  %v8776_v55 = vrot.slane %v8775_v9, 4  ;;  %v11860_v9 = vld [vmem:[%s14053_s21 + $0x1a4] sm:$0xf] }
 0x1e6   : > { %v8794_v63 = vrot.slane %v8792_v56, 5  ;;  %v8798_v24 = vrot.slane %v8796_v38, 4  ;;  %v8802_v25 = vshll.u32 %v11850_v30, 16  ;;  %v8807_v8 = vshrl.u32 %v11851_v11, 16 }
 0x1e7   : > { %v8789_v18 = vor.u32 %v8788_v51, %v8785_v16  ;;  %v8771_v3 = vsel %vm14159_vm4, %v8766_v13, %v8770_v49  ;;  %v8781_v29 = vsel %vm14159_vm4, %v8776_v55, %v8780_v39  ;;  %v8810_v10 = vshll.u32 %v11851_v11, 16  ;;  %v11861_v16 = vld [vmem:[%s14053_s21 + $0x1a8] sm:$0xf]  ;;  %v11862_v13 = vld [vmem:[%s14053_s21 + $0x1ac] sm:$0x1] }
 0x1e8   : > { %12640 = vmatmul.mubr.msk.bf16.gmra.mrb[16].mxu1 %vm628_vm1, %v13960_v5  ;;  %v8816_v27 = vshll.u32 %v11852_v0, 16  ;;  %v11890_v20 = vcombine.low %v8771_v3, %v8781_v29  ;;  %v8799_v15 = vor.u32 %v8798_v24, %v8794_v63  ;;  %v8804_v45 = vrot.slane %v8802_v25, 5  ;;  %v13964_v55 = vld [vmem:[%s14053_s21 + $0xa8] sm:$0xff]   ;;  %v11928_v25 = vld [vmem:[%s14053_s21 + $0x18] sm:$0xe] }
 0x1e9   : > { %12643 = vmatprep.mubr.msk.bf16.mxu1 %vm628_vm1, %v13961_v61  ;;  %v8790_v32 = vrot.slane %v8789_v18, 4  ;;  %v8809_v42 = vrot.slane %v8807_v8, 4  ;;  %v8812_v40 = vrot.slane %v8810_v10, 5  ;;  %v8820_v54 = vshrl.u32 %v11852_v0, 16  ;;  %v11929_v10 = vld [vmem:[%s14053_s21 + $0x1c] sm:$0xf] }
 0x1ea   : > { %v8818_v48 = vrot.slane %v8816_v27, 5  ;;  %12936 = vmatmul.mubr.msk.bf16.gmra.mrb[48].mxu0 %vm628_vm1, %v11889_v44  ;;  %v8800_v37 = vrot.slane %v8799_v15, 4  ;;  %v8826_v52 = vshll.u32 %v11853_v58, 16  ;;  %v8831_v7 = vshrl.u32 %v11854_v57, 16  ;;  %v13965_v27 = vld [vmem:[%s14053_s21 + $0xb4] sm:$0xff]  }
 0x1eb   : > { %v8795_v23 = vsel %vm14159_vm4, %v8790_v32, %v8794_v63  ;;  %12939 = vmatprep.mubr.msk.bf16.mxu0 %vm628_vm1, %v11890_v20  ;;  %v8813_v53 = vor.u32 %v8812_v40, %v8809_v42  ;;  %v8822_v60 = vrot.slane %v8820_v54, 4  ;;  %v8834_v26 = vshll.u32 %v11854_v57, 16 }
 0x1ec   : > { %v8840_v62 = vshll.u32 %v11855_v17, 16  ;;  %v8805_v2 = vsel %vm14159_vm4, %v8800_v37, %v8804_v45  ;;  %v8828_v43 = vrot.slane %v8826_v52, 5  ;;  %v8833_v33 = vrot.slane %v8831_v7, 4  ;;  %v11931_v7 = vld [vmem:[%s14053_s21 + $0x24] sm:$0xe] }
 0x1ed   : > { %v8844_v22 = vshrl.u32 %v11855_v17, 16  ;;  %v11891_v4 = vcombine.low %v8795_v23, %v8805_v2  ;;  %v8814_v47 = vrot.slane %v8813_v53, 4  ;;  %v8823_v46 = vor.u32 %v8822_v60, %v8818_v48  ;;  %v11930_v17 = vld [vmem:[%s14053_s21 + $0x20] sm:$0x1] }
 0x1ee   : > { %v8836_v49 = vrot.slane %v8834_v26, 5  ;;  %v8842_v30 = vrot.slane %v8840_v62, 5  ;;  %v8850_v50 = vshll.u32 %v11856_v1, 16  ;;  %v8855_v35 = vshrl.u32 %v11857_v31, 16  ;;  %v11932_v1 = vld [vmem:[%s14053_s21 + $0x28] sm:$0xf] }
 0x1ef   : > { %v8846_v5 = vrot.slane %v8844_v22, 4  ;;  %v8819_v36 = vsel %vm14159_vm4, %v8814_v47, %v8818_v48  ;;  %v8824_v6 = vrot.slane %v8823_v46, 4  ;;  %v8858_v12 = vshll.u32 %v11857_v31, 16  ;;  %v11933_v62 = vld [vmem:[%s14053_s21 + $0x2c] sm:$0x1]  ;;  %v13966_v47 = vld [vmem:[%s14053_s21 + $0xc0] sm:$0xff]  }
 0x1f0   : > { %12644 = vmatmul.mubr.msk.bf16.gmra.mrb[20].mxu1 %vm628_vm1, %v13962_v28  ;;  %v8837_v11 = vor.u32 %v8836_v49, %v8833_v33  ;;  %v8852_v56 = vrot.slane %v8850_v50, 5  ;;  %v8857_v61 = vrot.slane %v8855_v35, 4  ;;  %v8864_v19 = vshll.u32 %v11858_v14, 16  ;;  %v11935_v22 = vld [vmem:[%s14053_s21 + $0x34] sm:$0xf] }
 0x1f1   : > { %12647 = vmatprep.mubr.msk.bf16.mxu1 %vm628_vm1, %v13963_v21  ;;  %v8847_v39 = vor.u32 %v8846_v5, %v8842_v30  ;;  %v8829_v51 = vsel %vm14159_vm4, %v8824_v6, %v8828_v43  ;;  %v8860_v0 = vrot.slane %v8858_v12, 5  ;;  %v8868_v44 = vshrl.u32 %v11858_v14, 16  ;;  %v11934_v21 = vld [vmem:[%s14053_s21 + $0x30] sm:$0xe]  ;;  %v11939_v6 = vld [vmem:[%s14053_s21 + $0x44] sm:$0x1] }
 0x1f2   : > { %v8838_v38 = vrot.slane %v8837_v11, 4  ;;  %12940 = vmatmul.mubr.msk.bf16.gmra.mrb[52].mxu0 %vm628_vm1, %v11891_v4  ;;  %v11892_v63 = vcombine.low %v8819_v36, %v8829_v51  ;;  %v8866_v18 = vrot.slane %v8864_v19, 5  ;;  %v8874_v24 = vshll.u32 %v11859_v59, 16  ;;  %v11936_v4 = vld [vmem:[%s14053_s21 + $0x38] sm:$0x1]  ;;  %v13967_v11 = vld [vmem:[%s14053_s21 + $0xe4] sm:$0xff]  }
 0x1f3   : > { %v8848_v58 = vrot.slane %v8847_v39, 4  ;;  %v8861_v57 = vor.u32 %v8860_v0, %v8857_v61  ;;  %v8870_v3 = vrot.slane %v8868_v44, 4  ;;  %v8879_v29 = vshrl.u32 %v11860_v9, 16  ;;  %v11937_v59 = vld [vmem:[%s14053_s21 + $0x3c] sm:$0xe] }
 0x1f4   : > { %v8843_v8 = vsel %vm14159_vm4, %v8838_v38, %v8842_v30  ;;  %12943 = vmatprep.mubr.msk.bf16.mxu0 %vm628_vm1, %v11892_v63  ;;  %v8876_v32 = vrot.slane %v8874_v24, 5  ;;  %v8882_v15 = vshll.u32 %v11860_v9, 16  ;;  %v8888_v45 = vshll.u32 %v11861_v16, 16  ;;  %v11938_v30 = vld [vmem:[%s14053_s21 + $0x40] sm:$0xf] }
 0x1f5   : > { %v8853_v20 = vsel %vm14159_vm4, %v8848_v58, %v8852_v56  ;;  %v8862_v40 = vrot.slane %v8861_v57, 4  ;;  %v8871_v48 = vor.u32 %v8870_v3, %v8866_v18  ;;  %v8881_v54 = vrot.slane %v8879_v29, 4  ;;  %v11940_v61 = vld [vmem:[%s14053_s21 + $0x48] sm:$0xe]  ;;  %v11941_v0 = vld [vmem:[%s14053_s21 + $0x4c] sm:$0xf] }
 0x1f6   : > { %v11893_v42 = vcombine.low %v8843_v8, %v8853_v20  ;;  %v8884_v31 = vrot.slane %v8882_v15, 5  ;;  %v8890_v23 = vrot.slane %v8888_v45, 5  ;;  %v8892_v37 = vshrl.u32 %v11861_v16, 16  ;;  %v11942_v44 = vld [vmem:[%s14053_s21 + $0x50] sm:$0x1] }
 0x1f7   : > { %v8898_v52 = vshll.u32 %v11862_v13, 16  ;;  %v8867_v28 = vsel %vm14159_vm4, %v8862_v40, %v8866_v18  ;;  %v8872_v53 = vrot.slane %v8871_v48, 4  ;;  %v12024_v60 = vrot.slane %v11928_v25, 9  ;;  %v11943_v58 = vld [vmem:[%s14053_s21 + $0x54] sm:$0xe] }
 0x1f8   : > { %12648 = vmatmul.mubr.msk.bf16.gmra.mrb[24].mxu1 %vm628_vm1, %v13964_v55  ;;  %v9774_v26 = vrot.slane %v11929_v10, 5  ;;  %v8885_v2 = vor.u32 %v8884_v31, %v8881_v54  ;;  %v8894_v43 = vrot.slane %v8892_v37, 4  ;;  %v9777_v33 = vrot.slane %v11930_v17, 5  ;;  %v11944_v57 = vld [vmem:[%s14053_s21 + $0x58] sm:$0xf] }
 0x1f9   : > { %12651 = vmatprep.mubr.msk.bf16.mxu1 %vm628_vm1, %v13965_v27  ;;  %v8877_v46 = vsel %vm14159_vm4, %v8872_v53, %v8876_v32  ;;  %v8900_v49 = vrot.slane %v8898_v52, 5  ;;  %v9781_v36 = vrot.slane %v11932_v1, 5  ;;  %v12025_v9 = vrot.slane %v11931_v7, 9  ;;  %v11945_v20 = vld [vmem:[%s14053_s21 + $0x5c] sm:$0x1] }
 0x1fa   : > { %v9776_v14 = vrot.slane %v9774_v26, 4  ;;  %12944 = vmatmul.mubr.msk.bf16.gmra.mrb[56].mxu0 %vm628_vm1, %v11893_v42  ;;  %v11894_v5 = vcombine.low %v8867_v28, %v8877_v46  ;;  %v8886_v50 = vrot.slane %v8885_v2, 4  ;;  %v8895_v35 = vor.u32 %v8894_v43, %v8890_v23  ;;  %v11946_v32 = vld [vmem:[%s14053_s21 + $0x60] sm:$0xe]  ;;  %v11947_v15 = vld [vmem:[%s14053_s21 + $0x64] sm:$0xf] }
 0x1fb   : > { %v9775_v12 = vsel %vm14324_vm7, %v12024_v60, %v9774_v26  ;;  %v12026_v39 = vrot.slane %v11934_v21, 9  ;;  %v9788_v56 = vrot.slane %v11935_v22, 5  ;;  %v9784_v38 = vrot.slane %v11933_v62, 5  ;;  %v11948_v48 = vld [vmem:[%s14053_s21 + $0x68] sm:$0x1]  ;;  %v13968_v28 = vld [vmem:[%s14053_s21 + $0xf0] sm:$0xff]  }
 0x1fc   : > { %12947 = vmatprep.mubr.msk.bf16.mxu0 %vm628_vm1, %v11894_v5  ;;  %v8891_v19 = vsel %vm14159_vm4, %v8886_v50, %v8890_v23  ;;  %v8896_v16 = vrot.slane %v8895_v35, 4  ;;  %v9778_v51 = vsel %vm14324_vm7, %v9776_v14, %v9777_v33  ;;  %v9783_v13 = vrot.slane %v9781_v36, 4  ;;  %v11950_v54 = vld [vmem:[%s14053_s21 + $0x70] sm:$0xf]  ;;  %v11949_v52 = vld [vmem:[%s14053_s21 + $0x6c] sm:$0xe] }
 0x1fd   : > { %v9790_v55 = vrot.slane %v9788_v56, 4  ;;  %v9791_v63 = vrot.slane %v11936_v4, 5  ;;  %v12027_v24 = vrot.slane %v11937_v59, 9  ;;  %v9795_v25 = vrot.slane %v11938_v30, 5  ;;  %v11951_v7 = vld [vmem:[%s14053_s21 + $0x74] sm:$0x1] }
 0x1fe   : > { %v8901_v18 = vsel %vm14159_vm4, %v8896_v16, %v8900_v49  ;;  %v9798_v8 = vrot.slane %v11939_v6, 5  ;;  %v12057_v29 = vcombine.low %v9775_v12, %v9778_v51  ;;  %v15990_v10 = vsel %vm14324_vm7, %v12025_v9, %v9781_v36  ;;  %v11952_v21 = vld [vmem:[%s14053_s21 + $0x78] sm:$0xe]  ;;  %v11953_v22 = vld [vmem:[%s14053_s21 + $0x7c] sm:$0xf] }
 0x1ff   : > { %v11895_v3 = vcombine.low %v8891_v19, %v8901_v18  ;;  %v15994_v27 = vsel %vm14324_vm7, %v12026_v39, %v9788_v56  ;;  %v9785_v45 = vsel %vm14324_vm7, %v9783_v13, %v9784_v38  ;;  %v16004_v17 = vsel %vm14324_vm7, %v9790_v55, %v9791_v63  ;;  %v11954_v4 = vld [vmem:[%s14053_s21 + $0x80] sm:$0x1]  ;;  %v11955_v30 = vld [vmem:[%s14053_s21 + $0x84] sm:$0xe]  ;;  %v11956_v6 = vld [vmem:[%s14053_s21 + $0x88] sm:$0xf] }
 0x200   : > { %12652 = vmatmul.mubr.msk.bf16.gmra.mrb[28].mxu1 %vm628_vm1, %v13966_v47  ;;  %v9797_v42 = vrot.slane %v9795_v25, 4  ;;  %v12028_v40 = vrot.slane %v11940_v61, 9  ;;  %v16010_v1 = vsel %vm14324_vm7, %v12027_v24, %v9795_v25  ;;  %v9802_v31 = vrot.slane %v11941_v0, 5  ;;  %v13969_v47 = vld [vmem:[%s14053_s21 + $0xfc] sm:$0xff]   ;;  %v11958_v61 = vld [vmem:[%s14053_s21 + $0x90] sm:$0xe] }
 0x201   : > { %12655 = vmatprep.mubr.msk.bf16.mxu1 %vm628_vm1, %v13967_v11  ;;  %v9805_v23 = vrot.slane %v11942_v44, 5  ;;  %v9809_v37 = vrot.slane %v11944_v57, 5  ;;  %v12029_v60 = vrot.slane %v11943_v58, 9  ;;  %v9812_v26 = vrot.slane %v11945_v20, 5  ;;  %v11957_v11 = vld [vmem:[%s14053_s21 + $0x8c] sm:$0x1] }
 0x202   : > { %12948 = vmatmul.mubr.msk.bf16.gmra.mrb[60].mxu0 %vm628_vm1, %v11895_v3  ;;  %v16018_v53 = vsel %vm14324_vm7, %v9797_v42, %v9798_v8  ;;  %v9816_v62 = vrot.slane %v11947_v15, 5  ;;  %v12058_v2 = vcombine.low %v15990_v10, %v9785_v45  ;;  %v9804_v43 = vrot.slane %v9802_v31, 4  ;;  %v11959_v19 = vld [vmem:[%s14053_s21 + $0x94] sm:$0xf]  ;;  %v11960_v44 = vld [vmem:[%s14053_s21 + $0x98] sm:$0x1] }
 0x203   : > { %12953 = vmatprep.mubr.msk.bf16.mxu0 %vm628_vm1, %v12057_v29  ;;  %v12030_v33 = vrot.slane %v11946_v32, 9  ;;  %v16028_v46 = vsel %vm14324_vm7, %v12028_v40, %v9802_v31  ;;  %v9811_v49 = vrot.slane %v9809_v37, 4  ;;  %v9819_v59 = vrot.slane %v11948_v48, 5  ;;  %v11961_v13 = vld [vmem:[%s14053_s21 + $0x9c] sm:$0xe]  ;;  %v13970_v45 = vld [vmem:[%s14053_s21 + $0x108] sm:$0xff]  }
 0x204   : > { %v9818_v14 = vrot.slane %v9816_v62, 4  ;;  %v12059_v5 = vcombine.low %v15994_v27, %v16004_v17  ;;  %v12060_v50 = vcombine.low %v16010_v1, %v16018_v53  ;;  %v16037_v35 = vsel %vm14324_vm7, %v9804_v43, %v9805_v23  ;;  %v11962_v24 = vld [vmem:[%s14053_s21 + $0xa0] sm:$0xf]  ;;  %v11963_v29 = vld [vmem:[%s14053_s21 + $0xa4] sm:$0x1]  ;;  %v13971_v31 = vld [vmem:[%s14053_s21 + $0x114] sm:$0xff]  }
 0x205   : > { %v9823_v36 = vrot.slane %v11950_v54, 5  ;;  %v16043_v12 = vsel %vm14324_vm7, %v12029_v60, %v9809_v37  ;;  %v16047_v9 = vsel %vm14324_vm7, %v9811_v49, %v9812_v26  ;;  %v12031_v39 = vrot.slane %v11949_v52, 9  ;;  %v11964_v15 = vld [vmem:[%s14053_s21 + $0xa8] sm:$0xe]  ;;  %v11965_v54 = vld [vmem:[%s14053_s21 + $0xac] sm:$0xf] }
 0x206   : > { %v9826_v56 = vrot.slane %v11951_v7, 5  ;;  %v12061_v16 = vcombine.low %v16028_v46, %v16037_v35  ;;  %v16056_v51 = vsel %vm14324_vm7, %v12030_v33, %v9816_v62  ;;  %v12032_v0 = vrot.slane %v11952_v21, 9  ;;  %v11332_v43 = vld [vmem:[%s14053_s21 + $0xe4] sm:$0xf]  ;;  %v11966_v49 = vld [vmem:[%s14053_s21 + $0xb0] sm:$0x1] }
 0x207   : > { %v9825_v38 = vrot.slane %v9823_v36, 4  ;;  %v16063_v55 = vsel %vm14324_vm7, %v9818_v14, %v9819_v59  ;;  %v9830_v63 = vrot.slane %v11953_v22, 5  ;;  %v9833_v58 = vrot.slane %v11954_v4, 5  ;;  %v11969_v14 = vld [vmem:[%s14053_s21 + $0xbc] sm:$0x1] }
 0x208   : > { %12656 = vmatmul.mubr.msk.bf16.gmra.mrb[32].mxu1 %vm628_vm1, %v13968_v28  ;;  %v9837_v18 = vrot.slane %v11956_v6, 5  ;;  %v12062_v25 = vcombine.low %v16043_v12, %v16047_v9  ;;  %v12033_v8 = vrot.slane %v11955_v30, 9  ;;  %v12034_v57 = vrot.slane %v11958_v61, 9  ;;  %v11968_v28 = vld [vmem:[%s14053_s21 + $0xb8] sm:$0xf] }
 0x209   : > { %12659 = vmatprep.mubr.msk.bf16.mxu1 %vm628_vm1, %v13969_v47  ;;  %v9844_v3 = vrot.slane %v11959_v19, 5  ;;  %v16072_v10 = vsel %vm14324_vm7, %v12031_v39, %v9823_v36  ;;  %v16076_v27 = vsel %vm14324_vm7, %v9825_v38, %v9826_v56  ;;  %v9832_v20 = vrot.slane %v9830_v63, 4  ;;  %v11333_v6 = vld [vmem:[%s14053_s21 + $0xe8] sm:$0xf]  ;;  %v11334_v56 = vld [vmem:[%s14053_s21 + $0xec] sm:$0x1] }
 0x20a   : > { %12954 = vmatmul.mubr.msk.bf16.vlgmr.msra.gmra.mrb[0].mxu0 %vm628_vm1, %v12058_v2  ;;  %v9840_v32 = vrot.slane %v11957_v11, 5  ;;  %v16083_v17 = vsel %vm14324_vm7, %v12032_v0, %v9830_v63  ;;  %v9839_v42 = vrot.slane %v9837_v18, 4  ;;  %v9847_v48 = vrot.slane %v11960_v44, 5  ;;  %v11967_v2 = vld [vmem:[%s14053_s21 + $0xb4] sm:$0xe] }
 0x20b   : > { %12957 = vmatprep.mubr.msk.bf16.mxu0 %vm628_vm1, %v12059_v5  ;;  %v9846_v40 = vrot.slane %v9844_v3, 4  ;;  %v16089_v23 = vsel %vm14324_vm7, %v9832_v20, %v9833_v58  ;;  %v12035_v37 = vrot.slane %v11961_v13, 9  ;;  %v9851_v52 = vrot.slane %v11962_v24, 5  ;;  %v11970_v63 = vld [vmem:[%s14053_s21 + $0xc0] sm:$0xe] }
 0x20c   : > { %v9854_v7 = vrot.slane %v11963_v29, 5  ;;  %v12063_v60 = vcombine.low %v16056_v51, %v16063_v55  ;;  %v12064_v26 = vcombine.low %v16072_v10, %v16076_v27  ;;  %v16098_v62 = vsel %vm14324_vm7, %v12033_v8, %v9837_v18  ;;  %v13973_v29 = vld [vmem:[%s14053_s21 + $0x12c] sm:$0xff]   ;;  %v11340_v55 = vld [vmem:[%s14053_s21 + $0x104] sm:$0x1] }
 0x20d   : > { %v16102_v21 = vsel %vm14324_vm7, %v12034_v57, %v9844_v3  ;;  %v12065_v33 = vcombine.low %v16083_v17, %v16089_v23  ;;  %v16110_v22 = vsel %vm14324_vm7, %v9839_v42, %v9840_v32  ;;  %v16114_v4 = vsel %vm14324_vm7, %v9846_v40, %v9847_v48  ;;  %v11971_v57 = vld [vmem:[%s14053_s21 + $0xc4] sm:$0xf]  ;;  %v11335_v32 = vld [vmem:[%s14053_s21 + $0xf0] sm:$0xf]  ;;  %v11336_v42 = vld [vmem:[%s14053_s21 + $0xf4] sm:$0xf] }
 0x20e   : > { %v9853_v47 = vrot.slane %v9851_v52, 4  ;;  %v16121_v59 = vsel %vm14324_vm7, %v12035_v37, %v9851_v52  ;;  %v12036_v30 = vrot.slane %v11964_v15, 9  ;;  %v9858_v5 = vrot.slane %v11965_v54, 5  ;;  %v13972_v3 = vld [vmem:[%s14053_s21 + $0x120] sm:$0xff]  }
 0x20f   : > { %v9865_v36 = vrot.slane %v11968_v28, 5  ;;  %v12037_v39 = vrot.slane %v11967_v2, 9  ;;  %v5076_v61 = vshrl.u32 %v11332_v43, 16  ;;  %v5079_v19 = vshll.u32 %v11332_v43, 16 }
 0x210   : > { %12660 = vmatmul.mubr.msk.bf16.gmra.mrb[36].mxu1 %vm628_vm1, %v13970_v45  ;;  %v16127_v11 = vsel %vm14324_vm7, %v9853_v47, %v9854_v7  ;;  %v12066_v38 = vcombine.low %v16098_v62, %v16110_v22  ;;  %v9860_v0 = vrot.slane %v9858_v5, 4  ;;  %v9861_v44 = vrot.slane %v11966_v49, 5  ;;  %v11972_v45 = vld [vmem:[%s14053_s21 + $0xc8] sm:$0x1]  ;;  %v11337_v7 = vld [vmem:[%s14053_s21 + $0xf8] sm:$0x1] }
 0x211   : > { %12663 = vmatprep.mubr.msk.bf16.mxu1 %vm628_vm1, %v13971_v31  ;;  %v9868_v13 = vrot.slane %v11969_v14, 5  ;;  %v9867_v58 = vrot.slane %v9865_v36, 4  ;;  %v5078_v18 = vrot.slane %v5076_v61, 4  ;;  %v5081_v24 = vrot.slane %v5079_v19, 5 }
 0x212   : > { %12958 = vmatmul.mubr.msk.bf16.gmra.mrb[4].mxu0 %vm628_vm1, %v12060_v50  ;;  %v5085_v8 = vshll.u32 %v11333_v6, 16  ;;  %v12067_v20 = vcombine.low %v16102_v21, %v16114_v4  ;;  %v12068_v1 = vcombine.low %v16121_v59, %v16127_v11  ;;  %v16150_v53 = vsel %vm14324_vm7, %v12036_v30, %v9858_v5  ;;  %v11973_v30 = vld [vmem:[%s14053_s21 + $0xcc] sm:$0xe] }
 0x213   : > { %12961 = vmatprep.mubr.msk.bf16.mxu0 %vm628_vm1, %v12061_v16  ;;  %v5089_v50 = vshrl.u32 %v11333_v6, 16  ;;  %v16155_v15 = vsel %vm14324_vm7, %v12037_v39, %v9865_v36  ;;  %v5082_v46 = vor.u32 %v5081_v24, %v5078_v18  ;;  %v5095_v16 = vshll.u32 %v11334_v56, 16  ;;  %v11974_v56 = vld [vmem:[%s14053_s21 + $0xd0] sm:$0xf] }
 0x214   : > { %v5087_v35 = vrot.slane %v5085_v8, 5  ;;  %v16161_v40 = vsel %vm14324_vm7, %v9860_v0, %v9861_v44  ;;  %v12038_v54 = vrot.slane %v11970_v63, 9  ;;  %v9872_v31 = vrot.slane %v11971_v57, 5  ;;  %v11975_v8 = vld [vmem:[%s14053_s21 + $0xd4] sm:$0x1] }
 0x215   : > { %v5091_v48 = vrot.slane %v5089_v50, 4  ;;  %v16165_v37 = vsel %vm14324_vm7, %v9867_v58, %v9868_v13  ;;  %v5083_v52 = vrot.slane %v5082_v46, 4  ;;  %v5100_v28 = vshrl.u32 %v11335_v32, 16  ;;  %v11338_v13 = vld [vmem:[%s14053_s21 + $0xfc] sm:$0xf]  ;;  %v13975_v50 = vld [vmem:[%s14053_s21 + $0x144] sm:$0xff]  }
 0x216   : > { %v5103_v2 = vshll.u32 %v11335_v32, 16  ;;  %v9874_v47 = vrot.slane %v9872_v31, 4  ;;  %v9875_v49 = vrot.slane %v11972_v45, 5  ;;  %v5109_v14 = vshll.u32 %v11336_v42, 16  ;;  %v11339_v57 = vld [vmem:[%s14053_s21 + $0x100] sm:$0xf] }
 0x217   : > { %v5092_v43 = vor.u32 %v5091_v48, %v5087_v35  ;;  %v5097_v5 = vrot.slane %v5095_v16, 5  ;;  %v5102_v36 = vrot.slane %v5100_v28, 4  ;;  %v5113_v39 = vshrl.u32 %v11336_v42, 16  ;;  %v11976_v48 = vld [vmem:[%s14053_s21 + $0xf0] sm:$0xe] }
 0x218   : > { %12664 = vmatmul.mubr.msk.bf16.gmra.mrb[40].mxu1 %vm628_vm1, %v13972_v3  ;;  %v5105_v6 = vrot.slane %v5103_v2, 5  ;;  %v12069_v61 = vcombine.low %v16150_v53, %v16161_v40  ;;  %v12070_v19 = vcombine.low %v16155_v15, %v16165_v37  ;;  %v16176_v44 = vrot.slane %v5109_v14, 5  ;;  %v13974_v3 = vld [vmem:[%s14053_s21 + $0x138] sm:$0xff]   ;;  %v11977_v28 = vld [vmem:[%s14053_s21 + $0xf4] sm:$0xf] }
 0x219   : > { %12667 = vmatprep.mubr.msk.bf16.mxu1 %vm628_vm1, %v13973_v29  ;;  %v5093_v0 = vrot.slane %v5092_v43, 4  ;;  %v16185_v63 = vsel %vm14324_vm7, %v12038_v54, %v9872_v31  ;;  %v5115_v18 = vrot.slane %v5113_v39, 4  ;;  %v5119_v24 = vshll.u32 %v11337_v7, 16  ;;  %v11341_v14 = vld [vmem:[%s14053_s21 + $0x108] sm:$0xf] }
 0x21a   : > { %12962 = vmatmul.mubr.msk.bf16.gmra.mrb[8].mxu0 %vm628_vm1, %v12062_v25  ;;  %v5106_v58 = vor.u32 %v5105_v6, %v5102_v36  ;;  %v5088_v12 = vsel %vm14159_vm4, %v5083_v52, %v5087_v35  ;;  %v16198_v9 = vsel %vm14324_vm7, %v9874_v47, %v9875_v49  ;;  %v12039_v25 = vrot.slane %v11973_v30, 9  ;;  %v11978_v39 = vld [vmem:[%s14053_s21 + $0xf8] sm:$0x1]  ;;  %v11352_v40 = vld [vmem:[%s14053_s21 + $0x134] sm:$0x1] }
 0x21b   : > { %12965 = vmatprep.mubr.msk.bf16.mxu0 %vm628_vm1, %v12063_v60  ;;  %v9879_v29 = vrot.slane %v11974_v56, 5  ;;  %v5098_v32 = vsel %vm14159_vm4, %v5093_v0, %v5097_v5  ;;  %v5116_v51 = vor.u32 %v5115_v18, %v16176_v44  ;;  %v5124_v60 = vshrl.u32 %v11338_v13, 16  ;;  %v11342_v56 = vld [vmem:[%s14053_s21 + $0x10c] sm:$0xf]  ;;  %v13976_v0 = vld [vmem:[%s14053_s21 + $0x150] sm:$0xff]  }
 0x21c   : > { %v16203_v46 = vrot.slane %v5106_v58, 4  ;;  %v9882_v35 = vrot.slane %v11975_v8, 5  ;;  %v5127_v45 = vshll.u32 %v11338_v13, 16  ;;  %v5133_v42 = vshll.u32 %v11339_v57, 16 }
 0x21d   : > { %v9881_v16 = vrot.slane %v9879_v29, 4  ;;  %v12071_v54 = vcombine.low %v16185_v63, %v16198_v9  ;;  %v16210_v31 = vrot.slane %v5119_v24, 5  ;;  %v5126_v52 = vrot.slane %v5124_v60, 4  ;;  %v11980_v60 = vld [vmem:[%s14053_s21 + $0x100] sm:$0xf] }
 0x21e   : > { %v5137_v7 = vshrl.u32 %v11339_v57, 16  ;;  %v16214_v2 = vcombine.low %v5088_v12, %v5098_v32  ;;  %v5129_v43 = vrot.slane %v5127_v45, 5  ;;  %v16216_v47 = vrot.slane %v5133_v42, 5  ;;  %v11344_v45 = vld [vmem:[%s14053_s21 + $0x114] sm:$0xf] }
 0x21f   : > { %v5143_v49 = vshll.u32 %v11340_v55, 16  ;;  %v5112_v30 = vsel %vm14159_vm4, %v16203_v46, %v16176_v44  ;;  %v5117_v5 = vrot.slane %v5116_v51, 4  ;;  %v16226_v36 = vsel %vm14324_vm7, %v12039_v25, %v9879_v29  ;;  %v13977_v44 = vld [vmem:[%s14053_s21 + $0x15c] sm:$0xff]  }
 0x220   : > { %12668 = vmatmul.mubr.msk.bf16.gmra.mrb[44].mxu1 %vm628_vm1, %v13974_v3  ;;  %v5139_v6 = vrot.slane %v5137_v7, 4  ;;  %v16233_v13 = vsel %vm14324_vm7, %v9881_v16, %v9882_v35  ;;  %v5130_v58 = vor.u32 %v5129_v43, %v5126_v52  ;;  %v12040_v18 = vrot.slane %v11976_v48, 9  ;;  %v11343_v3 = vld [vmem:[%s14053_s21 + $0x110] sm:$0x1]  ;;  %v11981_v35 = vld [vmem:[%s14053_s21 + $0x104] sm:$0x1] }
 0x221   : > { %12671 = vmatprep.mubr.msk.bf16.mxu1 %vm628_vm1, %v13975_v50  ;;  %v9886_v24 = vrot.slane %v11977_v28, 5  ;;  %v5145_v57 = vrot.slane %v5143_v49, 5  ;;  %v5148_v12 = vshrl.u32 %v11341_v14, 16  ;;  %v5151_v25 = vshll.u32 %v11341_v14, 16 }
 0x222   : > { %12966 = vmatmul.mubr.msk.bf16.gmra.mrb[12].mxu0 %vm628_vm1, %v12064_v26  ;;  %v5140_v8 = vor.u32 %v5139_v6, %v16216_v47  ;;  %v5131_v29 = vrot.slane %v5130_v58, 4  ;;  %v9889_v10 = vrot.slane %v11978_v39, 5  ;;  %v5157_v27 = vshll.u32 %v11342_v56, 16  ;;  %v11979_v26 = vld [vmem:[%s14053_s21 + $0xfc] sm:$0xe] }
 0x223   : > { %12969 = vmatprep.mubr.msk.bf16.mxu0 %vm628_vm1, %v12065_v33  ;;  %v9888_v50 = vrot.slane %v9886_v24, 4  ;;  %v5150_v46 = vrot.slane %v5148_v12, 4  ;;  %v5153_v51 = vrot.slane %v5151_v25, 5  ;;  %v5161_v55 = vshrl.u32 %v11342_v56, 16  ;;  %v11983_v25 = vld [vmem:[%s14053_s21 + $0x10c] sm:$0xf] }
 0x224   : > { %v5141_v32 = vrot.slane %v5140_v8, 4  ;;  %v5122_v16 = vsel %vm14159_vm4, %v5117_v5, %v16210_v31  ;;  %v12072_v17 = vcombine.low %v16226_v36, %v16233_v13  ;;  %v16253_v23 = vrot.slane %v5157_v27, 5  ;;  %v11345_v31 = vld [vmem:[%s14053_s21 + $0x118] sm:$0xf]  ;;  %v13978_v8 = vld [vmem:[%s14053_s21 + $0x168] sm:$0xff]  }
 0x225   : > { %v5167_v33 = vshll.u32 %v11343_v3, 16  ;;  %v5136_v42 = vsel %vm14159_vm4, %v5131_v29, %v16216_v47  ;;  %v16262_v48 = vsel %vm14324_vm7, %v12040_v18, %v9886_v24  ;;  %v5154_v52 = vor.u32 %v5153_v51, %v5150_v46 }
 0x226   : > { %v5163_v7 = vrot.slane %v5161_v55, 4  ;;  %v5146_v28 = vsel %vm14159_vm4, %v5141_v32, %v5145_v57  ;;  %v16270_v43 = vsel %vm14324_vm7, %v9888_v50, %v9889_v10  ;;  %v12041_v49 = vrot.slane %v11979_v26, 9  ;;  %v11347_v50 = vld [vmem:[%s14053_s21 + $0x120] sm:$0xf]  ;;  %v13979_v10 = vld [vmem:[%s14053_s21 + $0x174] sm:$0xff]  }
 0x227   : > { %v9893_v47 = vrot.slane %v11980_v60, 5  ;;  %v5155_v14 = vrot.slane %v5154_v52, 4  ;;  %v9896_v6 = vrot.slane %v11981_v35, 5  ;;  %v5172_v39 = vshrl.u32 %v11344_v45, 16  ;;  %v11984_v26 = vld [vmem:[%s14053_s21 + $0x110] sm:$0x1] }
 0x228   : > { %12672 = vmatmul.mubr.msk.bf16.gmra.mrb[48].mxu1 %vm628_vm1, %v13976_v0  ;;  %v5164_v5 = vor.u32 %v5163_v7, %v16253_v23  ;;  %v5169_v56 = vrot.slane %v5167_v33, 5  ;;  %v11346_v0 = vld [vmem:[%s14053_s21 + $0x11c] sm:$0x1]  ;;  %v5175_v18 = vshll.u32 %v11344_v45, 16  ;;  %v5181_v24 = vshll.u32 %v11345_v31, 16 }
 0x229   : > { %12675 = vmatprep.mubr.msk.bf16.mxu1 %vm628_vm1, %v13977_v44  ;;  %v9895_v58 = vrot.slane %v9893_v47, 4  ;;  %v16280_v44 = vcombine.low %v5112_v30, %v5122_v16  ;;  %v5174_v3 = vrot.slane %v5172_v39, 4  ;;  %v5185_v12 = vshrl.u32 %v11345_v31, 16  ;;  %v11982_v30 = vld [vmem:[%s14053_s21 + $0x108] sm:$0xe] }
 0x22a   : > { %12970 = vmatmul.mubr.msk.bf16.gmra.mrb[16].mxu0 %vm628_vm1, %v12066_v38  ;;  %v5165_v57 = vrot.slane %v5164_v5, 4  ;;  %v16287_v29 = vcombine.low %v5136_v42, %v5146_v28  ;;  %v12073_v62 = vcombine.low %v16262_v48, %v16270_v43  ;;  %v5177_v22 = vrot.slane %v5175_v18, 5  ;;  %v11348_v32 = vld [vmem:[%s14053_s21 + $0x124] sm:$0xf]  ;;  %v11349_v16 = vld [vmem:[%s14053_s21 + $0x128] sm:$0x1] }
 0x22b   : > { %12973 = vmatprep.mubr.msk.bf16.mxu0 %vm628_vm1, %v12067_v20  ;;  %v16291_v38 = vrot.slane %v5181_v24, 5  ;;  %v5160_v27 = vsel %vm14159_vm4, %v5155_v14, %v16253_v23  ;;  %v16301_v21 = vsel %vm14324_vm7, %v12041_v49, %v9893_v47  ;;  %v16305_v4 = vsel %vm14324_vm7, %v9895_v58, %v9896_v6  ;;  %v11985_v42 = vld [vmem:[%s14053_s21 + $0x114] sm:$0xe]  ;;  %v11986_v49 = vld [vmem:[%s14053_s21 + $0x118] sm:$0xf] }
 0x22c   : > { %v5187_v20 = vrot.slane %v5185_v12, 4  ;;  %v5170_v46 = vsel %vm14159_vm4, %v5165_v57, %v5169_v56  ;;  %v5178_v51 = vor.u32 %v5177_v22, %v5174_v3  ;;  %v5191_v55 = vshll.u32 %v11346_v0, 16  ;;  %v11987_v39 = vld [vmem:[%s14053_s21 + $0x11c] sm:$0x1]  ;;  %v11350_v24 = vld [vmem:[%s14053_s21 + $0x12c] sm:$0xf] }
 0x22d   : > { %v9900_v60 = vrot.slane %v11983_v25, 5  ;;  %v12042_v33 = vrot.slane %v11982_v30, 9  ;;  %v5196_v35 = vshrl.u32 %v11347_v50, 16  ;;  %v5199_v45 = vshll.u32 %v11347_v50, 16  ;;  %v11351_v25 = vld [vmem:[%s14053_s21 + $0x130] sm:$0xf] }
 0x22e   : > { %v5188_v23 = vor.u32 %v5187_v20, %v16291_v38  ;;  %v16315_v52 = vrot.slane %v5178_v51, 4  ;;  %v9903_v31 = vrot.slane %v11984_v26, 5  ;;  %v5205_v28 = vshll.u32 %v11348_v32, 16  ;;  %v13980_v22 = vld [vmem:[%s14053_s21 + $0x180] sm:$0xff]   ;;  %v13981_v50 = vld [vmem:[%s14053_s21 + $0x18c] sm:$0xff]  }
 0x22f   : > { %v9902_v7 = vrot.slane %v9900_v60, 4  ;;  %v12074_v47 = vcombine.low %v16301_v21, %v16305_v4  ;;  %v5198_v14 = vrot.slane %v5196_v35, 4  ;;  %v5201_v5 = vrot.slane %v5199_v45, 5  ;;  %v11996_v43 = vld [vmem:[%s14053_s21 + $0x140] sm:$0x1] }
 0x230   : > { %12676 = vmatmul.mubr.msk.bf16.gmra.mrb[52].mxu1 %vm628_vm1, %v13978_v8  ;;  %v5209_v6 = vshrl.u32 %v11348_v32, 16  ;;  %v16322_v56 = vcombine.low %v5160_v27, %v5170_v46  ;;  %v16324_v58 = vrot.slane %v5191_v55, 5  ;;  %v16326_v0 = vrot.slane %v5205_v28, 5 }
 0x231   : > { %12679 = vmatprep.mubr.msk.bf16.mxu1 %vm628_vm1, %v13979_v10  ;;  %v5215_v18 = vshll.u32 %v11349_v16, 16  ;;  %v5189_v8 = vrot.slane %v5188_v23, 4  ;;  %v16335_v57 = vsel %vm14324_vm7, %v12042_v33, %v9900_v60  ;;  %v5202_v3 = vor.u32 %v5201_v5, %v5198_v14  ;;  %v11989_v23 = vld [vmem:[%s14053_s21 + $0x124] sm:$0xf]  ;;  %v11990_v14 = vld [vmem:[%s14053_s21 + $0x128] sm:$0x1] }
 0x232   : > { %12974 = vmatmul.mubr.msk.bf16.gmra.mrb[20].mxu0 %vm628_vm1, %v12068_v1  ;;  %v5211_v12 = vrot.slane %v5209_v6, 4  ;;  %v5184_v59 = vsel %vm14159_vm4, %v16315_v52, %v16291_v38  ;;  %v16349_v11 = vsel %vm14324_vm7, %v9902_v7, %v9903_v31  ;;  %v12043_v1 = vrot.slane %v11985_v42, 9  ;;  %v11988_v38 = vld [vmem:[%s14053_s21 + $0x120] sm:$0xe]  ;;  %v11353_v52 = vld [vmem:[%s14053_s21 + $0x138] sm:$0xf] }
 0x233   : > { %12977 = vmatprep.mubr.msk.bf16.mxu0 %vm628_vm1, %v12069_v61  ;;  %v9907_v30 = vrot.slane %v11986_v49, 5  ;;  %v5203_v10 = vrot.slane %v5202_v3, 4  ;;  %v9910_v53 = vrot.slane %v11987_v39, 5  ;;  %v5220_v20 = vshrl.u32 %v11350_v24, 16  ;;  %v11354_v5 = vld [vmem:[%s14053_s21 + $0x13c] sm:$0xf] }
 0x234   : > { %v5212_v27 = vor.u32 %v5211_v12, %v16326_v0  ;;  %v5217_v61 = vrot.slane %v5215_v18, 5  ;;  %v5223_v32 = vshll.u32 %v11350_v24, 16  ;;  %v5229_v46 = vshll.u32 %v11351_v25, 16  ;;  %v13982_v24 = vld [vmem:[%s14053_s21 + $0x198] sm:$0xff]  }
 0x235   : > { %v9909_v26 = vrot.slane %v9907_v30, 4  ;;  %v5194_v51 = vsel %vm14159_vm4, %v5189_v8, %v16324_v58  ;;  %v5222_v60 = vrot.slane %v5220_v20, 4  ;;  %v5233_v16 = vshrl.u32 %v11351_v25, 16  ;;  %v11356_v20 = vld [vmem:[%s14053_s21 + $0x144] sm:$0xf] }
 0x236   : > { %v5213_v55 = vrot.slane %v5212_v27, 4  ;;  %v12075_v33 = vcombine.low %v16335_v57, %v16349_v11  ;;  %v5225_v35 = vrot.slane %v5223_v32, 5  ;;  %v5231_v45 = vrot.slane %v5229_v46, 5  ;;  %v11992_v27 = vld [vmem:[%s14053_s21 + $0x130] sm:$0xf] }
 0x237   : > { %v5239_v42 = vshll.u32 %v11352_v40, 16  ;;  %v5208_v7 = vsel %vm14159_vm4, %v5203_v10, %v16326_v0  ;;  %v16369_v31 = vsel %vm14324_vm7, %v12043_v1, %v9907_v30  ;;  %v16373_v28 = vsel %vm14324_vm7, %v9909_v26, %v9910_v53  ;;  %v11355_v30 = vld [vmem:[%s14053_s21 + $0x140] sm:$0x1]  ;;  %v11993_v46 = vld [vmem:[%s14053_s21 + $0x134] sm:$0x1] }
 0x238   : > { %12680 = vmatmul.mubr.msk.bf16.gmra.mrb[56].mxu1 %vm628_vm1, %v13980_v22  ;;  %v5235_v49 = vrot.slane %v5233_v16, 4  ;;  %v5218_v6 = vsel %vm14159_vm4, %v5213_v55, %v5217_v61  ;;  %v5226_v39 = vor.u32 %v5225_v35, %v5222_v60  ;;  %v12044_v58 = vrot.slane %v11988_v38, 9  ;;  %v11357_v38 = vld [vmem:[%s14053_s21 + $0x148] sm:$0xf]  ;;  %v11364_v11 = vld [vmem:[%s14053_s21 + $0x164] sm:$0x1] }
 0x239   : > { %12683 = vmatprep.mubr.msk.bf16.mxu1 %vm628_vm1, %v13981_v50  ;;  %v9914_v18 = vrot.slane %v11989_v23, 5  ;;  %v5241_v8 = vrot.slane %v5239_v42, 5  ;;  %v5244_v3 = vshrl.u32 %v11353_v52, 16  ;;  %v5247_v12 = vshll.u32 %v11353_v52, 16  ;;  %v11358_v42 = vld [vmem:[%s14053_s21 + $0x14c] sm:$0x1] }
 0x23a   : > { %12978 = vmatmul.mubr.msk.bf16.gmra.mrb[24].mxu0 %vm628_vm1, %v12070_v19  ;;  %v5236_v0 = vor.u32 %v5235_v49, %v5231_v45  ;;  %v5227_v25 = vrot.slane %v5226_v39, 4  ;;  %v9917_v1 = vrot.slane %v11990_v14, 5  ;;  %v5253_v50 = vshll.u32 %v11354_v5, 16 }
 0x23b   : > { %12981 = vmatprep.mubr.msk.bf16.mxu0 %vm628_vm1, %v12071_v54  ;;  %v9916_v22 = vrot.slane %v9914_v18, 4  ;;  %v5246_v37 = vrot.slane %v5244_v3, 4  ;;  %v5249_v19 = vrot.slane %v5247_v12, 5  ;;  %v5257_v10 = vshrl.u32 %v11354_v5, 16  ;;  %v11991_v54 = vld [vmem:[%s14053_s21 + $0x12c] sm:$0xe] }
 0x23c   : > { %v5237_v15 = vrot.slane %v5236_v0, 4  ;;  %v16390_v53 = vcombine.low %v5184_v59, %v5194_v51  ;;  %v16392_v40 = vcombine.low %v5208_v7, %v5218_v6  ;;  %v12076_v63 = vcombine.low %v16369_v31, %v16373_v28  ;;  %v12004_v28 = vld [vmem:[%s14053_s21 + $0x160] sm:$0xf] }
 0x23d   : > { %v16396_v9 = vrot.slane %v5253_v50, 5  ;;  %v5232_v61 = vsel %vm14159_vm4, %v5227_v25, %v5231_v45  ;;  %v16404_v26 = vsel %vm14324_vm7, %v12044_v58, %v9914_v18  ;;  %v5250_v32 = vor.u32 %v5249_v19, %v5246_v37  ;;  %v11994_v18 = vld [vmem:[%s14053_s21 + $0x138] sm:$0xe]  ;;  %v11361_v19 = vld [vmem:[%s14053_s21 + $0x158] sm:$0x1] }
 0x23e   : > { %v5259_v59 = vrot.slane %v5257_v10, 4  ;;  %v5242_v51 = vsel %vm14159_vm4, %v5237_v15, %v5241_v8  ;;  %v16413_v55 = vsel %vm14324_vm7, %v9916_v22, %v9917_v1  ;;  %v5263_v60 = vshll.u32 %v11355_v30, 16  ;;  %v11359_v8 = vld [vmem:[%s14053_s21 + $0x150] sm:$0xf] }
 0x23f   : > { %v9921_v16 = vrot.slane %v11992_v27, 5  ;;  %v16417_v23 = vrot.slane %v5250_v32, 4  ;;  %v12045_v45 = vrot.slane %v11991_v54, 9  ;;  %v5268_v52 = vshrl.u32 %v11356_v20, 16  ;;  %v11997_v32 = vld [vmem:[%s14053_s21 + $0x144] sm:$0xe] }
 0x240   : > { %12684 = vmatmul.mubr.msk.bf16.gmra.mrb[60].mxu1 %vm628_vm1, %v13982_v24  ;;  %v5260_v35 = vor.u32 %v5259_v59, %v16396_v9  ;;  %v9924_v49 = vrot.slane %v11993_v46, 5  ;;  %v5271_v14 = vshll.u32 %v11356_v20, 16  ;;  %v5277_v5 = vshll.u32 %v11357_v38, 16  ;;  %v11995_v24 = vld [vmem:[%s14053_s21 + $0x13c] sm:$0xf] }
 0x241   : > { %12721 = vmatprep.mubr.msk.bf16.mxu1 %vm628_vm1, %v16214_v2  ;;  %v9923_v7 = vrot.slane %v9921_v16, 4  ;;  %v16425_v6 = vcombine.low %v5232_v61, %v5242_v51  ;;  %v12077_v2 = vcombine.low %v16404_v26, %v16413_v55  ;;  %v5270_v39 = vrot.slane %v5268_v52, 4 }
 0x242   : > { %12982 = vmatmul.mubr.msk.bf16.gmra.mrb[28].mxu0 %vm628_vm1, %v12072_v17  ;;  %v5281_v58 = vshrl.u32 %v11357_v38, 16  ;;  %v5265_v0 = vrot.slane %v5263_v60, 5  ;;  %v5273_v36 = vrot.slane %v5271_v14, 5  ;;  %v16435_v13 = vrot.slane %v5277_v5, 5  ;;  %v11998_v60 = vld [vmem:[%s14053_s21 + $0x148] sm:$0xf] }
 0x243   : > { %12985 = vmatprep.mubr.msk.bf16.mxu0 %vm628_vm1, %v12073_v62  ;;  %v5287_v17 = vshll.u32 %v11358_v42, 16  ;;  %v5256_v3 = vsel %vm14159_vm4, %v16417_v23, %v16396_v9  ;;  %v5261_v12 = vrot.slane %v5260_v35, 4  ;;  %v16444_v25 = vsel %vm14324_vm7, %v12045_v45, %v9921_v16  ;;  %v11360_v62 = vld [vmem:[%s14053_s21 + $0x154] sm:$0xf]  ;;  %v11999_v45 = vld [vmem:[%s14053_s21 + $0x14c] sm:$0x1] }
 0x244   : > { %v5283_v48 = vrot.slane %v5281_v58, 4  ;;  %v16450_v22 = vsel %vm14324_vm7, %v9923_v7, %v9924_v49  ;;  %v5274_v1 = vor.u32 %v5273_v36, %v5270_v39  ;;  %v12046_v30 = vrot.slane %v11994_v18, 9  ;;  %v11362_v42 = vld [vmem:[%s14053_s21 + $0x15c] sm:$0xf]  ;;  %v11363_v14 = vld [vmem:[%s14053_s21 + $0x160] sm:$0xf] }
 0x245   : > { %v9928_v50 = vrot.slane %v11995_v24, 5  ;;  %v5289_v37 = vrot.slane %v5287_v17, 5  ;;  %v5292_v10 = vshrl.u32 %v11359_v8, 16  ;;  %v5295_v27 = vshll.u32 %v11359_v8, 16 }
 0x246   : > { %v5284_v15 = vor.u32 %v5283_v48, %v16435_v13  ;;  %v5275_v9 = vrot.slane %v5274_v1, 4  ;;  %v9931_v20 = vrot.slane %v11996_v43, 5  ;;  %v5301_v61 = vshll.u32 %v11360_v62, 16  ;;  %v12001_v48 = vld [vmem:[%s14053_s21 + $0x154] sm:$0xf] }
 0x247   : > { %v9930_v54 = vrot.slane %v9928_v50, 4  ;;  %v5294_v46 = vrot.slane %v5292_v10, 4  ;;  %v5297_v38 = vrot.slane %v5295_v27, 5  ;;  %v5305_v51 = vshrl.u32 %v11360_v62, 16  ;;  %v12002_v10 = vld [vmem:[%s14053_s21 + $0x158] sm:$0x1] }
 0x248   : > { %12722 = vmatmul.mubr.msk.bf16.vlgmr.msra.gmra.mrb[32].mxu1 %vm628_vm1, %v16280_v44  ;;  %v5285_v59 = vrot.slane %v5284_v15, 4  ;;  %v5266_v16 = vsel %vm14159_vm4, %v5261_v12, %v5265_v0  ;;  %v12078_v44 = vcombine.low %v16444_v25, %v16450_v22  ;;  %v16464_v23 = vrot.slane %v5301_v61, 5  ;;  %v11366_v27 = vld [vmem:[%s14053_s21 + $0x16c] sm:$0xf]  ;;  %v11367_v61 = vld [vmem:[%s14053_s21 + $0x170] sm:$0x1] }
 0x249   : > { %12725 = vmatprep.mubr.msk.bf16.mxu1 %vm628_vm1, %v16287_v29  ;;  %v5311_v35 = vshll.u32 %v11361_v19, 16  ;;  %v5280_v29 = vsel %vm14159_vm4, %v5275_v9, %v16435_v13  ;;  %v16477_v52 = vsel %vm14324_vm7, %v12046_v30, %v9928_v50  ;;  %v5298_v7 = vor.u32 %v5297_v38, %v5294_v46  ;;  %v11365_v50 = vld [vmem:[%s14053_s21 + $0x168] sm:$0xf] }
 0x24a   : > { %12986 = vmatmul.mubr.msk.bf16.gmra.mrb[32].mxu0 %vm628_vm1, %v12074_v47  ;;  %v5307_v49 = vrot.slane %v5305_v51, 4  ;;  %v5290_v21 = vsel %vm14159_vm4, %v5285_v59, %v5289_v37  ;;  %v16488_v4 = vsel %vm14324_vm7, %v9930_v54, %v9931_v20  ;;  %v12047_v47 = vrot.slane %v11997_v32, 9  ;;  %v12003_v51 = vld [vmem:[%s14053_s21 + $0x15c] sm:$0xe] }
 0x24b   : > { %12989 = vmatprep.mubr.msk.bf16.mxu0 %vm628_vm1, %v12075_v33  ;;  %v9935_v5 = vrot.slane %v11998_v60, 5  ;;  %v5299_v39 = vrot.slane %v5298_v7, 4  ;;  %v9938_v18 = vrot.slane %v11999_v45, 5  ;;  %v5316_v24 = vshrl.u32 %v11362_v42, 16 }
 0x24c   : > { %v5308_v58 = vor.u32 %v5307_v49, %v16464_v23  ;;  %v5313_v0 = vrot.slane %v5311_v35, 5  ;;  %v5319_v33 = vshll.u32 %v11362_v42, 16  ;;  %v5325_v36 = vshll.u32 %v11363_v14, 16  ;;  %v11368_v49 = vld [vmem:[%s14053_s21 + $0x174] sm:$0xf] }
 0x24d   : > { %v9937_v57 = vrot.slane %v9935_v5, 4  ;;  %v16492_v13 = vcombine.low %v5256_v3, %v5266_v16  ;;  %v5318_v8 = vrot.slane %v5316_v24, 4  ;;  %v5329_v12 = vshrl.u32 %v11363_v14, 16  ;;  %v12000_v3 = vld [vmem:[%s14053_s21 + $0x150] sm:$0xe] }
 0x24e   : > { %v5309_v17 = vrot.slane %v5308_v58, 4  ;;  %v16497_v43 = vcombine.low %v5280_v29, %v5290_v21  ;;  %v12079_v62 = vcombine.low %v16477_v52, %v16488_v4  ;;  %v5321_v1 = vrot.slane %v5319_v33, 5  ;;  %v12005_v29 = vld [vmem:[%s14053_s21 + $0x164] sm:$0x1] }
 0x24f   : > { %v16501_v30 = vrot.slane %v5325_v36, 5  ;;  %v5304_v15 = vsel %vm14159_vm4, %v5299_v39, %v16464_v23  ;;  %v16516_v37 = vsel %vm14324_vm7, %v9937_v57, %v9938_v18  ;;  %v5331_v19 = vrot.slane %v5329_v12, 4  ;;  %v11369_v39 = vld [vmem:[%s14053_s21 + $0x178] sm:$0xf]  ;;  %v11370_v57 = vld [vmem:[%s14053_s21 + $0x17c] sm:$0x1] }
 0x250   : > { %12726 = vmatmul.mubr.msk.bf16.gmra.mrb[36].mxu1 %vm628_vm1, %v16322_v56  ;;  %v16512_v56 = vsel %vm14324_vm7, %v12047_v47, %v9935_v5  ;;  %v5314_v9 = vsel %vm14159_vm4, %v5309_v17, %v5313_v0  ;;  %v5335_v54 = vshll.u32 %v11364_v11, 16  ;;  %v9942_v20 = vrot.slane %v12001_v48, 5  ;;  %v12006_v17 = vld [vmem:[%s14053_s21 + $0x168] sm:$0xe] }
 0x251   : > { %12729 = vmatprep.mubr.msk.bf16.mxu1 %vm628_vm1, %v16390_v53  ;;  %v5322_v53 = vor.u32 %v5321_v1, %v5318_v8  ;;  %v5332_v32 = vor.u32 %v5331_v19, %v16501_v30  ;;  %v12048_v59 = vrot.slane %v12000_v3, 9  ;;  %v5340_v46 = vshrl.u32 %v11365_v50, 16  ;;  %v12008_v19 = vld [vmem:[%s14053_s21 + $0x170] sm:$0x1] }
 0x252   : > { %12990 = vmatmul.mubr.msk.bf16.gmra.mrb[36].mxu0 %vm628_vm1, %v12076_v63  ;;  %v5343_v38 = vshll.u32 %v11365_v50, 16  ;;  %v9944_v16 = vrot.slane %v9942_v20, 4  ;;  %v9945_v23 = vrot.slane %v12002_v10, 5  ;;  %v5349_v31 = vshll.u32 %v11366_v27, 16 }
 0x253   : > { %12993 = vmatprep.mubr.msk.bf16.mxu0 %vm628_vm1, %v12077_v2  ;;  %v16533_v60 = vrot.slane %v5322_v53, 4  ;;  %v12080_v63 = vcombine.low %v16512_v56, %v16516_v37  ;;  %v5342_v35 = vrot.slane %v5340_v46, 4  ;;  %v5353_v42 = vshrl.u32 %v11366_v27, 16  ;;  %v11371_v27 = vld [vmem:[%s14053_s21 + $0x180] sm:$0xf] }
 0x254   : > { %v5345_v45 = vrot.slane %v5343_v38, 5  ;;  %v16539_v7 = vcombine.low %v5304_v15, %v5314_v9  ;;  %v16541_v26 = vrot.slane %v5335_v54, 5  ;;  %v16543_v55 = vrot.slane %v5349_v31, 5  ;;  %v11373_v31 = vld [vmem:[%s14053_s21 + $0x188] sm:$0x1] }
 0x255   : > { %v5359_v2 = vshll.u32 %v11367_v61, 16  ;;  %v5333_v14 = vrot.slane %v5332_v32, 4  ;;  %v16548_v21 = vsel %vm14324_vm7, %v12048_v59, %v9942_v20  ;;  %v5355_v5 = vrot.slane %v5353_v42, 4 }
 0x256   : > { %v5346_v47 = vor.u32 %v5345_v45, %v5342_v35  ;;  %v5328_v58 = vsel %vm14159_vm4, %v16533_v60, %v16501_v30  ;;  %v16559_v18 = vsel %vm14324_vm7, %v9944_v16, %v9945_v23  ;;  %v12049_v24 = vrot.slane %v12003_v51, 9  ;;  %v12007_v30 = vld [vmem:[%s14053_s21 + $0x16c] sm:$0xf] }
 0x257   : > { %v9949_v0 = vrot.slane %v12004_v28, 5  ;;  %v9952_v33 = vrot.slane %v12005_v29, 5  ;;  %v5364_v36 = vshrl.u32 %v11368_v49, 16  ;;  %v5361_v8 = vrot.slane %v5359_v2, 5 }
 0x258   : > { %12730 = vmatmul.mubr.msk.bf16.gmra.mrb[40].mxu1 %vm628_vm1, %v16392_v40  ;;  %v5347_v11 = vrot.slane %v5346_v47, 4  ;;  %v5356_v40 = vor.u32 %v5355_v5, %v16543_v55  ;;  %v5367_v48 = vshll.u32 %v11368_v49, 16  ;;  %v5373_v1 = vshll.u32 %v11369_v39, 16 }
 0x259   : > { %12733 = vmatprep.mubr.msk.bf16.mxu1 %vm628_vm1, %v16425_v6  ;;  %v9951_v12 = vrot.slane %v9949_v0, 4  ;;  %v5338_v6 = vsel %vm14159_vm4, %v5333_v14, %v16541_v26  ;;  %v5366_v50 = vrot.slane %v5364_v36, 4  ;;  %v5377_v15 = vshrl.u32 %v11369_v39, 16  ;;  %v12010_v26 = vld [vmem:[%s14053_s21 + $0x178] sm:$0xf] }
 0x25a   : > { %12994 = vmatmul.mubr.msk.bf16.gmra.mrb[40].mxu0 %vm628_vm1, %v12078_v44  ;;  %v5357_v3 = vrot.slane %v5356_v40, 4  ;;  %v12081_v10 = vcombine.low %v16548_v21, %v16559_v18  ;;  %v5369_v25 = vrot.slane %v5367_v48, 5  ;;  %v5375_v22 = vrot.slane %v5373_v1, 5  ;;  %v12009_v14 = vld [vmem:[%s14053_s21 + $0x174] sm:$0xe] }
 0x25b   : > { %12997 = vmatprep.mubr.msk.bf16.mxu0 %vm628_vm1, %v12079_v62  ;;  %v5383_v44 = vshll.u32 %v11370_v57, 16  ;;  %v5352_v9 = vsel %vm14159_vm4, %v5347_v11, %v16543_v55  ;;  %v16587_v53 = vsel %vm14324_vm7, %v12049_v24, %v9949_v0  ;;  %v16591_v52 = vsel %vm14324_vm7, %v9951_v12, %v9952_v33  ;;  %v11372_v62 = vld [vmem:[%s14053_s21 + $0x184] sm:$0xf]  ;;  %v11374_v21 = vld [vmem:[%s14053_s21 + $0x18c] sm:$0xf] }
 0x25c   : > { %v5379_v4 = vrot.slane %v5377_v15, 4  ;;  %v5362_v54 = vsel %vm14159_vm4, %v5357_v3, %v5361_v8  ;;  %v5370_v20 = vor.u32 %v5369_v25, %v5366_v50  ;;  %v12050_v61 = vrot.slane %v12006_v17, 9  ;;  %v11375_v18 = vld [vmem:[%s14053_s21 + $0x190] sm:$0xf]  ;;  %v11376_v40 = vld [vmem:[%s14053_s21 + $0x194] sm:$0x1] }
 0x25d   : > { %v9956_v32 = vrot.slane %v12007_v30, 5  ;;  %v9959_v46 = vrot.slane %v12008_v19, 5  ;;  %v5388_v38 = vshrl.u32 %v11371_v27, 16  ;;  %v5391_v51 = vshll.u32 %v11371_v27, 16  ;;  %v12012_v36 = vld [vmem:[%s14053_s21 + $0x180] sm:$0xe] }
 0x25e   : > { %v5380_v59 = vor.u32 %v5379_v4, %v5375_v22  ;;  %v5371_v60 = vrot.slane %v5370_v20, 4  ;;  %v5385_v16 = vrot.slane %v5383_v44, 5  ;;  %v5397_v28 = vshll.u32 %v11372_v62, 16  ;;  %v12013_v1 = vld [vmem:[%s14053_s21 + $0x184] sm:$0xf] }
 0x25f   : > { %v9958_v23 = vrot.slane %v9956_v32, 4  ;;  %v5390_v45 = vrot.slane %v5388_v38, 4  ;;  %v5393_v42 = vrot.slane %v5391_v51, 5  ;;  %v5401_v29 = vshrl.u32 %v11372_v62, 16  ;;  %v12014_v15 = vld [vmem:[%s14053_s21 + $0x188] sm:$0x1] }
 0x260   : > { %12734 = vmatmul.mubr.msk.bf16.gmra.mrb[44].mxu1 %vm628_vm1, %v16492_v13  ;;  %v5381_v35 = vrot.slane %v5380_v59, 4  ;;  %v11407_v55 = vcombine.low %v5328_v58, %v5338_v6  ;;  %v9957_v13 = vsel %vm14324_vm7, %v12050_v61, %v9956_v32  ;;  %v16606_v49 = vrot.slane %v5397_v28, 5  ;;  %v12011_v58 = vld [vmem:[%s14053_s21 + $0x17c] sm:$0x1]  ;;  %v11377_v44 = vld [vmem:[%s14053_s21 + $0x198] sm:$0xf] }
 0x261   : > { %12737 = vmatprep.mubr.msk.bf16.mxu1 %vm628_vm1, %v16497_v43  ;;  %v9960_v2 = vsel %vm14324_vm7, %v9958_v23, %v9959_v46  ;;  %v16614_v43 = vcombine.low %v5352_v9, %v5362_v54  ;;  %v12082_v47 = vcombine.low %v16587_v53, %v16591_v52  ;;  %v5403_v5 = vrot.slane %v5401_v29, 4  ;;  %v11378_v4 = vld [vmem:[%s14053_s21 + $0x19c] sm:$0xf]  ;;  %v11379_v59 = vld [vmem:[%s14053_s21 + $0x1a0] sm:$0x1] }
 0x262   : > { %12998 = vmatmul.mubr.msk.bf16.gmra.mrb[44].mxu0 %vm628_vm1, %v12080_v63  ;;  %v5407_v39 = vshll.u32 %v11373_v31, 16  ;;  %v5376_v24 = vsel %vm14159_vm4, %v5371_v60, %v5375_v22  ;;  %v5386_v56 = vsel %vm14159_vm4, %v5381_v35, %v5385_v16  ;;  %v5394_v37 = vor.u32 %v5393_v42, %v5390_v45  ;;  %v12015_v31 = vld [vmem:[%s14053_s21 + $0x18c] sm:$0xe]  ;;  %v12016_v29 = vld [vmem:[%s14053_s21 + $0x190] sm:$0xf] }
 0x263   : > { %13001 = vmatprep.mubr.msk.bf16.mxu0 %vm628_vm1, %v12081_v10  ;;  %v9963_v63 = vrot.slane %v12010_v26, 5  ;;  %v12083_v0 = vcombine.low %v9957_v13, %v9960_v2  ;;  %v5404_v57 = vor.u32 %v5403_v5, %v16606_v49  ;;  %v12051_v11 = vrot.slane %v12009_v14, 9  ;;  %v12017_v14 = vld [vmem:[%s14053_s21 + $0x194] sm:$0x1] }
 0x264   : > { %v5412_v33 = vshrl.u32 %v11374_v21, 16  ;;  %v9966_v8 = vrot.slane %v12011_v58, 5  ;;  %v5415_v12 = vshll.u32 %v11374_v21, 16  ;;  %v5421_v48 = vshll.u32 %v11375_v18, 16  ;;  %v12018_v21 = vld [vmem:[%s14053_s21 + $0x198] sm:$0xe] }
 0x265   : > { %v9965_v17 = vrot.slane %v9963_v63, 4  ;;  %v11409_v30 = vcombine.low %v5376_v24, %v5386_v56  ;;  %v16629_v6 = vrot.slane %v5407_v39, 5  ;;  %v5425_v50 = vshrl.u32 %v11375_v18, 16  ;;  %v12019_v18 = vld [vmem:[%s14053_s21 + $0x19c] sm:$0xf] }
 0x266   : > { %v5414_v3 = vrot.slane %v5412_v33, 4  ;;  %v5395_v19 = vrot.slane %v5394_v37, 4  ;;  %v5417_v10 = vrot.slane %v5415_v12, 5  ;;  %v5423_v25 = vrot.slane %v5421_v48, 5  ;;  %v12020_v24 = vld [vmem:[%s14053_s21 + $0x1a0] sm:$0x1] }
 0x267   : > { %v5431_v22 = vshll.u32 %v11376_v40, 16  ;;  %v5405_v27 = vrot.slane %v5404_v57, 4  ;;  %v9964_v9 = vsel %vm14324_vm7, %v12051_v11, %v9963_v63  ;;  %v5427_v53 = vrot.slane %v5425_v50, 4  ;;  %v12022_v33 = vld [vmem:[%s14053_s21 + $0x1a8] sm:$0xf] }
 0x268   : > { %12738 = vmatmul.mubr.msk.bf16.gmra.mrb[48].mxu1 %vm628_vm1, %v16539_v7  ;;  %v12052_v52 = vrot.slane %v12012_v36, 9  ;;  %v9967_v62 = vsel %vm14324_vm7, %v9965_v17, %v9966_v8  ;;  %v5418_v7 = vor.u32 %v5417_v10, %v5414_v3  ;;  %v9970_v20 = vrot.slane %v12013_v1, 5 }
 0x269   : > { %12741 = vmatprep.mubr.msk.bf16.mxu1 %vm628_vm1, %v11407_v55  ;;  %v5433_v54 = vrot.slane %v5431_v22, 5  ;;  %v5428_v61 = vor.u32 %v5427_v53, %v5423_v25  ;;  %v9973_v32 = vrot.slane %v12014_v15, 5  ;;  %v5436_v46 = vshrl.u32 %v11377_v44, 16 }
 0x26a   : > { %13002 = vmatmul.mubr.msk.bf16.gmra.mrb[48].mxu0 %vm628_vm1, %v12082_v47  ;;  %v5439_v38 = vshll.u32 %v11377_v44, 16  ;;  %v5419_v51 = vrot.slane %v5418_v7, 4  ;;  %v9971_v60 = vsel %vm14324_vm7, %v12052_v52, %v9970_v20  ;;  %v9972_v16 = vrot.slane %v9970_v20, 4 }
 0x26b   : > { %13005 = vmatprep.mubr.msk.bf16.mxu0 %vm628_vm1, %v12083_v0  ;;  %v5445_v23 = vshll.u32 %v11378_v4, 16  ;;  %v5429_v28 = vrot.slane %v5428_v61, 4  ;;  %v5438_v35 = vrot.slane %v5436_v46, 4  ;;  %v5449_v42 = vshrl.u32 %v11378_v4, 16 }
 0x26c   : > { %v5441_v45 = vrot.slane %v5439_v38, 5  ;;  %v5400_v26 = vsel %vm14159_vm4, %v5395_v19, %v16606_v49  ;;  %v5410_v55 = vsel %vm14159_vm4, %v5405_v27, %v16629_v6  ;;  %v9974_v13 = vsel %vm14324_vm7, %v9972_v16, %v9973_v32  ;;  %v12021_v6 = vld [vmem:[%s14053_s21 + $0x1a4] sm:$0xe] }
 0x26d   : > { %v5447_v2 = vrot.slane %v5445_v23, 5  ;;  %v12084_v47 = vcombine.low %v9964_v9, %v9967_v62  ;;  %v5424_v5 = vsel %vm14159_vm4, %v5419_v51, %v5423_v25  ;;  %v5451_v39 = vrot.slane %v5449_v42, 4  ;;  %v12023_v25 = vld [vmem:[%s14053_s21 + $0x1ac] sm:$0x1] }
 0x26e   : > { %v5455_v58 = vshll.u32 %v11379_v59, 16  ;;  %v5434_v49 = vsel %vm14159_vm4, %v5429_v28, %v5433_v54  ;;  %v12085_v56 = vcombine.low %v9971_v60, %v9974_v13  ;;  %v12053_v37 = vrot.slane %v12015_v31, 9 }
 0x26f   : > { %v9977_v63 = vrot.slane %v12016_v29, 5  ;;  %v5442_v0 = vor.u32 %v5441_v45, %v5438_v35  ;;  %v5452_v57 = vor.u32 %v5451_v39, %v5447_v2  ;;  %v9980_v11 = vrot.slane %v12017_v14, 5 }
 0x270   : > { %12742 = vmatmul.mubr.msk.bf16.gmra.mrb[52].mxu1 %vm628_vm1, %v16614_v43  ;;  %v12054_v40 = vrot.slane %v12018_v21, 9  ;;  %v9984_v17 = vrot.slane %v12019_v18, 5  ;;  %v9987_v8 = vrot.slane %v12020_v24, 5  ;;  %v11410_v12 = vcombine.low %v5400_v26, %v5410_v55 }
 0x271   : > { %12745 = vmatprep.mubr.msk.bf16.mxu1 %vm628_vm1, %v11409_v30  ;;  %v9979_v36 = vrot.slane %v9977_v63, 4  ;;  %v11411_v43 = vcombine.low %v5424_v5, %v5434_v49  ;;  %v9978_v48 = vsel %vm14324_vm7, %v12053_v37, %v9977_v63  ;;  %v9991_v3 = vrot.slane %v12022_v33, 5  ;;  %v404_v33 = vld [vmem:[#allocation2 + $0x8] sm:$0xff] }
 0x272   : > { %13006 = vmatmul.mubr.msk.bf16.gmra.mrb[52].mxu0 %vm628_vm1, %v12084_v47  ;;  %v9986_v30 = vrot.slane %v9984_v17, 4  ;;  %v5443_v50 = vrot.slane %v5442_v0, 4  ;;  %v5453_v15 = vrot.slane %v5452_v57, 4  ;;  %v5457_v19 = vrot.slane %v5455_v58, 5  ;;  %v405_v0 = vld [vmem:[#allocation2 + $0x10] sm:$0xff]  ;;  %v403_v57 = vld [vmem:[#allocation2] sm:$0xff] }
 0x273   : > { %13009 = vmatprep.mubr.msk.bf16.mxu0 %vm628_vm1, %v12085_v56  ;;  %v9981_v1 = vsel %vm14324_vm7, %v9979_v36, %v9980_v11  ;;  %v9985_v10 = vsel %vm14324_vm7, %v12054_v40, %v9984_v17  ;;  %v12055_v9 = vrot.slane %v12021_v6, 9  ;;  %v9993_v53 = vrot.slane %v9991_v3, 4  ;;  %v406_v11 = vld [vmem:[#allocation2 + $0x18] sm:$0xff] }
 0x274   : > { %v9988_v22 = vsel %vm14324_vm7, %v9986_v30, %v9987_v8  ;;  %v12086_v44 = vcombine.low %v9978_v48, %v9981_v1  ;;  %v9994_v52 = vrot.slane %v12023_v25, 5  ;;  %v5448_v4 = vsel %vm14159_vm4, %v5443_v50, %v5447_v2  ;;  %v409_v50 = vld [vmem:[#allocation2 + $0x30] sm:$0xff] }
 0x275   : > { %v12087_v27 = vcombine.low %v9985_v10, %v9988_v22  ;;  %v5458_v62 = vsel %vm14159_vm4, %v5453_v15, %v5457_v19  ;;  %v9992_v54 = vsel %vm14324_vm7, %v12055_v9, %v9991_v3  ;;  %v407_v19 = vld [vmem:[#allocation2 + $0x20] sm:$0xff]  ;;  %v410_v10 = vld [vmem:[#allocation2 + $0x38] sm:$0xff]  ;;  %v408_v22 = vld [vmem:[#allocation2 + $0x28] sm:$0xff] }
 0x276   : > { %v11412_v7 = vcombine.low %v5448_v4, %v5458_v62  ;;  %v9995_v20 = vsel %vm14324_vm7, %v9993_v53, %v9994_v52 }
 0x277   : > { %v12088_v61 = vcombine.low %v9992_v54, %v9995_v20 }
 0x278   : > { %12746 = vmatmul.mubr.msk.bf16.gmra.mrb[56].mxu1 %vm628_vm1, %v11410_v12 }
 0x279   : > { %12749 = vmatprep.mubr.msk.bf16.mxu1 %vm628_vm1, %v11411_v43 }
 0x27a   : > { %13010 = vmatmul.mubr.msk.bf16.gmra.mrb[56].mxu0 %vm628_vm1, %v12086_v44 }
 0x27b   : > { %13013 = vmatprep.mubr.msk.bf16.mxu0 %vm628_vm1, %v12087_v27 }
 0x280   : > { %12750 = vmatmul.mubr.msk.bf16.gmra.mrb[60].mxu1 %vm628_vm1, %v11412_v7 }
 0x282   : > { %13014 = vmatmul.mubr.msk.bf16.gmra.mrb[60].mxu0 %vm628_vm1, %v12088_v61  ;;  %v413_v61 = vld [vmem:[#allocation2 + $0x50] sm:$0xff] }
 0x29b   : > { %v12625_v32 = vpop.f32.mrb[0].mxu1 }
 0x29c   : > { %v4212_v59 = vpop.f32.mrb[1].mxu1  ;;  %v13021_v40 = vadd.f32 %v12625_v32, %v405_v0 }
 0x29d   : > { %v12626_v34 = vpop.f32.mrb[2].mxu1  ;;  %v13027_v36 = vadd.f32 %v4212_v59, %v403_v57  ;;  %v411_v59 = vld [vmem:[#allocation2 + $0x40] sm:$0xff] }
 0x29e   : > { %v4215_v46 = vpop.f32.mrb[3].mxu1  ;;  %v13033_v8 = vadd.f32 %v12626_v34, %v406_v11  ;;  %v414_v34 = vld [vmem:[#allocation2 + $0x58] sm:$0xff] }
 0x29f   : > { %v13039_v48 = vadd.f32 %v4215_v46, %v404_v33 }
 0x2a3   : > { %v12629_v38 = vpop.f32.mrb[4].mxu1 }
 0x2a4   : > { %v4228_v51 = vpop.f32.mrb[5].mxu1  ;;  %v13045_v25 = vadd.f32 %v12629_v38, %v409_v50  ;;  %v412_v38 = vld [vmem:[#allocation2 + $0x48] sm:$0xff] }
 0x2a5   : > { %v12630_v60 = vpop.f32.mrb[6].mxu1  ;;  %v13051_v44 = vadd.f32 %v4228_v51, %v407_v19 }
 0x2a6   : > { %v4231_v16 = vpop.f32.mrb[7].mxu1  ;;  %v13057_v9 = vadd.f32 %v12630_v60, %v410_v10 }
 0x2a7   : > { %v13063_v4 = vadd.f32 %v4231_v16, %v408_v22 }
 0x2ab   : > { %v16694_v23 = vpop.f32.mrb[8].mxu1 }
 0x2ac   : > { %v16696_v31 = vpop.f32.mrb[9].mxu1  ;;  %v13069_v46 = vadd.f32 %v16694_v23, %v413_v61  ;;  %v418_v23 = vld [vmem:[#allocation2 + $0x78] sm:$0xff]  ;;  %v425_v61 = vld [vmem:[#allocation2 + $0xb0] sm:$0xff] }
 0x2ad   : > { %v16698_v28 = vpop.f32.mrb[10].mxu1  ;;  %v13075_v51 = vadd.f32 %v16696_v31, %v411_v59  ;;  %v423_v59 = vld [vmem:[#allocation2 + $0xa0] sm:$0xff] }
 0x2ae   : > { %v16700_v41 = vpop.f32.mrb[11].mxu1  ;;  %v13081_v16 = vadd.f32 %v16698_v28, %v414_v34  ;;  %v424_v34 = vld [vmem:[#allocation2 + $0xa8] sm:$0xff] }
 0x2af   : > { %v13087_v11 = vadd.f32 %v16700_v41, %v412_v38 }
 0x2b3   : > { %v16702_v35 = vpop.f32.mrb[12].mxu1 }
 0x2b4   : > { %v16704_v45 = vpop.f32.mrb[13].mxu1 }
 0x2b5   : > { %v16706_v42 = vpop.f32.mrb[14].mxu1 }
 0x2b6   : > { %v16708_v29 = vpop.f32.mrb[15].mxu1  ;;  %v13105_v41 = vadd.f32 %v16706_v42, %v418_v23 }
 0x2bb   : > { %v16710_v26 = vpop.f32.mrb[16].mxu1 }
 0x2bc   : > { %v16712_v55 = vpop.f32.mrb[17].mxu1 }
 0x2bd   : > { %v16714_v13 = vpop.f32.mrb[18].mxu1 }
 0x2be   : > { %v16716_v2 = vpop.f32.mrb[19].mxu1 }
 0x2c3   : > { %v16718_v14 = vpop.f32.mrb[20].mxu1 }
 0x2c4   : > { %v16720_v21 = vpop.f32.mrb[21].mxu1 }
 0x2c5   : > { %v16722_v47 = vpop.f32.mrb[22].mxu1 }
 0x2c6   : > { %v16724_v5 = vpop.f32.mrb[23].mxu1 }
 0x2cb   : > { %v16726_v39 = vpop.f32.mrb[24].mxu1 }
 0x2cc   : > { %v16728_v58 = vpop.f32.mrb[25].mxu1 }
 0x2cd   : > { %v16730_v18 = vpop.f32.mrb[26].mxu1 }
 0x2ce   : > { %v16732_v24 = vpop.f32.mrb[27].mxu1 }
 0x2d3   : > { %v16734_v49 = vpop.f32.mrb[28].mxu1 }
 0x2d4   : > { %v16736_v56 = vpop.f32.mrb[29].mxu1 }
 0x2d5   : > { %v16738_v37 = vpop.f32.mrb[30].mxu1 }
 0x2d6   : > { %v16740_v63 = vpop.f32.mrb[31].mxu1 }
 0x2dd   : > { %v12955_v17 = vpop.f32.mrb[0].mxu0 }
 0x2de   : > { %v13024_v12 = vadd.f32 %v13021_v40, %v12955_v17  ;;  %v10291_v43 = vpop.f32.mrb[1].mxu0 }
 0x2df   : > { %v13030_v1 = vadd.f32 %v13027_v36, %v10291_v43  ;;  %v12956_v30 = vpop.f32.mrb[2].mxu0  ;;  %v415_v43 = vld [vmem:[#allocation2 + $0x60] sm:$0xff] }
 0x2e0   : > { %10612 = vst [vmem:[#allocation2 + $0x10] sm:$0xff] %v13024_v12  ;;  %v13036_v6 = vadd.f32 %v13033_v8, %v12956_v30  ;;  %v10294_v3 = vpop.f32.mrb[3].mxu0  ;;  %v417_v8 = vld [vmem:[#allocation2 + $0x70] sm:$0xff]  ;;  %v13099_v28 = vadd.f32 %v16704_v45, %v415_v43 }
 0x2e1   : > { %10610 = vst [vmem:[#allocation2] sm:$0xff] %v13030_v1  ;;  %v13042_v15 = vadd.f32 %v13039_v48, %v10294_v3  ;;  %v13093_v31 = vadd.f32 %v16702_v35, %v417_v8  ;;  %v416_v48 = vld [vmem:[#allocation2 + $0x68] sm:$0xff]  ;;  %v422_v35 = vld [vmem:[#allocation2 + $0x98] sm:$0xff] }
 0x2e2   : > { %10613 = vst [vmem:[#allocation2 + $0x18] sm:$0xff] %v13036_v6  ;;  %v13111_v3 = vadd.f32 %v16708_v29, %v416_v48  ;;  %v13129_v29 = vadd.f32 %v16714_v13, %v422_v35  ;;  %v13147_v13 = vadd.f32 %v16720_v21, %v423_v59 }
 0x2e3   : > { %10611 = vst [vmem:[#allocation2 + $0x8] sm:$0xff] %v13042_v15 }
 0x2e5   : > { %v12959_v27 = vpop.f32.mrb[4].mxu0 }
 0x2e6   : > { %v13048_v53 = vadd.f32 %v13045_v25, %v12959_v27  ;;  %v10307_v52 = vpop.f32.mrb[5].mxu0  ;;  %v421_v25 = vld [vmem:[#allocation2 + $0x90] sm:$0xff]  ;;  %v420_v27 = vld [vmem:[#allocation2 + $0x88] sm:$0xff] }
 0x2e7   : > { %v13054_v62 = vadd.f32 %v13051_v44, %v10307_v52  ;;  %v12960_v7 = vpop.f32.mrb[6].mxu0  ;;  %v419_v44 = vld [vmem:[#allocation2 + $0x80] sm:$0xff]  ;;  %v13117_v45 = vadd.f32 %v16710_v26, %v421_v25  ;;  %v426_v26 = vld [vmem:[#allocation2 + $0xb8] sm:$0xff] }
 0x2e8   : > { %10616 = vst [vmem:[#allocation2 + $0x30] sm:$0xff] %v13048_v53  ;;  %v13060_v54 = vadd.f32 %v13057_v9, %v12960_v7  ;;  %v10310_v20 = vpop.f32.mrb[7].mxu0  ;;  %v13123_v42 = vadd.f32 %v16712_v55, %v419_v44  ;;  %v13141_v55 = vadd.f32 %v16718_v14, %v425_v61  ;;  %v430_v14 = vld [vmem:[#allocation2 + $0xd8] sm:$0xff] }
 0x2e9   : > { %10614 = vst [vmem:[#allocation2 + $0x20] sm:$0xff] %v13054_v62  ;;  %v13066_v32 = vadd.f32 %v13063_v4, %v10310_v20  ;;  %v13135_v4 = vadd.f32 %v16716_v2, %v420_v27  ;;  %v13153_v2 = vadd.f32 %v16722_v47, %v426_v26 }
 0x2ea   : > { %10617 = vst [vmem:[#allocation2 + $0x38] sm:$0xff] %v13060_v54 }
 0x2eb   : > { %10615 = vst [vmem:[#allocation2 + $0x28] sm:$0xff] %v13066_v32 }
 0x2ed   : > { %v12963_v60 = vpop.f32.mrb[8].mxu0 }
 0x2ee   : > { %v13072_v0 = vadd.f32 %v13069_v46, %v12963_v60  ;;  %v10323_v57 = vpop.f32.mrb[9].mxu0  ;;  %v13159_v60 = vadd.f32 %v16724_v5, %v424_v34  ;;  %v13177_v5 = vadd.f32 %v16730_v18, %v430_v14 }
 0x2ef   : > { %v13078_v40 = vadd.f32 %v13075_v51, %v10323_v57  ;;  %v12964_v33 = vpop.f32.mrb[10].mxu0 }
 0x2f0   : > { %10620 = vst [vmem:[#allocation2 + $0x50] sm:$0xff] %v13072_v0  ;;  %v13084_v36 = vadd.f32 %v13081_v16, %v12964_v33  ;;  %v10326_v17 = vpop.f32.mrb[11].mxu0 }
 0x2f1   : > { %10618 = vst [vmem:[#allocation2 + $0x40] sm:$0xff] %v13078_v40  ;;  %v13090_v12 = vadd.f32 %v13087_v11, %v10326_v17  ;;  %v429_v40 = vld [vmem:[#allocation2 + $0xd0] sm:$0xff]  ;;  %v428_v17 = vld [vmem:[#allocation2 + $0xc8] sm:$0xff] }
 0x2f2   : > { %10621 = vst [vmem:[#allocation2 + $0x58] sm:$0xff] %v13084_v36  ;;  %v427_v36 = vld [vmem:[#allocation2 + $0xc0] sm:$0xff]  ;;  %v13165_v21 = vadd.f32 %v16726_v39, %v429_v40  ;;  %v13183_v23 = vadd.f32 %v16732_v24, %v428_v17  ;;  %v434_v39 = vld [vmem:[#allocation2 + $0xf8] sm:$0xff] }
 0x2f3   : > { %10619 = vst [vmem:[#allocation2 + $0x48] sm:$0xff] %v13090_v12  ;;  %v13171_v47 = vadd.f32 %v16728_v58, %v427_v36  ;;  %v13201_v24 = vadd.f32 %v16738_v37, %v434_v39 }
 0x2f5   : > { %v12967_v1 = vpop.f32.mrb[12].mxu0 }
 0x2f6   : > { %v13096_v30 = vadd.f32 %v13093_v31, %v12967_v1  ;;  %v10339_v6 = vpop.f32.mrb[13].mxu0 }
 0x2f7   : > { %v13102_v50 = vadd.f32 %v13099_v28, %v10339_v6  ;;  %v12968_v15 = vpop.f32.mrb[14].mxu0  ;;  %v431_v6 = vld [vmem:[#allocation2 + $0xe0] sm:$0xff] }
 0x2f8   : > { %10624 = vst [vmem:[#allocation2 + $0x70] sm:$0xff] %v13096_v30  ;;  %v13108_v19 = vadd.f32 %v13105_v41, %v12968_v15  ;;  %v10342_v10 = vpop.f32.mrb[15].mxu0  ;;  %v433_v41 = vld [vmem:[#allocation2 + $0xf0] sm:$0xff]  ;;  %v13195_v18 = vadd.f32 %v16736_v56, %v431_v6  ;;  %v438_v56 = vld [vmem:[#allocation2 + $0x118] sm:$0xff] }
 0x2f9   : > { %10622 = vst [vmem:[#allocation2 + $0x60] sm:$0xff] %v13102_v50  ;;  %v13114_v22 = vadd.f32 %v13111_v3, %v10342_v10  ;;  %v13189_v58 = vadd.f32 %v16734_v49, %v433_v41  ;;  %v432_v3 = vld [vmem:[#allocation2 + $0xe8] sm:$0xff]  ;;  %v435_v49 = vld [vmem:[#allocation2 + $0x100] sm:$0xff] }
 0x2fa   : > { %10625 = vst [vmem:[#allocation2 + $0x78] sm:$0xff] %v13108_v19  ;;  %v13207_v10 = vadd.f32 %v16740_v63, %v432_v3  ;;  %v444_v41 = vld [vmem:[#allocation2 + $0x148] sm:$0xff] }
 0x2fb   : > { %10623 = vst [vmem:[#allocation2 + $0x68] sm:$0xff] %v13114_v22 }
 0x2fd   : > { %v12971_v9 = vpop.f32.mrb[16].mxu0 }
 0x2fe   : > { %v13120_v53 = vadd.f32 %v13117_v45, %v12971_v9  ;;  %v10355_v52 = vpop.f32.mrb[17].mxu0  ;;  %v437_v45 = vld [vmem:[#allocation2 + $0x110] sm:$0xff] }
 0x2ff   : > { %v13126_v62 = vadd.f32 %v13123_v42, %v10355_v52  ;;  %v12972_v7 = vpop.f32.mrb[18].mxu0 }
 0x300   : > { %10628 = vst [vmem:[#allocation2 + $0x90] sm:$0xff] %v13120_v53  ;;  %v13132_v54 = vadd.f32 %v13129_v29, %v12972_v7  ;;  %v10358_v20 = vpop.f32.mrb[19].mxu0  ;;  %v436_v53 = vld [vmem:[#allocation2 + $0x108] sm:$0xff] }
 0x301   : > { %10626 = vst [vmem:[#allocation2 + $0x80] sm:$0xff] %v13126_v62  ;;  %v13138_v32 = vadd.f32 %v13135_v4, %v10358_v20 }
 0x302   : > { %10629 = vst [vmem:[#allocation2 + $0x98] sm:$0xff] %v13132_v54 }
 0x303   : > { %10627 = vst [vmem:[#allocation2 + $0x88] sm:$0xff] %v13138_v32 }
 0x305   : > { %v12975_v46 = vpop.f32.mrb[20].mxu0 }
 0x306   : > { %v13144_v38 = vadd.f32 %v13141_v55, %v12975_v46  ;;  %v10371_v51 = vpop.f32.mrb[21].mxu0  ;;  %v441_v55 = vld [vmem:[#allocation2 + $0x130] sm:$0xff]  ;;  %v439_v46 = vld [vmem:[#allocation2 + $0x120] sm:$0xff] }
 0x307   : > { %v13150_v16 = vadd.f32 %v13147_v13, %v10371_v51  ;;  %v12976_v0 = vpop.f32.mrb[22].mxu0 }
 0x308   : > { %10632 = vst [vmem:[#allocation2 + $0xb0] sm:$0xff] %v13144_v38  ;;  %v13156_v57 = vadd.f32 %v13153_v2, %v12976_v0  ;;  %v10374_v11 = vpop.f32.mrb[23].mxu0  ;;  %v442_v38 = vld [vmem:[#allocation2 + $0x138] sm:$0xff] }
 0x309   : > { %10630 = vst [vmem:[#allocation2 + $0xa0] sm:$0xff] %v13150_v16  ;;  %v13162_v33 = vadd.f32 %v13159_v60, %v10374_v11  ;;  %v440_v16 = vld [vmem:[#allocation2 + $0x128] sm:$0xff] }
 0x30a   : > { %10633 = vst [vmem:[#allocation2 + $0xb8] sm:$0xff] %v13156_v57 }
 0x30b   : > { %10631 = vst [vmem:[#allocation2 + $0xa8] sm:$0xff] %v13162_v33 }
 0x30d   : > { %v12979_v8 = vpop.f32.mrb[24].mxu0 }
 0x30e   : > { %v13168_v12 = vadd.f32 %v13165_v21, %v12979_v8  ;;  %v10387_v43 = vpop.f32.mrb[25].mxu0 }
 0x30f   : > { %v13174_v31 = vadd.f32 %v13171_v47, %v10387_v43  ;;  %v12980_v48 = vpop.f32.mrb[26].mxu0 }
 0x310   : > { %10636 = vst [vmem:[#allocation2 + $0xd0] sm:$0xff] %v13168_v12  ;;  %v13180_v28 = vadd.f32 %v13177_v5, %v12980_v48  ;;  %v10390_v1 = vpop.f32.mrb[27].mxu0  ;;  %v445_v5 = vld [vmem:[#allocation2 + $0x150] sm:$0xff]  ;;  %v446_v48 = vld [vmem:[#allocation2 + $0x158] sm:$0xff] }
 0x311   : > { %10634 = vst [vmem:[#allocation2 + $0xc0] sm:$0xff] %v13174_v31  ;;  %v13186_v30 = vadd.f32 %v13183_v23, %v10390_v1  ;;  %v443_v23 = vld [vmem:[#allocation2 + $0x140] sm:$0xff] }
 0x312   : > { %10637 = vst [vmem:[#allocation2 + $0xd8] sm:$0xff] %v13180_v28 }
 0x313   : > { %10635 = vst [vmem:[#allocation2 + $0xc8] sm:$0xff] %v13186_v30 }
 0x315   : > { %v12983_v50 = vpop.f32.mrb[28].mxu0 }
 0x316   : > { %v13192_v15 = vadd.f32 %v13189_v58, %v12983_v50  ;;  %v10403_v19 = vpop.f32.mrb[29].mxu0 }
 0x317   : > { %v13198_v25 = vadd.f32 %v13195_v18, %v10403_v19  ;;  %v12984_v22 = vpop.f32.mrb[30].mxu0 }
 0x318   : > { %10640 = vst [vmem:[#allocation2 + $0xf0] sm:$0xff] %v13192_v15  ;;  %v13204_v44 = vadd.f32 %v13201_v24, %v12984_v22  ;;  %v10406_v35 = vpop.f32.mrb[31].mxu0 }
 0x319   : > { %10638 = vst [vmem:[#allocation2 + $0xe0] sm:$0xff] %v13198_v25  ;;  %v13210_v27 = vadd.f32 %v13207_v10, %v10406_v35  ;;  %v449_v25 = vld [vmem:[#allocation2 + $0x170] sm:$0xff]  ;;  %v447_v35 = vld [vmem:[#allocation2 + $0x160] sm:$0xff] }
 0x31a   : > { %10641 = vst [vmem:[#allocation2 + $0xf8] sm:$0xff] %v13204_v44 }
 0x31b   : > { %v12723_v42 = vpop.f32.mrb[32].mxu1  ;;  %10639 = vst [vmem:[#allocation2 + $0xe8] sm:$0xff] %v13210_v27  ;;  %v450_v27 = vld [vmem:[#allocation2 + $0x178] sm:$0xff] }
 0x31c   : > { %v5882_v9 = vpop.f32.mrb[33].mxu1  ;;  %v13213_v29 = vadd.f32 %v12723_v42, %v437_v45 }
 0x31d   : > { %v12724_v37 = vpop.f32.mrb[34].mxu1  ;;  %v13219_v52 = vadd.f32 %v5882_v9, %v435_v49  ;;  %v12987_v63 = vpop.f32.mrb[32].mxu0  ;;  %v448_v9 = vld [vmem:[#allocation2 + $0x168] sm:$0xff] }
 0x31e   : > { %v5885_v4 = vpop.f32.mrb[35].mxu1  ;;  %v13225_v62 = vadd.f32 %v12724_v37, %v438_v56  ;;  %v13216_v7 = vadd.f32 %v13213_v29, %v12987_v63  ;;  %v10419_v54 = vpop.f32.mrb[33].mxu0 }
 0x31f   : > { %v13231_v20 = vadd.f32 %v5885_v4, %v436_v53  ;;  %v13222_v61 = vadd.f32 %v13219_v52, %v10419_v54  ;;  %v12988_v32 = vpop.f32.mrb[34].mxu0 }
 0x320   : > { %10644 = vst [vmem:[#allocation2 + $0x110] sm:$0xff] %v13216_v7  ;;  %v13228_v59 = vadd.f32 %v13225_v62, %v12988_v32  ;;  %v10422_v26 = vpop.f32.mrb[35].mxu0 }
 0x321   : > { %10642 = vst [vmem:[#allocation2 + $0x100] sm:$0xff] %v13222_v61  ;;  %v13234_v34 = vadd.f32 %v13231_v20, %v10422_v26  ;;  %v453_v61 = vld [vmem:[#allocation2 + $0x190] sm:$0xff]  ;;  %v451_v26 = vld [vmem:[#allocation2 + $0x180] sm:$0xff] }
 0x322   : > { %10645 = vst [vmem:[#allocation2 + $0x118] sm:$0xff] %v13228_v59 }
 0x323   : > { %v12727_v13 = vpop.f32.mrb[36].mxu1  ;;  %10643 = vst [vmem:[#allocation2 + $0x108] sm:$0xff] %v13234_v34  ;;  %v454_v34 = vld [vmem:[#allocation2 + $0x198] sm:$0xff] }
 0x324   : > { %v5898_v2 = vpop.f32.mrb[37].mxu1  ;;  %v13237_v51 = vadd.f32 %v12727_v13, %v441_v55 }
 0x325   : > { %v12728_v60 = vpop.f32.mrb[38].mxu1  ;;  %v13243_v0 = vadd.f32 %v5898_v2, %v439_v46  ;;  %v12991_v11 = vpop.f32.mrb[36].mxu0  ;;  %v452_v2 = vld [vmem:[#allocation2 + $0x188] sm:$0xff] }
 0x326   : > { %v5901_v57 = vpop.f32.mrb[39].mxu1  ;;  %v13249_v40 = vadd.f32 %v12728_v60, %v442_v38  ;;  %v13240_v33 = vadd.f32 %v13237_v51, %v12991_v11  ;;  %v10435_v36 = vpop.f32.mrb[37].mxu0 }
 0x327   : > { %v13255_v14 = vadd.f32 %v5901_v57, %v440_v16  ;;  %v13246_v21 = vadd.f32 %v13243_v0, %v10435_v36  ;;  %v12992_v17 = vpop.f32.mrb[38].mxu0 }
 0x328   : > { %10648 = vst [vmem:[#allocation2 + $0x130] sm:$0xff] %v13240_v33  ;;  %v13252_v47 = vadd.f32 %v13249_v40, %v12992_v17  ;;  %v10438_v8 = vpop.f32.mrb[39].mxu0 }
 0x329   : > { %10646 = vst [vmem:[#allocation2 + $0x120] sm:$0xff] %v13246_v21  ;;  %v13258_v12 = vadd.f32 %v13255_v14, %v10438_v8  ;;  %v457_v21 = vld [vmem:[#allocation2 + $0x1b0] sm:$0xff]  ;;  %v455_v8 = vld [vmem:[#allocation2 + $0x1a0] sm:$0xff] }
 0x32a   : > { %10649 = vst [vmem:[#allocation2 + $0x138] sm:$0xff] %v13252_v47 }
 0x32b   : > { %v12731_v43 = vpop.f32.mrb[40].mxu1  ;;  %10647 = vst [vmem:[#allocation2 + $0x128] sm:$0xff] %v13258_v12  ;;  %v458_v12 = vld [vmem:[#allocation2 + $0x1b8] sm:$0xff] }
 0x32c   : > { %v5914_v31 = vpop.f32.mrb[41].mxu1  ;;  %v13261_v28 = vadd.f32 %v12731_v43, %v445_v5 }
 0x32d   : > { %v12732_v1 = vpop.f32.mrb[42].mxu1  ;;  %v13267_v30 = vadd.f32 %v5914_v31, %v443_v23  ;;  %v12995_v39 = vpop.f32.mrb[40].mxu0  ;;  %v456_v31 = vld [vmem:[#allocation2 + $0x1a8] sm:$0xff] }
 0x32e   : > { %v5917_v6 = vpop.f32.mrb[43].mxu1  ;;  %v13273_v58 = vadd.f32 %v12732_v1, %v446_v48  ;;  %v13264_v3 = vadd.f32 %v13261_v28, %v12995_v39  ;;  %v10451_v18 = vpop.f32.mrb[41].mxu0 }
 0x32f   : > { %v13279_v50 = vadd.f32 %v5917_v6, %v444_v41  ;;  %v13270_v24 = vadd.f32 %v13267_v30, %v10451_v18  ;;  %v12996_v15 = vpop.f32.mrb[42].mxu0 }
 0x330   : > { %10652 = vst [vmem:[#allocation2 + $0x150] sm:$0xff] %v13264_v3  ;;  %v13276_v19 = vadd.f32 %v13273_v58, %v12996_v15  ;;  %v10454_v10 = vpop.f32.mrb[43].mxu0 }
 0x331   : > { %10650 = vst [vmem:[#allocation2 + $0x140] sm:$0xff] %v13270_v24  ;;  %v13282_v22 = vadd.f32 %v13279_v50, %v10454_v10  ;;  %v461_v24 = vld [vmem:[#allocation2 + $0x1d0] sm:$0xff]  ;;  %v459_v10 = vld [vmem:[#allocation2 + $0x1c0] sm:$0xff] }
 0x332   : > { %10653 = vst [vmem:[#allocation2 + $0x158] sm:$0xff] %v13276_v19 }
 0x333   : > { %v12735_v44 = vpop.f32.mrb[44].mxu1  ;;  %10651 = vst [vmem:[#allocation2 + $0x148] sm:$0xff] %v13282_v22  ;;  %v462_v22 = vld [vmem:[#allocation2 + $0x1d8] sm:$0xff] }
 0x334   : > { %v5930_v45 = vpop.f32.mrb[45].mxu1  ;;  %v13285_v42 = vadd.f32 %v12735_v44, %v449_v25 }
 0x335   : > { %v12736_v49 = vpop.f32.mrb[46].mxu1  ;;  %v13291_v56 = vadd.f32 %v5930_v45, %v447_v35  ;;  %v12999_v37 = vpop.f32.mrb[44].mxu0  ;;  %v460_v45 = vld [vmem:[#allocation2 + $0x1c8] sm:$0xff] }
 0x336   : > { %v5933_v29 = vpop.f32.mrb[47].mxu1  ;;  %v13297_v53 = vadd.f32 %v12736_v49, %v450_v27  ;;  %v13288_v52 = vadd.f32 %v13285_v42, %v12999_v37  ;;  %v10467_v4 = vpop.f32.mrb[45].mxu0 }
 0x337   : > { %v13303_v63 = vadd.f32 %v5933_v29, %v448_v9  ;;  %v13294_v62 = vadd.f32 %v13291_v56, %v10467_v4  ;;  %v13000_v7 = vpop.f32.mrb[46].mxu0 }
 0x338   : > { %10656 = vst [vmem:[#allocation2 + $0x170] sm:$0xff] %v13288_v52  ;;  %v13300_v54 = vadd.f32 %v13297_v53, %v13000_v7  ;;  %v10470_v20 = vpop.f32.mrb[47].mxu0 }
 0x339   : > { %10654 = vst [vmem:[#allocation2 + $0x160] sm:$0xff] %v13294_v62  ;;  %v13306_v32 = vadd.f32 %v13303_v63, %v10470_v20  ;;  %v465_v62 = vld [vmem:[#allocation2 + $0x1f0] sm:$0xff]  ;;  %v463_v20 = vld [vmem:[#allocation2 + $0x1e0] sm:$0xff] }
 0x33a   : > { %10657 = vst [vmem:[#allocation2 + $0x178] sm:$0xff] %v13300_v54 }
 0x33b   : > { %v12739_v59 = vpop.f32.mrb[48].mxu1  ;;  %10655 = vst [vmem:[#allocation2 + $0x168] sm:$0xff] %v13306_v32  ;;  %v466_v32 = vld [vmem:[#allocation2 + $0x1f8] sm:$0xff] }
 0x33c   : > { %v5946_v55 = vpop.f32.mrb[49].mxu1  ;;  %v13309_v13 = vadd.f32 %v12739_v59, %v453_v61 }
 0x33d   : > { %v12740_v46 = vpop.f32.mrb[50].mxu1  ;;  %v13315_v38 = vadd.f32 %v5946_v55, %v451_v26  ;;  %v13003_v60 = vpop.f32.mrb[48].mxu0  ;;  %v464_v55 = vld [vmem:[#allocation2 + $0x1e8] sm:$0xff] }
 0x33e   : > { %v5949_v51 = vpop.f32.mrb[51].mxu1  ;;  %v13321_v16 = vadd.f32 %v12740_v46, %v454_v34  ;;  %v13312_v0 = vadd.f32 %v13309_v13, %v13003_v60  ;;  %v10483_v57 = vpop.f32.mrb[49].mxu0 }
 0x33f   : > { %v13327_v11 = vadd.f32 %v5949_v51, %v452_v2  ;;  %v13318_v40 = vadd.f32 %v13315_v38, %v10483_v57  ;;  %v13004_v33 = vpop.f32.mrb[50].mxu0 }
 0x340   : > { %10660 = vst [vmem:[#allocation2 + $0x190] sm:$0xff] %v13312_v0  ;;  %v13324_v36 = vadd.f32 %v13321_v16, %v13004_v33  ;;  %v10486_v14 = vpop.f32.mrb[51].mxu0  ;;  %v10678_v33 = vld [vmem:[#allocation2] sm:$0xff] (!%p12121_p6) }
 0x341   : > { %10658 = vst [vmem:[#allocation2 + $0x180] sm:$0xff] %v13318_v40  ;;  %v13330_v17 = vadd.f32 %v13327_v11, %v10486_v14  ;;  %v10680_v14 = vld [vmem:[#allocation2 + $0x10] sm:$0xff] (!%p12121_p6)  ;;  %10742 = vst [vmem:[%s16971_s3] sm:$0xff] (!%p12121_p6), %v10678_v33 }
 0x342   : > { %10661 = vst [vmem:[#allocation2 + $0x198] sm:$0xff] %v13324_v36  ;;  %v10679_v36 = vld [vmem:[#allocation2 + $0x8] sm:$0xff] (!%p12121_p6)  ;;  %10744 = vst [vmem:[%s16971_s3 + $0x10] sm:$0xff] (!%p12121_p6), %v10680_v14 }
 0x343   : > { %v12743_v47 = vpop.f32.mrb[52].mxu1  ;;  %10659 = vst [vmem:[#allocation2 + $0x188] sm:$0xff] %v13330_v17  ;;  %10743 = vst [vmem:[%s16971_s3 + $0x8] sm:$0xff] (!%p12121_p6), %v10679_v36  ;;  %v10682_v17 = vld [vmem:[#allocation2 + $0x20] sm:$0xff] (!%p12121_p6) }
 0x344   : > { %v5962_v5 = vpop.f32.mrb[53].mxu1  ;;  %v13333_v43 = vadd.f32 %v12743_v47, %v457_v21  ;;  %v10681_v21 = vld [vmem:[#allocation2 + $0x18] sm:$0xff] (!%p12121_p6)  ;;  %v10683_v47 = vld [vmem:[#allocation2 + $0x28] sm:$0xff] (!%p12121_p6)  ;;  %10746 = vst [vmem:[%s16971_s3 + $0x20] sm:$0xff] (!%p12121_p6), %v10682_v17 }
 0x345   : > { %v12744_v23 = vpop.f32.mrb[54].mxu1  ;;  %v13339_v48 = vadd.f32 %v5962_v5, %v455_v8  ;;  %v13007_v1 = vpop.f32.mrb[52].mxu0  ;;  %10745 = vst [vmem:[%s16971_s3 + $0x18] sm:$0xff] (!%p12121_p6), %v10681_v21  ;;  %10747 = vst [vmem:[%s16971_s3 + $0x28] sm:$0xff] (!%p12121_p6), %v10683_v47  ;;  %v10684_v8 = vld [vmem:[#allocation2 + $0x30] sm:$0xff] (!%p12121_p6)  ;;  %v10685_v5 = vld [vmem:[#allocation2 + $0x38] sm:$0xff] (!%p12121_p6) }
 0x346   : > { %v5965_v28 = vpop.f32.mrb[55].mxu1  ;;  %v13345_v41 = vadd.f32 %v12744_v23, %v458_v12  ;;  %v13336_v30 = vadd.f32 %v13333_v43, %v13007_v1  ;;  %v10499_v6 = vpop.f32.mrb[53].mxu0  ;;  %v10686_v12 = vld [vmem:[#allocation2 + $0x40] sm:$0xff] (!%p12121_p6)  ;;  %10748 = vst [vmem:[%s16971_s3 + $0x30] sm:$0xff] (!%p12121_p6), %v10684_v8  ;;  %10749 = vst [vmem:[%s16971_s3 + $0x38] sm:$0xff] (!%p12121_p6), %v10685_v5  ;;  %v10687_v43 = vld [vmem:[#allocation2 + $0x48] sm:$0xff] (!%p12121_p6) }
 0x347   : > { %v13351_v39 = vadd.f32 %v5965_v28, %v456_v31  ;;  %v13342_v58 = vadd.f32 %v13339_v48, %v10499_v6  ;;  %v13008_v3 = vpop.f32.mrb[54].mxu0  ;;  %10750 = vst [vmem:[%s16971_s3 + $0x40] sm:$0xff] (!%p12121_p6), %v10686_v12  ;;  %v10688_v23 = vld [vmem:[#allocation2 + $0x50] sm:$0xff] (!%p12121_p6)  ;;  %v10689_v31 = vld [vmem:[#allocation2 + $0x58] sm:$0xff] (!%p12121_p6)  ;;  %10751 = vst [vmem:[%s16971_s3 + $0x48] sm:$0xff] (!%p12121_p6), %v10687_v43 }
 0x348   : > { %10664 = vst [vmem:[#allocation2 + $0x1b0] sm:$0xff] %v13336_v30  ;;  %v13348_v18 = vadd.f32 %v13345_v41, %v13008_v3  ;;  %v10502_v50 = vpop.f32.mrb[55].mxu0  ;;  %10752 = vst [vmem:[%s16971_s3 + $0x50] sm:$0xff] (!%p12121_p6), %v10688_v23  ;;  %v10690_v48 = vld [vmem:[#allocation2 + $0x60] sm:$0xff] (!%p12121_p6)  ;;  %v10691_v28 = vld [vmem:[#allocation2 + $0x68] sm:$0xff] (!%p12121_p6) }
 0x349   : > { %10662 = vst [vmem:[#allocation2 + $0x1a0] sm:$0xff] %v13342_v58  ;;  %v13354_v15 = vadd.f32 %v13351_v39, %v10502_v50  ;;  %10753 = vst [vmem:[%s16971_s3 + $0x58] sm:$0xff] (!%p12121_p6), %v10689_v31  ;;  %v10692_v1 = vld [vmem:[#allocation2 + $0x70] sm:$0xff] (!%p12121_p6)  ;;  %v10693_v41 = vld [vmem:[#allocation2 + $0x78] sm:$0xff] (!%p12121_p6) }
 0x34a   : > { %10665 = vst [vmem:[#allocation2 + $0x1b8] sm:$0xff] %v13348_v18  ;;  %10754 = vst [vmem:[%s16971_s3 + $0x60] sm:$0xff] (!%p12121_p6), %v10690_v48  ;;  %v10694_v30 = vld [vmem:[#allocation2 + $0x80] sm:$0xff] (!%p12121_p6)  ;;  %v10695_v6 = vld [vmem:[#allocation2 + $0x88] sm:$0xff] (!%p12121_p6) }
 0x34b   : > { %v12747_v19 = vpop.f32.mrb[56].mxu1  ;;  %10663 = vst [vmem:[#allocation2 + $0x1a8] sm:$0xff] %v13354_v15  ;;  %10755 = vst [vmem:[%s16971_s3 + $0x68] sm:$0xff] (!%p12121_p6), %v10691_v28  ;;  %v10696_v39 = vld [vmem:[#allocation2 + $0x90] sm:$0xff] (!%p12121_p6)  ;;  %v10697_v58 = vld [vmem:[#allocation2 + $0x98] sm:$0xff] (!%p12121_p6) }
 0x34c   : > { %v5978_v25 = vpop.f32.mrb[57].mxu1  ;;  %v13357_v44 = vadd.f32 %v12747_v19, %v461_v24  ;;  %10756 = vst [vmem:[%s16971_s3 + $0x70] sm:$0xff] (!%p12121_p6), %v10692_v1  ;;  %10757 = vst [vmem:[%s16971_s3 + $0x78] sm:$0xff] (!%p12121_p6), %v10693_v41  ;;  %v10698_v3 = vld [vmem:[#allocation2 + $0xa0] sm:$0xff] (!%p12121_p6)  ;;  %v10699_v18 = vld [vmem:[#allocation2 + $0xa8] sm:$0xff] (!%p12121_p6) }
 0x34d   : > { %v12748_v35 = vpop.f32.mrb[58].mxu1  ;;  %v13363_v27 = vadd.f32 %v5978_v25, %v459_v10  ;;  %v13011_v49 = vpop.f32.mrb[56].mxu0  ;;  %10758 = vst [vmem:[%s16971_s3 + $0x80] sm:$0xff] (!%p12121_p6), %v10694_v30  ;;  %10759 = vst [vmem:[%s16971_s3 + $0x88] sm:$0xff] (!%p12121_p6), %v10695_v6  ;;  %v10700_v50 = vld [vmem:[#allocation2 + $0xb0] sm:$0xff] (!%p12121_p6)  ;;  %v10701_v24 = vld [vmem:[#allocation2 + $0xb8] sm:$0xff] (!%p12121_p6) }
 0x34e   : > { %v5981_v42 = vpop.f32.mrb[59].mxu1  ;;  %v13369_v9 = vadd.f32 %v12748_v35, %v462_v22  ;;  %v13360_v56 = vadd.f32 %v13357_v44, %v13011_v49  ;;  %v10515_v29 = vpop.f32.mrb[57].mxu0  ;;  %10760 = vst [vmem:[%s16971_s3 + $0x90] sm:$0xff] (!%p12121_p6), %v10696_v39  ;;  %10761 = vst [vmem:[%s16971_s3 + $0x98] sm:$0xff] (!%p12121_p6), %v10697_v58  ;;  %v10702_v15 = vld [vmem:[#allocation2 + $0xc0] sm:$0xff] (!%p12121_p6)  ;;  %v10703_v19 = vld [vmem:[#allocation2 + $0xc8] sm:$0xff] (!%p12121_p6) }
 0x34f   : > { %v13375_v37 = vadd.f32 %v5981_v42, %v460_v45  ;;  %v13366_v53 = vadd.f32 %v13363_v27, %v10515_v29  ;;  %v13012_v52 = vpop.f32.mrb[58].mxu0  ;;  %10762 = vst [vmem:[%s16971_s3 + $0xa0] sm:$0xff] (!%p12121_p6), %v10698_v3  ;;  %10763 = vst [vmem:[%s16971_s3 + $0xa8] sm:$0xff] (!%p12121_p6), %v10699_v18  ;;  %v10704_v10 = vld [vmem:[#allocation2 + $0xd0] sm:$0xff] (!%p12121_p6)  ;;  %v10705_v25 = vld [vmem:[#allocation2 + $0xd8] sm:$0xff] (!%p12121_p6) }
 0x350   : > { %10668 = vst [vmem:[#allocation2 + $0x1d0] sm:$0xff] %v13360_v56  ;;  %v13372_v4 = vadd.f32 %v13369_v9, %v13012_v52  ;;  %v10518_v63 = vpop.f32.mrb[59].mxu0  ;;  %10764 = vst [vmem:[%s16971_s3 + $0xb0] sm:$0xff] (!%p12121_p6), %v10700_v50  ;;  %v10706_v22 = vld [vmem:[#allocation2 + $0xe0] sm:$0xff] (!%p12121_p6)  ;;  %v10707_v44 = vld [vmem:[#allocation2 + $0xe8] sm:$0xff] (!%p12121_p6) }
 0x351   : > { %10666 = vst [vmem:[#allocation2 + $0x1c0] sm:$0xff] %v13366_v53  ;;  %v13378_v7 = vadd.f32 %v13375_v37, %v10518_v63  ;;  %10765 = vst [vmem:[%s16971_s3 + $0xb8] sm:$0xff] (!%p12121_p6), %v10701_v24  ;;  %v10708_v35 = vld [vmem:[#allocation2 + $0xf0] sm:$0xff] (!%p12121_p6)  ;;  %v10709_v45 = vld [vmem:[#allocation2 + $0xf8] sm:$0xff] (!%p12121_p6) }
 0x352   : > { %10669 = vst [vmem:[#allocation2 + $0x1d8] sm:$0xff] %v13372_v4  ;;  %10766 = vst [vmem:[%s16971_s3 + $0xc0] sm:$0xff] (!%p12121_p6), %v10702_v15  ;;  %v10710_v27 = vld [vmem:[#allocation2 + $0x100] sm:$0xff] (!%p12121_p6)  ;;  %v10711_v42 = vld [vmem:[#allocation2 + $0x108] sm:$0xff] (!%p12121_p6) }
 0x353   : > { %v12751_v54 = vpop.f32.mrb[60].mxu1  ;;  %10667 = vst [vmem:[#allocation2 + $0x1c8] sm:$0xff] %v13378_v7  ;;  %10767 = vst [vmem:[%s16971_s3 + $0xc8] sm:$0xff] (!%p12121_p6), %v10703_v19  ;;  %v10712_v49 = vld [vmem:[#allocation2 + $0x110] sm:$0xff] (!%p12121_p6)  ;;  %v10713_v9 = vld [vmem:[#allocation2 + $0x118] sm:$0xff] (!%p12121_p6) }
 0x354   : > { %v5994_v61 = vpop.f32.mrb[61].mxu1  ;;  %v13381_v59 = vadd.f32 %v12751_v54, %v465_v62  ;;  %10768 = vst [vmem:[%s16971_s3 + $0xd0] sm:$0xff] (!%p12121_p6), %v10704_v10  ;;  %10769 = vst [vmem:[%s16971_s3 + $0xd8] sm:$0xff] (!%p12121_p6), %v10705_v25  ;;  %v10714_v56 = vld [vmem:[#allocation2 + $0x120] sm:$0xff] (!%p12121_p6)  ;;  %v10715_v29 = vld [vmem:[#allocation2 + $0x128] sm:$0xff] (!%p12121_p6) }
 0x355   : > { %v12752_v26 = vpop.f32.mrb[62].mxu1  ;;  %v13387_v34 = vadd.f32 %v5994_v61, %v463_v20  ;;  %v13015_v46 = vpop.f32.mrb[60].mxu0  ;;  %10677 = sbr.rel (%p12121_p6) target bundleno = 873 (0x369), region = 40  ;;  %10770 = vst [vmem:[%s16971_s3 + $0xe0] sm:$0xff] (!%p12121_p6), %v10706_v22  ;;  %10771 = vst [vmem:[%s16971_s3 + $0xe8] sm:$0xff] (!%p12121_p6), %v10707_v44  ;;  %v10716_v37 = vld [vmem:[#allocation2 + $0x130] sm:$0xff] (!%p12121_p6) }
 0x356   : > { %v5997_v13 = vpop.f32.mrb[63].mxu1  ;;  %v13393_v2 = vadd.f32 %v12752_v26, %v466_v32  ;;  %v13384_v38 = vadd.f32 %v13381_v59, %v13015_v46  ;;  %v10531_v51 = vpop.f32.mrb[61].mxu0  ;;  %10772 = vst [vmem:[%s16971_s3 + $0xf0] sm:$0xff] (!%p12121_p6), %v10708_v35  ;;  %10773 = vst [vmem:[%s16971_s3 + $0xf8] sm:$0xff] (!%p12121_p6), %v10709_v45  ;;  %v10717_v53 = vld [vmem:[#allocation2 + $0x138] sm:$0xff] (!%p12121_p6)  ;;  %v10718_v52 = vld [vmem:[#allocation2 + $0x140] sm:$0xff] (!%p12121_p6) }
 0x357   : > { %v13399_v60 = vadd.f32 %v5997_v13, %v464_v55  ;;  %v13390_v16 = vadd.f32 %v13387_v34, %v10531_v51  ;;  %v13016_v0 = vpop.f32.mrb[62].mxu0  ;;  %10774 = vst [vmem:[%s16971_s3 + $0x100] sm:$0xff] (!%p12121_p6), %v10710_v27  ;;  %10775 = vst [vmem:[%s16971_s3 + $0x108] sm:$0xff] (!%p12121_p6), %v10711_v42  ;;  %v10719_v4 = vld [vmem:[#allocation2 + $0x148] sm:$0xff] (!%p12121_p6)  ;;  %v10720_v63 = vld [vmem:[#allocation2 + $0x150] sm:$0xff] (!%p12121_p6) }
 0x358   : > { %10672 = vst [vmem:[#allocation2 + $0x1f0] sm:$0xff] %v13384_v38  ;;  %v13396_v57 = vadd.f32 %v13393_v2, %v13016_v0  ;;  %v10534_v11 = vpop.f32.mrb[63].mxu0  ;;  %10776 = vst [vmem:[%s16971_s3 + $0x110] sm:$0xff] (!%p12121_p6), %v10712_v49  ;;  %v10721_v62 = vld [vmem:[#allocation2 + $0x158] sm:$0xff] (!%p12121_p6)  ;;  %v10722_v7 = vld [vmem:[#allocation2 + $0x160] sm:$0xff] (!%p12121_p6) }
 0x359   : > { %10670 = vst [vmem:[#allocation2 + $0x1e0] sm:$0xff] %v13390_v16  ;;  %v13402_v40 = vadd.f32 %v13399_v60, %v10534_v11  ;;  %10777 = vst [vmem:[%s16971_s3 + $0x118] sm:$0xff] (!%p12121_p6), %v10713_v9  ;;  %v10723_v54 = vld [vmem:[#allocation2 + $0x168] sm:$0xff] (!%p12121_p6)  ;;  %v10724_v20 = vld [vmem:[#allocation2 + $0x170] sm:$0xff] (!%p12121_p6) }
 0x35a   : > { %10673 = vst [vmem:[#allocation2 + $0x1f8] sm:$0xff] %v13396_v57  ;;  %10778 = vst [vmem:[%s16971_s3 + $0x120] sm:$0xff] (!%p12121_p6), %v10714_v56  ;;  %v10725_v61 = vld [vmem:[#allocation2 + $0x178] sm:$0xff] (!%p12121_p6)  ;;  %v10726_v32 = vld [vmem:[#allocation2 + $0x180] sm:$0xff] (!%p12121_p6) }
 0x35b   : > { %10671 = vst [vmem:[#allocation2 + $0x1e8] sm:$0xff] %v13402_v40  ;;  %10779 = vst [vmem:[%s16971_s3 + $0x128] sm:$0xff] (!%p12121_p6), %v10715_v29  ;;  %v10727_v59 = vld [vmem:[#allocation2 + $0x188] sm:$0xff] (!%p12121_p6)  ;;  %v10728_v26 = vld [vmem:[#allocation2 + $0x190] sm:$0xff] (!%p12121_p6) }
 0x35c   : > { %10780 = vst [vmem:[%s16971_s3 + $0x130] sm:$0xff] %v10716_v37  ;;  %10781 = vst [vmem:[%s16971_s3 + $0x138] sm:$0xff] %v10717_v53  ;;  %v10729_v55 = vld [vmem:[#allocation2 + $0x198] sm:$0xff]  ;;  %v10730_v34 = vld [vmem:[#allocation2 + $0x1a0] sm:$0xff] }
 0x35d   : > { %10782 = vst [vmem:[%s16971_s3 + $0x140] sm:$0xff] %v10718_v52  ;;  %10783 = vst [vmem:[%s16971_s3 + $0x148] sm:$0xff] %v10719_v4  ;;  %v10731_v13 = vld [vmem:[#allocation2 + $0x1a8] sm:$0xff]  ;;  %v10732_v46 = vld [vmem:[#allocation2 + $0x1b0] sm:$0xff] }
 0x35e   : > { %10784 = vst [vmem:[%s16971_s3 + $0x150] sm:$0xff] %v10720_v63  ;;  %10785 = vst [vmem:[%s16971_s3 + $0x158] sm:$0xff] %v10721_v62  ;;  %v10733_v2 = vld [vmem:[#allocation2 + $0x1b8] sm:$0xff]  ;;  %v10734_v38 = vld [vmem:[#allocation2 + $0x1c0] sm:$0xff] }
 0x35f   : > { %10786 = vst [vmem:[%s16971_s3 + $0x160] sm:$0xff] %v10722_v7  ;;  %10787 = vst [vmem:[%s16971_s3 + $0x168] sm:$0xff] %v10723_v54  ;;  %v10735_v51 = vld [vmem:[#allocation2 + $0x1c8] sm:$0xff]  ;;  %v10736_v60 = vld [vmem:[#allocation2 + $0x1d0] sm:$0xff] }
 0x360   : > { %10788 = vst [vmem:[%s16971_s3 + $0x170] sm:$0xff] %v10724_v20  ;;  %10789 = vst [vmem:[%s16971_s3 + $0x178] sm:$0xff] %v10725_v61  ;;  %v10737_v16 = vld [vmem:[#allocation2 + $0x1d8] sm:$0xff]  ;;  %v10738_v0 = vld [vmem:[#allocation2 + $0x1e0] sm:$0xff] }
 0x361   : > { %10790 = vst [vmem:[%s16971_s3 + $0x180] sm:$0xff] %v10726_v32  ;;  %10791 = vst [vmem:[%s16971_s3 + $0x188] sm:$0xff] %v10727_v59  ;;  %v10740_v11 = vld [vmem:[#allocation2 + $0x1f0] sm:$0xff]  ;;  %v10741_v40 = vld [vmem:[#allocation2 + $0x1f8] sm:$0xff] }
 0x362   : > { %10792 = vst [vmem:[%s16971_s3 + $0x190] sm:$0xff] %v10728_v26  ;;  %10793 = vst [vmem:[%s16971_s3 + $0x198] sm:$0xff] %v10729_v55  ;;  %v10739_v57 = vld [vmem:[#allocation2 + $0x1e8] sm:$0xff] }
 0x363   : > { %10794 = vst [vmem:[%s16971_s3 + $0x1a0] sm:$0xff] %v10730_v34  ;;  %10795 = vst [vmem:[%s16971_s3 + $0x1a8] sm:$0xff] %v10731_v13 }
 0x364   : > { %10796 = vst [vmem:[%s16971_s3 + $0x1b0] sm:$0xff] %v10732_v46  ;;  %10797 = vst [vmem:[%s16971_s3 + $0x1b8] sm:$0xff] %v10733_v2 }
 0x365   : > { %10798 = vst [vmem:[%s16971_s3 + $0x1c0] sm:$0xff] %v10734_v38  ;;  %10799 = vst [vmem:[%s16971_s3 + $0x1c8] sm:$0xff] %v10735_v51 }
 0x366   : > { %10800 = vst [vmem:[%s16971_s3 + $0x1d0] sm:$0xff] %v10736_v60  ;;  %10801 = vst [vmem:[%s16971_s3 + $0x1d8] sm:$0xff] %v10737_v16 }
 0x367   : > { %10802 = vst [vmem:[%s16971_s3 + $0x1e0] sm:$0xff] %v10738_v0  ;;  %10803 = vst [vmem:[%s16971_s3 + $0x1e8] sm:$0xff] %v10739_v57 }
 0x368   : > { %10804 = vst [vmem:[%s16971_s3 + $0x1f0] sm:$0xff] %v10740_v11  ;;  %10805 = vst [vmem:[%s16971_s3 + $0x1f8] sm:$0xff] %v10741_v40 }
 0x369 PF: > { %s13_s14 = sadd.s32 1, %s14006_s14   ;;  %s16976_s12 = smov %s14002_s13 }
 0x36a   : > { %p10_p7 = scmp.ge.s32.totalorder %s13_s14, 4   ;;  %s16977_s13 = smov %s16979_s15 }
 0x36c   :  { %12 = sbr.rel (!%p10_p7) target bundleno = 2 (0x2), region = 86 }

</bundles_post_ra>
